<compile_context>
chip_gen: v7x
topology: tpu7x:2x2x1
jax: 0.10.0
libtpu: 0.0.40
codegen_flags: <defaults>
</compile_context>

<pallas_src>
import functools

import jax
import jax.numpy as jnp
import numpy as np
from jax.experimental import pallas as pl
from jax.experimental.pallas import tpu as pltpu


# -----------------------------------------------------------------------------
# GRU cell math (kernel-side building blocks)
# -----------------------------------------------------------------------------
def _sigmoid_via_tanh(x):
    # sigmoid(x) = 0.5 * tanh(0.5 x) + 0.5  -> one EUP op instead of exp + recip
    return 0.5 * jnp.tanh(0.5 * x) + 0.5


def _gru_gate(gi, gh, h):
    """gi/gh: (B, 3H) input/recurrent gate pre-activations, gate order (r,z,n)."""
    H = h.shape[-1]
    rz = _sigmoid_via_tanh(gi[:, :2 * H] + gh[:, :2 * H])   # one EUP push for r AND z
    r, z = rz[:, :H], rz[:, H:]
    n = jnp.tanh(gi[:, 2 * H:] + r * gh[:, 2 * H:])
    return (1.0 - z) * n + z * h


def _cell_from_gi(gi, h, w_hh, b_hh):
    """GRU cell where gi = x @ W_ih + b_ih was precomputed off the chain."""
    gh = jnp.dot(h, w_hh, preferred_element_type=jnp.float32) + b_hh
    return _gru_gate(gi, gh, h)


def _cell_split(x, h, w_ih, b_ih, w_hh, b_hh):
    """GRU cell with split x/h matmuls (no lane concat on the h->h chain)."""
    gi = jnp.dot(x, w_ih, preferred_element_type=jnp.float32) + b_ih
    gh = jnp.dot(h, w_hh, preferred_element_type=jnp.float32) + b_hh
    return _gru_gate(gi, gh, h)


# -----------------------------------------------------------------------------
# Fused whole-model kernel (single invocation, no grid)
# -----------------------------------------------------------------------------
def _seq2seq_kernel(x_enc_ref, dec_in_ref, slab_ref, out_ref, h_scr_ref, *,
                    layout, seq_len, pred_len, batch, c_out, hidden,
                    n_layers, row_stride, totrain):
    f32 = jnp.float32
    H, B, H3 = hidden, batch, 3 * hidden
    L, P, RS = seq_len, pred_len, row_stride

    # ---- hoisted weight/bias loads: each slab block is read exactly once ----
    def wblk(name):                                   # aligned static view -> load
        off, rows = layout[name]
        return slab_ref[off:off + rows, :]

    def brow(name):                                   # single bias row (1, 3H)
        off, _ = layout[name]
        return slab_ref[off:off + 1, :]

    def bb(name):                                     # pre-broadcast recurrent-path bias
        return jnp.broadcast_to(brow(name), (B, H3))

    def layer(tag, l):
        return dict(
            w_ih=wblk(f"w_ih_{tag}{l}"),
            w_hh=wblk(f"w_hh_{tag}{l}"),
            b_ih=brow(f"b_ih_{tag}{l}") if l == 0 else bb(f"b_ih_{tag}{l}"),
            b_hh=bb(f"b_hh_{tag}{l}"))

    enc = [layer("enc", l) for l in range(n_layers)]
    dec = [layer("dec", l) for l in range(n_layers)]
    w_out, b_out = wblk("w_out"), brow("b_out")

    # =============================== encoder ===============================
    # Layer-0 input gates for ALL timesteps in ONE off-chain MXU pass.
    gi_e0 = jnp.dot(x_enc_ref[...], enc[0]["w_ih"],
                    preferred_element_type=f32) + enc[0]["b_ih"]       # (L*B, 3H)

    h = [jnp.zeros((B, H), f32) for _ in range(n_layers)]
    for t in range(L):
        h[0] = _cell_from_gi(gi_e0[t * B:(t + 1) * B], h[0],
                             enc[0]["w_hh"], enc[0]["b_hh"])
        for l in range(1, n_layers):
            h[l] = _cell_split(h[l - 1], h[l], enc[l]["w_ih"], enc[l]["b_ih"],
                               enc[l]["w_hh"], enc[l]["b_hh"])
        # TODO(synk): nn.GRU inter-layer dropout omitted (eval-mode / deterministic)

    # =============================== decoder ===============================
    h_scr_ref[...] = jnp.zeros_like(h_scr_ref)        # deterministic scratch init

    if totrain:
        # Teacher forcing: every layer-0 input is known ahead of time -> one matmul.
        gi_d0 = jnp.dot(dec_in_ref[...], dec[0]["w_ih"],
                        preferred_element_type=f32) + dec[0]["b_ih"]   # (P*B, 3H)
        for t in range(P):
            h[0] = _cell_from_gi(gi_d0[t * B:(t + 1) * B], h[0],
                                 dec[0]["w_hh"], dec[0]["b_hh"])
            for l in range(1, n_layers):
                h[l] = _cell_split(h[l - 1], h[l], dec[l]["w_ih"], dec[l]["b_ih"],
                                   dec[l]["w_hh"], dec[l]["b_hh"])
            h_scr_ref[t * RS:t * RS + B, :] = h[-1]    # 8-aligned row block
    else:
        # Autoregressive: output Linear folded into layer-0 input weights, so the
        # fed-back `out` never sits on the recurrence.
        w_fold, b_fold = wblk("w_fold"), bb("b_fold")
        gi0 = jnp.dot(dec_in_ref[0:B, :], dec[0]["w_ih"],
                      preferred_element_type=f32) + dec[0]["b_ih"]
        for t in range(P):
            h[0] = _cell_from_gi(gi0, h[0], dec[0]["w_hh"], dec[0]["b_hh"])
            for l in range(1, n_layers):
                h[l] = _cell_split(h[l - 1], h[l], dec[l]["w_ih"], dec[l]["b_ih"],
                                   dec[l]["w_hh"], dec[l]["b_hh"])
            h_scr_ref[t * RS:t * RS + B, :] = h[-1]
            if t + 1 < P:   # gi for next step directly from h_top via folded weights
                gi0 = jnp.dot(h[-1], w_fold, preferred_element_type=f32) + b_fold

    # ---- output Linear hoisted out of the loop: ONE matmul + ONE store ----
    out_all = jnp.dot(h_scr_ref[...], w_out, preferred_element_type=f32) + b_out
    out_ref[...] = out_all[:, :c_out]


# -----------------------------------------------------------------------------
# Wrapper
# -----------------------------------------------------------------------------
def model_forward(params, x_enc, x_dec, *, pred_len, c_out, totrain):
    """x_enc: [B, L, enc_in], x_dec: [B, >=pred_len, >=c_out] (batch-first)."""
    B, L, enc_in = x_enc.shape
    n_layers = len(params["encoder"])
    H = params["encoder"][0][1].shape[0]
    H3 = 3 * H
    P = pred_len
    RS = -(-B // 8) * 8            # 8-aligned per-timestep row stride for the h scratch
    f32 = jnp.float32

    def pad_rows(a, mult=8):
        r = (-a.shape[0]) % mult
        return jnp.concatenate([a, jnp.zeros((r, a.shape[1]), f32)], 0) if r else a

    def pad_cols(a, width):
        c = width - a.shape[1]
        return jnp.concatenate([a, jnp.zeros((a.shape[0], c), f32)], 1) if c else a

    def tm2d(x):                   # (B, T, D) -> time-major rows (T*B, round_up(D, 8))
        T, D = x.shape[1], x.shape[2]
        x2 = jnp.transpose(x, (1, 0, 2)).reshape(T * B, D).astype(f32)
        return pad_cols(x2, D + ((-D) % 8))

    x_enc2d = tm2d(x_enc)                                                  # (L*B, enc_in~)
    dec_in = jnp.concatenate(
        [x_enc[:, -1:, -c_out:], x_dec[:, :P - 1, -c_out:]], axis=1)       # (B, P, c_out)
    dec_in2d = tm2d(dec_in)                                                # (P*B, c_out~)

    # Fold the output Linear into decoder layer-0 input weights (AR feedback path).
    wout, bout = params["out"]
    w_ih_d0, _, b_ih_d0, _ = params["decoder"][0]
    w_fold = (wout @ w_ih_d0).astype(f32)                                  # (H, 3H)
    b_fold = (bout @ w_ih_d0 + b_ih_d0).astype(f32)                        # (1, 3H)

    # ---- pack everything into ONE (rows, 3H) f32 slab -> a single DMA ----
    layout, blocks = {}, []
    cursor = 0

    def add(name, arr):
        nonlocal cursor
        arr = pad_cols(pad_rows(jnp.asarray(arr, f32)), H3)
        layout[name] = (cursor, arr.shape[0])
        blocks.append(arr)
        cursor += arr.shape[0]

    for tag, layers in (("enc", params["encoder"]), ("dec", params["decoder"])):
        for l, (w_ih, w_hh, b_ih, b_hh) in enumerate(layers):
            add(f"w_ih_{tag}{l}", w_ih)
            add(f"w_hh_{tag}{l}", w_hh)
            add(f"b_ih_{tag}{l}", b_ih)
            add(f"b_hh_{tag}{l}", b_hh)
    add("w_fold", w_fold)
    add("b_fold", b_fold)
    add("w_out", wout)
    add("b_out", bout)
    slab = jnp.concatenate(blocks, axis=0)                                 # (R, 3H)

    kernel = functools.partial(
        _seq2seq_kernel, layout=layout, seq_len=L, pred_len=P, batch=B,
        c_out=c_out, hidden=H, n_layers=n_layers, row_stride=RS, totrain=totrain)

    vmem = pl.BlockSpec(memory_space=pltpu.MemorySpace.VMEM)
    out2d = pl.pallas_call(
        kernel,
        out_shape=jax.ShapeDtypeStruct((P * RS, c_out), f32),
        in_specs=[vmem, vmem, vmem],
        out_specs=vmem,
        scratch_shapes=[pltpu.VMEM((P * RS, H), f32)],
    )(x_enc2d, dec_in2d, slab)

    out = out2d.reshape(P, RS, c_out)[:, :B, :]                            # (P, B, c_out)
    return jnp.transpose(out, (1, 0, 2))                                   # [B, P, c_out]


# -----------------------------------------------------------------------------
# Pure-JAX reference (mirrors the PyTorch forward exactly, eval-mode dropout)
# -----------------------------------------------------------------------------
def _gru_cell_ref(x, h, w_ih, w_hh, b_ih, b_hh):
    H = h.shape[-1]
    gi = jnp.dot(x, w_ih, preferred_element_type=jnp.float32) + b_ih
    gh = jnp.dot(h, w_hh, preferred_element_type=jnp.float32) + b_hh
    r = jax.nn.sigmoid(gi[:, :H] + gh[:, :H])
    z = jax.nn.sigmoid(gi[:, H:2 * H] + gh[:, H:2 * H])
    n = jnp.tanh(gi[:, 2 * H:] + r * gh[:, 2 * H:])
    return (1.0 - z) * n + z * h


def model_reference(params, x_enc, x_dec, *, pred_len, c_out, totrain):
    B, L, _ = x_enc.shape
    layer_in = x_enc
    hiddens = []
    for (w_ih, w_hh, b_ih, b_hh) in params["encoder"]:
        H = w_hh.shape[0]
        h = jnp.zeros((B, H), jnp.float32)
        outs = []
        for t in range(L):
            h = _gru_cell_ref(layer_in[:, t], h, w_ih, w_hh, b_ih, b_hh)
            outs.append(h)
        layer_in = jnp.stack(outs, axis=1)
        hiddens.append(h)

    wout, bout = params["out"]
    x = x_enc[:, -1, -c_out:]
    h_list = list(hiddens)
    outputs = []
    for t in range(pred_len):
        inp = x
        new_h = []
        for li, (w_ih, w_hh, b_ih, b_hh) in enumerate(params["decoder"]):
            hn = _gru_cell_ref(inp, h_list[li], w_ih, w_hh, b_ih, b_hh)
            new_h.append(hn)
            inp = hn
        h_list = new_h
        out = inp @ wout + bout
        outputs.append(out)
        x = x_dec[:, t, -c_out:] if totrain else out
    return jnp.stack(outputs, axis=1)


# -----------------------------------------------------------------------------
# Deterministic parameter init (PyTorch-style uniform(-1/sqrt(H), 1/sqrt(H)))
# -----------------------------------------------------------------------------
def init_params(key, enc_in, c_out, d_model, rnn_layers):
    k = 1.0 / np.sqrt(d_model)

    def uni(key, shape):
        return jax.random.uniform(key, shape, jnp.float32, minval=-k, maxval=k)

    keys = iter(jax.random.split(key, 64))

    def gru_layer(in_dim):
        return (uni(next(keys), (in_dim, 3 * d_model)),   # W_ih (transposed vs torch)
                uni(next(keys), (d_model, 3 * d_model)),  # W_hh (transposed vs torch)
                uni(next(keys), (1, 3 * d_model)),        # b_ih
                uni(next(keys), (1, 3 * d_model)))        # b_hh

    enc_layers = [gru_layer(enc_in if l == 0 else d_model) for l in range(rnn_layers)]
    dec_layers = [gru_layer(c_out if l == 0 else d_model) for l in range(rnn_layers)]
    out_w = uni(next(keys), (d_model, c_out))
    out_b = uni(next(keys), (1, c_out))
    return {"encoder": enc_layers, "decoder": dec_layers, "out": (out_w, out_b)}


# -----------------------------------------------------------------------------
if __name__ == "__main__":
    # configs: enc_in=8, c_out=4, d_model=32, rnn_layers=2, pred_len=6, seq_len=8
    B, L, enc_in = 2, 8, 8
    c_out, d_model, rnn_layers, pred_len = 4, 32, 2, 6

    root = jax.random.PRNGKey(0)
    kp, kx, kd = jax.random.split(root, 3)
    params = init_params(kp, enc_in, c_out, d_model, rnn_layers)
    x_enc = jax.random.normal(kx, (B, L, enc_in), jnp.float32)
    x_dec = jax.random.normal(kd, (B, pred_len, enc_in), jnp.float32)

    for totrain in (False, True):
        out = model_forward(params, x_enc, x_dec,
                            pred_len=pred_len, c_out=c_out, totrain=totrain)
        out = jax.block_until_ready(out)
        assert out.shape == (B, pred_len, c_out), out.shape

        ref = model_reference(params, x_enc, x_dec,
                              pred_len=pred_len, c_out=c_out, totrain=totrain)
        np.testing.assert_allclose(np.asarray(out), np.asarray(ref),
                                   atol=1e-3, rtol=1e-3)

    print("KERNEL_OK")
</pallas_src>

<mosaic_0001>
module attributes {stable_mosaic.version = 11 : i64} {
  func.func @_seq2seq_kernel(%arg0: memref<16x8xf32, #tpu.memory_space<vmem>>, %arg1: memref<12x8xf32, #tpu.memory_space<vmem>>, %arg2: memref<352x96xf32, #tpu.memory_space<vmem>>, %arg3: memref<48x4xf32, #tpu.memory_space<vmem>>, %arg4: memref<48x32xf32, #tpu.memory_space<vmem>>) attributes {dimension_semantics = [], scalar_prefetch = 0 : i64, scratch_operands = 1 : i64, tpu.core_type = #tpu.core_type<tc>} {
    %c0 = arith.constant 0 : index
    %c0_0 = arith.constant 0 : index
    %0 = vector.load %arg2[%c0, %c0_0] : memref<352x96xf32, #tpu.memory_space<vmem>>, vector<8x96xf32>
    %c8 = arith.constant 8 : index
    %c0_1 = arith.constant 0 : index
    %1 = vector.load %arg2[%c8, %c0_1] : memref<352x96xf32, #tpu.memory_space<vmem>>, vector<32x96xf32>
    %c40 = arith.constant 40 : index
    %c0_2 = arith.constant 0 : index
    %2 = vector.load %arg2[%c40, %c0_2] : memref<352x96xf32, #tpu.memory_space<vmem>>, vector<1x96xf32>
    %c48 = arith.constant 48 : index
    %c0_3 = arith.constant 0 : index
    %3 = vector.load %arg2[%c48, %c0_3] : memref<352x96xf32, #tpu.memory_space<vmem>>, vector<1x96xf32>
    %4 = vector.shape_cast %3 : vector<1x96xf32> to vector<1x96xf32>
    %5 = vector.broadcast %4 : vector<1x96xf32> to vector<2x96xf32>
    %c56 = arith.constant 56 : index
    %c0_4 = arith.constant 0 : index
    %6 = vector.load %arg2[%c56, %c0_4] : memref<352x96xf32, #tpu.memory_space<vmem>>, vector<32x96xf32>
    %c88 = arith.constant 88 : index
    %c0_5 = arith.constant 0 : index
    %7 = vector.load %arg2[%c88, %c0_5] : memref<352x96xf32, #tpu.memory_space<vmem>>, vector<32x96xf32>
    %c120 = arith.constant 120 : index
    %c0_6 = arith.constant 0 : index
    %8 = vector.load %arg2[%c120, %c0_6] : memref<352x96xf32, #tpu.memory_space<vmem>>, vector<1x96xf32>
    %9 = vector.shape_cast %8 : vector<1x96xf32> to vector<1x96xf32>
    %10 = vector.broadcast %9 : vector<1x96xf32> to vector<2x96xf32>
    %c128 = arith.constant 128 : index
    %c0_7 = arith.constant 0 : index
    %11 = vector.load %arg2[%c128, %c0_7] : memref<352x96xf32, #tpu.memory_space<vmem>>, vector<1x96xf32>
    %12 = vector.shape_cast %11 : vector<1x96xf32> to vector<1x96xf32>
    %13 = vector.broadcast %12 : vector<1x96xf32> to vector<2x96xf32>
    %c136 = arith.constant 136 : index
    %c0_8 = arith.constant 0 : index
    %14 = vector.load %arg2[%c136, %c0_8] : memref<352x96xf32, #tpu.memory_space<vmem>>, vector<8x96xf32>
    %c144 = arith.constant 144 : index
    %c0_9 = arith.constant 0 : index
    %15 = vector.load %arg2[%c144, %c0_9] : memref<352x96xf32, #tpu.memory_space<vmem>>, vector<32x96xf32>
    %c176 = arith.constant 176 : index
    %c0_10 = arith.constant 0 : index
    %16 = vector.load %arg2[%c176, %c0_10] : memref<352x96xf32, #tpu.memory_space<vmem>>, vector<1x96xf32>
    %c184 = arith.constant 184 : index
    %c0_11 = arith.constant 0 : index
    %17 = vector.load %arg2[%c184, %c0_11] : memref<352x96xf32, #tpu.memory_space<vmem>>, vector<1x96xf32>
    %18 = vector.shape_cast %17 : vector<1x96xf32> to vector<1x96xf32>
    %19 = vector.broadcast %18 : vector<1x96xf32> to vector<2x96xf32>
    %c192 = arith.constant 192 : index
    %c0_12 = arith.constant 0 : index
    %20 = vector.load %arg2[%c192, %c0_12] : memref<352x96xf32, #tpu.memory_space<vmem>>, vector<32x96xf32>
    %c224 = arith.constant 224 : index
    %c0_13 = arith.constant 0 : index
    %21 = vector.load %arg2[%c224, %c0_13] : memref<352x96xf32, #tpu.memory_space<vmem>>, vector<32x96xf32>
    %c256 = arith.constant 256 : index
    %c0_14 = arith.constant 0 : index
    %22 = vector.load %arg2[%c256, %c0_14] : memref<352x96xf32, #tpu.memory_space<vmem>>, vector<1x96xf32>
    %23 = vector.shape_cast %22 : vector<1x96xf32> to vector<1x96xf32>
    %24 = vector.broadcast %23 : vector<1x96xf32> to vector<2x96xf32>
    %c264 = arith.constant 264 : index
    %c0_15 = arith.constant 0 : index
    %25 = vector.load %arg2[%c264, %c0_15] : memref<352x96xf32, #tpu.memory_space<vmem>>, vector<1x96xf32>
    %26 = vector.shape_cast %25 : vector<1x96xf32> to vector<1x96xf32>
    %27 = vector.broadcast %26 : vector<1x96xf32> to vector<2x96xf32>
    %c312 = arith.constant 312 : index
    %c0_16 = arith.constant 0 : index
    %28 = vector.load %arg2[%c312, %c0_16] : memref<352x96xf32, #tpu.memory_space<vmem>>, vector<32x96xf32>
    %c344 = arith.constant 344 : index
    %c0_17 = arith.constant 0 : index
    %29 = vector.load %arg2[%c344, %c0_17] : memref<352x96xf32, #tpu.memory_space<vmem>>, vector<1x96xf32>
    %c0_18 = arith.constant 0 : index
    %c0_19 = arith.constant 0 : index
    %30 = vector.load %arg0[%c0_18, %c0_19] : memref<16x8xf32, #tpu.memory_space<vmem>>, vector<16x8xf32>
    %cst = arith.constant dense<0.000000e+00> : vector<16x96xf32>
    %31 = tpu.matmul %30, %0, %cst {dimension_numbers = #tpu.dot_dimension_numbers<[1], [0], [0], [1], [0, 0, 1, 1], [], []>} : vector<16x8xf32>, vector<8x96xf32>, vector<16x96xf32> -> vector<16x96xf32>
    %32 = vector.broadcast %2 : vector<1x96xf32> to vector<16x96xf32>
    %33 = arith.addf %31, %32 : vector<16x96xf32>
    %cst_20 = arith.constant 0.000000e+00 : f32
    %34 = vector.broadcast %cst_20 : f32 to vector<2x32xf32>
    %cst_21 = arith.constant 0.000000e+00 : f32
    %35 = vector.broadcast %cst_21 : f32 to vector<2x32xf32>
    %36 = vector.extract_strided_slice %33 {offsets = [0, 0], sizes = [2, 96], strides = [1, 1]} : vector<16x96xf32> to vector<2x96xf32>
    %cst_22 = arith.constant dense<0.000000e+00> : vector<2x96xf32>
    %37 = tpu.matmul %34, %1, %cst_22 {dimension_numbers = #tpu.dot_dimension_numbers<[1], [0], [0], [1], [0, 0, 1, 1], [], []>} : vector<2x32xf32>, vector<32x96xf32>, vector<2x96xf32> -> vector<2x96xf32>
    %38 = arith.addf %37, %5 : vector<2x96xf32>
    %39 = vector.extract_strided_slice %36 {offsets = [0, 0], sizes = [2, 64], strides = [1, 1]} : vector<2x96xf32> to vector<2x64xf32>
    %40 = vector.extract_strided_slice %38 {offsets = [0, 0], sizes = [2, 64], strides = [1, 1]} : vector<2x96xf32> to vector<2x64xf32>
    %41 = arith.addf %39, %40 : vector<2x64xf32>
    %cst_23 = arith.constant 5.000000e-01 : f32
    %42 = vector.broadcast %cst_23 : f32 to vector<2x64xf32>
    %43 = arith.mulf %42, %41 : vector<2x64xf32>
    %44 = math.tanh %43 : vector<2x64xf32>
    %cst_24 = arith.constant 5.000000e-01 : f32
    %45 = vector.broadcast %cst_24 : f32 to vector<2x64xf32>
    %46 = arith.mulf %45, %44 : vector<2x64xf32>
    %cst_25 = arith.constant 5.000000e-01 : f32
    %47 = vector.broadcast %cst_25 : f32 to vector<2x64xf32>
    %48 = arith.addf %46, %47 : vector<2x64xf32>
    %49 = vector.extract_strided_slice %48 {offsets = [0, 0], sizes = [2, 32], strides = [1, 1]} : vector<2x64xf32> to vector<2x32xf32>
    %50 = vector.extract_strided_slice %48 {offsets = [0, 32], sizes = [2, 32], strides = [1, 1]} : vector<2x64xf32> to vector<2x32xf32>
    %51 = vector.extract_strided_slice %36 {offsets = [0, 64], sizes = [2, 32], strides = [1, 1]} : vector<2x96xf32> to vector<2x32xf32>
    %52 = vector.extract_strided_slice %38 {offsets = [0, 64], sizes = [2, 32], strides = [1, 1]} : vector<2x96xf32> to vector<2x32xf32>
    %53 = arith.mulf %49, %52 : vector<2x32xf32>
    %54 = arith.addf %51, %53 : vector<2x32xf32>
    %55 = math.tanh %54 : vector<2x32xf32>
    %cst_26 = arith.constant 1.000000e+00 : f32
    %56 = vector.broadcast %cst_26 : f32 to vector<2x32xf32>
    %57 = arith.subf %56, %50 : vector<2x32xf32>
    %58 = arith.mulf %57, %55 : vector<2x32xf32>
    %59 = arith.mulf %50, %34 : vector<2x32xf32>
    %60 = arith.addf %58, %59 : vector<2x32xf32>
    %cst_27 = arith.constant dense<0.000000e+00> : vector<2x96xf32>
    %61 = tpu.matmul %60, %6, %cst_27 {dimension_numbers = #tpu.dot_dimension_numbers<[1], [0], [0], [1], [0, 0, 1, 1], [], []>} : vector<2x32xf32>, vector<32x96xf32>, vector<2x96xf32> -> vector<2x96xf32>
    %62 = arith.addf %61, %10 : vector<2x96xf32>
    %cst_28 = arith.constant dense<0.000000e+00> : vector<2x96xf32>
    %63 = tpu.matmul %35, %7, %cst_28 {dimension_numbers = #tpu.dot_dimension_numbers<[1], [0], [0], [1], [0, 0, 1, 1], [], []>} : vector<2x32xf32>, vector<32x96xf32>, vector<2x96xf32> -> vector<2x96xf32>
    %64 = arith.addf %63, %13 : vector<2x96xf32>
    %65 = vector.extract_strided_slice %62 {offsets = [0, 0], sizes = [2, 64], strides = [1, 1]} : vector<2x96xf32> to vector<2x64xf32>
    %66 = vector.extract_strided_slice %64 {offsets = [0, 0], sizes = [2, 64], strides = [1, 1]} : vector<2x96xf32> to vector<2x64xf32>
    %67 = arith.addf %65, %66 : vector<2x64xf32>
    %cst_29 = arith.constant 5.000000e-01 : f32
    %68 = vector.broadcast %cst_29 : f32 to vector<2x64xf32>
    %69 = arith.mulf %68, %67 : vector<2x64xf32>
    %70 = math.tanh %69 : vector<2x64xf32>
    %cst_30 = arith.constant 5.000000e-01 : f32
    %71 = vector.broadcast %cst_30 : f32 to vector<2x64xf32>
    %72 = arith.mulf %71, %70 : vector<2x64xf32>
    %cst_31 = arith.constant 5.000000e-01 : f32
    %73 = vector.broadcast %cst_31 : f32 to vector<2x64xf32>
    %74 = arith.addf %72, %73 : vector<2x64xf32>
    %75 = vector.extract_strided_slice %74 {offsets = [0, 0], sizes = [2, 32], strides = [1, 1]} : vector<2x64xf32> to vector<2x32xf32>
    %76 = vector.extract_strided_slice %74 {offsets = [0, 32], sizes = [2, 32], strides = [1, 1]} : vector<2x64xf32> to vector<2x32xf32>
    %77 = vector.extract_strided_slice %62 {offsets = [0, 64], sizes = [2, 32], strides = [1, 1]} : vector<2x96xf32> to vector<2x32xf32>
    %78 = vector.extract_strided_slice %64 {offsets = [0, 64], sizes = [2, 32], strides = [1, 1]} : vector<2x96xf32> to vector<2x32xf32>
    %79 = arith.mulf %75, %78 : vector<2x32xf32>
    %80 = arith.addf %77, %79 : vector<2x32xf32>
    %81 = math.tanh %80 : vector<2x32xf32>
    %cst_32 = arith.constant 1.000000e+00 : f32
    %82 = vector.broadcast %cst_32 : f32 to vector<2x32xf32>
    %83 = arith.subf %82, %76 : vector<2x32xf32>
    %84 = arith.mulf %83, %81 : vector<2x32xf32>
    %85 = arith.mulf %76, %35 : vector<2x32xf32>
    %86 = arith.addf %84, %85 : vector<2x32xf32>
    %87 = vector.extract_strided_slice %33 {offsets = [2, 0], sizes = [2, 96], strides = [1, 1]} : vector<16x96xf32> to vector<2x96xf32>
    %cst_33 = arith.constant dense<0.000000e+00> : vector<2x96xf32>
    %88 = tpu.matmul %60, %1, %cst_33 {dimension_numbers = #tpu.dot_dimension_numbers<[1], [0], [0], [1], [0, 0, 1, 1], [], []>} : vector<2x32xf32>, vector<32x96xf32>, vector<2x96xf32> -> vector<2x96xf32>
    %89 = arith.addf %88, %5 : vector<2x96xf32>
    %90 = vector.extract_strided_slice %87 {offsets = [0, 0], sizes = [2, 64], strides = [1, 1]} : vector<2x96xf32> to vector<2x64xf32>
    %91 = vector.extract_strided_slice %89 {offsets = [0, 0], sizes = [2, 64], strides = [1, 1]} : vector<2x96xf32> to vector<2x64xf32>
    %92 = arith.addf %90, %91 : vector<2x64xf32>
    %cst_34 = arith.constant 5.000000e-01 : f32
    %93 = vector.broadcast %cst_34 : f32 to vector<2x64xf32>
    %94 = arith.mulf %93, %92 : vector<2x64xf32>
    %95 = math.tanh %94 : vector<2x64xf32>
    %cst_35 = arith.constant 5.000000e-01 : f32
    %96 = vector.broadcast %cst_35 : f32 to vector<2x64xf32>
    %97 = arith.mulf %96, %95 : vector<2x64xf32>
    %cst_36 = arith.constant 5.000000e-01 : f32
    %98 = vector.broadcast %cst_36 : f32 to vector<2x64xf32>
    %99 = arith.addf %97, %98 : vector<2x64xf32>
    %100 = vector.extract_strided_slice %99 {offsets = [0, 0], sizes = [2, 32], strides = [1, 1]} : vector<2x64xf32> to vector<2x32xf32>
    %101 = vector.extract_strided_slice %99 {offsets = [0, 32], sizes = [2, 32], strides = [1, 1]} : vector<2x64xf32> to vector<2x32xf32>
    %102 = vector.extract_strided_slice %87 {offsets = [0, 64], sizes = [2, 32], strides = [1, 1]} : vector<2x96xf32> to vector<2x32xf32>
    %103 = vector.extract_strided_slice %89 {offsets = [0, 64], sizes = [2, 32], strides = [1, 1]} : vector<2x96xf32> to vector<2x32xf32>
    %104 = arith.mulf %100, %103 : vector<2x32xf32>
    %105 = arith.addf %102, %104 : vector<2x32xf32>
    %106 = math.tanh %105 : vector<2x32xf32>
    %cst_37 = arith.constant 1.000000e+00 : f32
    %107 = vector.broadcast %cst_37 : f32 to vector<2x32xf32>
    %108 = arith.subf %107, %101 : vector<2x32xf32>
    %109 = arith.mulf %108, %106 : vector<2x32xf32>
    %110 = arith.mulf %101, %60 : vector<2x32xf32>
    %111 = arith.addf %109, %110 : vector<2x32xf32>
    %cst_38 = arith.constant dense<0.000000e+00> : vector<2x96xf32>
    %112 = tpu.matmul %111, %6, %cst_38 {dimension_numbers = #tpu.dot_dimension_numbers<[1], [0], [0], [1], [0, 0, 1, 1], [], []>} : vector<2x32xf32>, vector<32x96xf32>, vector<2x96xf32> -> vector<2x96xf32>
    %113 = arith.addf %112, %10 : vector<2x96xf32>
    %cst_39 = arith.constant dense<0.000000e+00> : vector<2x96xf32>
    %114 = tpu.matmul %86, %7, %cst_39 {dimension_numbers = #tpu.dot_dimension_numbers<[1], [0], [0], [1], [0, 0, 1, 1], [], []>} : vector<2x32xf32>, vector<32x96xf32>, vector<2x96xf32> -> vector<2x96xf32>
    %115 = arith.addf %114, %13 : vector<2x96xf32>
    %116 = vector.extract_strided_slice %113 {offsets = [0, 0], sizes = [2, 64], strides = [1, 1]} : vector<2x96xf32> to vector<2x64xf32>
    %117 = vector.extract_strided_slice %115 {offsets = [0, 0], sizes = [2, 64], strides = [1, 1]} : vector<2x96xf32> to vector<2x64xf32>
    %118 = arith.addf %116, %117 : vector<2x64xf32>
    %cst_40 = arith.constant 5.000000e-01 : f32
    %119 = vector.broadcast %cst_40 : f32 to vector<2x64xf32>
    %120 = arith.mulf %119, %118 : vector<2x64xf32>
    %121 = math.tanh %120 : vector<2x64xf32>
    %cst_41 = arith.constant 5.000000e-01 : f32
    %122 = vector.broadcast %cst_41 : f32 to vector<2x64xf32>
    %123 = arith.mulf %122, %121 : vector<2x64xf32>
    %cst_42 = arith.constant 5.000000e-01 : f32
    %124 = vector.broadcast %cst_42 : f32 to vector<2x64xf32>
    %125 = arith.addf %123, %124 : vector<2x64xf32>
    %126 = vector.extract_strided_slice %125 {offsets = [0, 0], sizes = [2, 32], strides = [1, 1]} : vector<2x64xf32> to vector<2x32xf32>
    %127 = vector.extract_strided_slice %125 {offsets = [0, 32], sizes = [2, 32], strides = [1, 1]} : vector<2x64xf32> to vector<2x32xf32>
    %128 = vector.extract_strided_slice %113 {offsets = [0, 64], sizes = [2, 32], strides = [1, 1]} : vector<2x96xf32> to vector<2x32xf32>
    %129 = vector.extract_strided_slice %115 {offsets = [0, 64], sizes = [2, 32], strides = [1, 1]} : vector<2x96xf32> to vector<2x32xf32>
    %130 = arith.mulf %126, %129 : vector<2x32xf32>
    %131 = arith.addf %128, %130 : vector<2x32xf32>
    %132 = math.tanh %131 : vector<2x32xf32>
    %cst_43 = arith.constant 1.000000e+00 : f32
    %133 = vector.broadcast %cst_43 : f32 to vector<2x32xf32>
    %134 = arith.subf %133, %127 : vector<2x32xf32>
    %135 = arith.mulf %134, %132 : vector<2x32xf32>
    %136 = arith.mulf %127, %86 : vector<2x32xf32>
    %137 = arith.addf %135, %136 : vector<2x32xf32>
    %138 = vector.extract_strided_slice %33 {offsets = [4, 0], sizes = [2, 96], strides = [1, 1]} : vector<16x96xf32> to vector<2x96xf32>
    %cst_44 = arith.constant dense<0.000000e+00> : vector<2x96xf32>
    %139 = tpu.matmul %111, %1, %cst_44 {dimension_numbers = #tpu.dot_dimension_numbers<[1], [0], [0], [1], [0, 0, 1, 1], [], []>} : vector<2x32xf32>, vector<32x96xf32>, vector<2x96xf32> -> vector<2x96xf32>
    %140 = arith.addf %139, %5 : vector<2x96xf32>
    %141 = vector.extract_strided_slice %138 {offsets = [0, 0], sizes = [2, 64], strides = [1, 1]} : vector<2x96xf32> to vector<2x64xf32>
    %142 = vector.extract_strided_slice %140 {offsets = [0, 0], sizes = [2, 64], strides = [1, 1]} : vector<2x96xf32> to vector<2x64xf32>
    %143 = arith.addf %141, %142 : vector<2x64xf32>
    %cst_45 = arith.constant 5.000000e-01 : f32
    %144 = vector.broadcast %cst_45 : f32 to vector<2x64xf32>
    %145 = arith.mulf %144, %143 : vector<2x64xf32>
    %146 = math.tanh %145 : vector<2x64xf32>
    %cst_46 = arith.constant 5.000000e-01 : f32
    %147 = vector.broadcast %cst_46 : f32 to vector<2x64xf32>
    %148 = arith.mulf %147, %146 : vector<2x64xf32>
    %cst_47 = arith.constant 5.000000e-01 : f32
    %149 = vector.broadcast %cst_47 : f32 to vector<2x64xf32>
    %150 = arith.addf %148, %149 : vector<2x64xf32>
    %151 = vector.extract_strided_slice %150 {offsets = [0, 0], sizes = [2, 32], strides = [1, 1]} : vector<2x64xf32> to vector<2x32xf32>
    %152 = vector.extract_strided_slice %150 {offsets = [0, 32], sizes = [2, 32], strides = [1, 1]} : vector<2x64xf32> to vector<2x32xf32>
    %153 = vector.extract_strided_slice %138 {offsets = [0, 64], sizes = [2, 32], strides = [1, 1]} : vector<2x96xf32> to vector<2x32xf32>
    %154 = vector.extract_strided_slice %140 {offsets = [0, 64], sizes = [2, 32], strides = [1, 1]} : vector<2x96xf32> to vector<2x32xf32>
    %155 = arith.mulf %151, %154 : vector<2x32xf32>
    %156 = arith.addf %153, %155 : vector<2x32xf32>
    %157 = math.tanh %156 : vector<2x32xf32>
    %cst_48 = arith.constant 1.000000e+00 : f32
    %158 = vector.broadcast %cst_48 : f32 to vector<2x32xf32>
    %159 = arith.subf %158, %152 : vector<2x32xf32>
    %160 = arith.mulf %159, %157 : vector<2x32xf32>
    %161 = arith.mulf %152, %111 : vector<2x32xf32>
    %162 = arith.addf %160, %161 : vector<2x32xf32>
    %cst_49 = arith.constant dense<0.000000e+00> : vector<2x96xf32>
    %163 = tpu.matmul %162, %6, %cst_49 {dimension_numbers = #tpu.dot_dimension_numbers<[1], [0], [0], [1], [0, 0, 1, 1], [], []>} : vector<2x32xf32>, vector<32x96xf32>, vector<2x96xf32> -> vector<2x96xf32>
    %164 = arith.addf %163, %10 : vector<2x96xf32>
    %cst_50 = arith.constant dense<0.000000e+00> : vector<2x96xf32>
    %165 = tpu.matmul %137, %7, %cst_50 {dimension_numbers = #tpu.dot_dimension_numbers<[1], [0], [0], [1], [0, 0, 1, 1], [], []>} : vector<2x32xf32>, vector<32x96xf32>, vector<2x96xf32> -> vector<2x96xf32>
    %166 = arith.addf %165, %13 : vector<2x96xf32>
    %167 = vector.extract_strided_slice %164 {offsets = [0, 0], sizes = [2, 64], strides = [1, 1]} : vector<2x96xf32> to vector<2x64xf32>
    %168 = vector.extract_strided_slice %166 {offsets = [0, 0], sizes = [2, 64], strides = [1, 1]} : vector<2x96xf32> to vector<2x64xf32>
    %169 = arith.addf %167, %168 : vector<2x64xf32>
    %cst_51 = arith.constant 5.000000e-01 : f32
    %170 = vector.broadcast %cst_51 : f32 to vector<2x64xf32>
    %171 = arith.mulf %170, %169 : vector<2x64xf32>
    %172 = math.tanh %171 : vector<2x64xf32>
    %cst_52 = arith.constant 5.000000e-01 : f32
    %173 = vector.broadcast %cst_52 : f32 to vector<2x64xf32>
    %174 = arith.mulf %173, %172 : vector<2x64xf32>
    %cst_53 = arith.constant 5.000000e-01 : f32
    %175 = vector.broadcast %cst_53 : f32 to vector<2x64xf32>
    %176 = arith.addf %174, %175 : vector<2x64xf32>
    %177 = vector.extract_strided_slice %176 {offsets = [0, 0], sizes = [2, 32], strides = [1, 1]} : vector<2x64xf32> to vector<2x32xf32>
    %178 = vector.extract_strided_slice %176 {offsets = [0, 32], sizes = [2, 32], strides = [1, 1]} : vector<2x64xf32> to vector<2x32xf32>
    %179 = vector.extract_strided_slice %164 {offsets = [0, 64], sizes = [2, 32], strides = [1, 1]} : vector<2x96xf32> to vector<2x32xf32>
    %180 = vector.extract_strided_slice %166 {offsets = [0, 64], sizes = [2, 32], strides = [1, 1]} : vector<2x96xf32> to vector<2x32xf32>
    %181 = arith.mulf %177, %180 : vector<2x32xf32>
    %182 = arith.addf %179, %181 : vector<2x32xf32>
    %183 = math.tanh %182 : vector<2x32xf32>
    %cst_54 = arith.constant 1.000000e+00 : f32
    %184 = vector.broadcast %cst_54 : f32 to vector<2x32xf32>
    %185 = arith.subf %184, %178 : vector<2x32xf32>
    %186 = arith.mulf %185, %183 : vector<2x32xf32>
    %187 = arith.mulf %178, %137 : vector<2x32xf32>
    %188 = arith.addf %186, %187 : vector<2x32xf32>
    %189 = vector.extract_strided_slice %33 {offsets = [6, 0], sizes = [2, 96], strides = [1, 1]} : vector<16x96xf32> to vector<2x96xf32>
    %cst_55 = arith.constant dense<0.000000e+00> : vector<2x96xf32>
    %190 = tpu.matmul %162, %1, %cst_55 {dimension_numbers = #tpu.dot_dimension_numbers<[1], [0], [0], [1], [0, 0, 1, 1], [], []>} : vector<2x32xf32>, vector<32x96xf32>, vector<2x96xf32> -> vector<2x96xf32>
    %191 = arith.addf %190, %5 : vector<2x96xf32>
    %192 = vector.extract_strided_slice %189 {offsets = [0, 0], sizes = [2, 64], strides = [1, 1]} : vector<2x96xf32> to vector<2x64xf32>
    %193 = vector.extract_strided_slice %191 {offsets = [0, 0], sizes = [2, 64], strides = [1, 1]} : vector<2x96xf32> to vector<2x64xf32>
    %194 = arith.addf %192, %193 : vector<2x64xf32>
    %cst_56 = arith.constant 5.000000e-01 : f32
    %195 = vector.broadcast %cst_56 : f32 to vector<2x64xf32>
    %196 = arith.mulf %195, %194 : vector<2x64xf32>
    %197 = math.tanh %196 : vector<2x64xf32>
    %cst_57 = arith.constant 5.000000e-01 : f32
    %198 = vector.broadcast %cst_57 : f32 to vector<2x64xf32>
    %199 = arith.mulf %198, %197 : vector<2x64xf32>
    %cst_58 = arith.constant 5.000000e-01 : f32
    %200 = vector.broadcast %cst_58 : f32 to vector<2x64xf32>
    %201 = arith.addf %199, %200 : vector<2x64xf32>
    %202 = vector.extract_strided_slice %201 {offsets = [0, 0], sizes = [2, 32], strides = [1, 1]} : vector<2x64xf32> to vector<2x32xf32>
    %203 = vector.extract_strided_slice %201 {offsets = [0, 32], sizes = [2, 32], strides = [1, 1]} : vector<2x64xf32> to vector<2x32xf32>
    %204 = vector.extract_strided_slice %189 {offsets = [0, 64], sizes = [2, 32], strides = [1, 1]} : vector<2x96xf32> to vector<2x32xf32>
    %205 = vector.extract_strided_slice %191 {offsets = [0, 64], sizes = [2, 32], strides = [1, 1]} : vector<2x96xf32> to vector<2x32xf32>
    %206 = arith.mulf %202, %205 : vector<2x32xf32>
    %207 = arith.addf %204, %206 : vector<2x32xf32>
    %208 = math.tanh %207 : vector<2x32xf32>
    %cst_59 = arith.constant 1.000000e+00 : f32
    %209 = vector.broadcast %cst_59 : f32 to vector<2x32xf32>
    %210 = arith.subf %209, %203 : vector<2x32xf32>
    %211 = arith.mulf %210, %208 : vector<2x32xf32>
    %212 = arith.mulf %203, %162 : vector<2x32xf32>
    %213 = arith.addf %211, %212 : vector<2x32xf32>
    %cst_60 = arith.constant dense<0.000000e+00> : vector<2x96xf32>
    %214 = tpu.matmul %213, %6, %cst_60 {dimension_numbers = #tpu.dot_dimension_numbers<[1], [0], [0], [1], [0, 0, 1, 1], [], []>} : vector<2x32xf32>, vector<32x96xf32>, vector<2x96xf32> -> vector<2x96xf32>
    %215 = arith.addf %214, %10 : vector<2x96xf32>
    %cst_61 = arith.constant dense<0.000000e+00> : vector<2x96xf32>
    %216 = tpu.matmul %188, %7, %cst_61 {dimension_numbers = #tpu.dot_dimension_numbers<[1], [0], [0], [1], [0, 0, 1, 1], [], []>} : vector<2x32xf32>, vector<32x96xf32>, vector<2x96xf32> -> vector<2x96xf32>
    %217 = arith.addf %216, %13 : vector<2x96xf32>
    %218 = vector.extract_strided_slice %215 {offsets = [0, 0], sizes = [2, 64], strides = [1, 1]} : vector<2x96xf32> to vector<2x64xf32>
    %219 = vector.extract_strided_slice %217 {offsets = [0, 0], sizes = [2, 64], strides = [1, 1]} : vector<2x96xf32> to vector<2x64xf32>
    %220 = arith.addf %218, %219 : vector<2x64xf32>
    %cst_62 = arith.constant 5.000000e-01 : f32
    %221 = vector.broadcast %cst_62 : f32 to vector<2x64xf32>
    %222 = arith.mulf %221, %220 : vector<2x64xf32>
    %223 = math.tanh %222 : vector<2x64xf32>
    %cst_63 = arith.constant 5.000000e-01 : f32
    %224 = vector.broadcast %cst_63 : f32 to vector<2x64xf32>
    %225 = arith.mulf %224, %223 : vector<2x64xf32>
    %cst_64 = arith.constant 5.000000e-01 : f32
    %226 = vector.broadcast %cst_64 : f32 to vector<2x64xf32>
    %227 = arith.addf %225, %226 : vector<2x64xf32>
    %228 = vector.extract_strided_slice %227 {offsets = [0, 0], sizes = [2, 32], strides = [1, 1]} : vector<2x64xf32> to vector<2x32xf32>
    %229 = vector.extract_strided_slice %227 {offsets = [0, 32], sizes = [2, 32], strides = [1, 1]} : vector<2x64xf32> to vector<2x32xf32>
    %230 = vector.extract_strided_slice %215 {offsets = [0, 64], sizes = [2, 32], strides = [1, 1]} : vector<2x96xf32> to vector<2x32xf32>
    %231 = vector.extract_strided_slice %217 {offsets = [0, 64], sizes = [2, 32], strides = [1, 1]} : vector<2x96xf32> to vector<2x32xf32>
    %232 = arith.mulf %228, %231 : vector<2x32xf32>
    %233 = arith.addf %230, %232 : vector<2x32xf32>
    %234 = math.tanh %233 : vector<2x32xf32>
    %cst_65 = arith.constant 1.000000e+00 : f32
    %235 = vector.broadcast %cst_65 : f32 to vector<2x32xf32>
    %236 = arith.subf %235, %229 : vector<2x32xf32>
    %237 = arith.mulf %236, %234 : vector<2x32xf32>
    %238 = arith.mulf %229, %188 : vector<2x32xf32>
    %239 = arith.addf %237, %238 : vector<2x32xf32>
    %240 = vector.extract_strided_slice %33 {offsets = [8, 0], sizes = [2, 96], strides = [1, 1]} : vector<16x96xf32> to vector<2x96xf32>
    %cst_66 = arith.constant dense<0.000000e+00> : vector<2x96xf32>
    %241 = tpu.matmul %213, %1, %cst_66 {dimension_numbers = #tpu.dot_dimension_numbers<[1], [0], [0], [1], [0, 0, 1, 1], [], []>} : vector<2x32xf32>, vector<32x96xf32>, vector<2x96xf32> -> vector<2x96xf32>
    %242 = arith.addf %241, %5 : vector<2x96xf32>
    %243 = vector.extract_strided_slice %240 {offsets = [0, 0], sizes = [2, 64], strides = [1, 1]} : vector<2x96xf32> to vector<2x64xf32>
    %244 = vector.extract_strided_slice %242 {offsets = [0, 0], sizes = [2, 64], strides = [1, 1]} : vector<2x96xf32> to vector<2x64xf32>
    %245 = arith.addf %243, %244 : vector<2x64xf32>
    %cst_67 = arith.constant 5.000000e-01 : f32
    %246 = vector.broadcast %cst_67 : f32 to vector<2x64xf32>
    %247 = arith.mulf %246, %245 : vector<2x64xf32>
    %248 = math.tanh %247 : vector<2x64xf32>
    %cst_68 = arith.constant 5.000000e-01 : f32
    %249 = vector.broadcast %cst_68 : f32 to vector<2x64xf32>
    %250 = arith.mulf %249, %248 : vector<2x64xf32>
    %cst_69 = arith.constant 5.000000e-01 : f32
    %251 = vector.broadcast %cst_69 : f32 to vector<2x64xf32>
    %252 = arith.addf %250, %251 : vector<2x64xf32>
    %253 = vector.extract_strided_slice %252 {offsets = [0, 0], sizes = [2, 32], strides = [1, 1]} : vector<2x64xf32> to vector<2x32xf32>
    %254 = vector.extract_strided_slice %252 {offsets = [0, 32], sizes = [2, 32], strides = [1, 1]} : vector<2x64xf32> to vector<2x32xf32>
    %255 = vector.extract_strided_slice %240 {offsets = [0, 64], sizes = [2, 32], strides = [1, 1]} : vector<2x96xf32> to vector<2x32xf32>
    %256 = vector.extract_strided_slice %242 {offsets = [0, 64], sizes = [2, 32], strides = [1, 1]} : vector<2x96xf32> to vector<2x32xf32>
    %257 = arith.mulf %253, %256 : vector<2x32xf32>
    %258 = arith.addf %255, %257 : vector<2x32xf32>
    %259 = math.tanh %258 : vector<2x32xf32>
    %cst_70 = arith.constant 1.000000e+00 : f32
    %260 = vector.broadcast %cst_70 : f32 to vector<2x32xf32>
    %261 = arith.subf %260, %254 : vector<2x32xf32>
    %262 = arith.mulf %261, %259 : vector<2x32xf32>
    %263 = arith.mulf %254, %213 : vector<2x32xf32>
    %264 = arith.addf %262, %263 : vector<2x32xf32>
    %cst_71 = arith.constant dense<0.000000e+00> : vector<2x96xf32>
    %265 = tpu.matmul %264, %6, %cst_71 {dimension_numbers = #tpu.dot_dimension_numbers<[1], [0], [0], [1], [0, 0, 1, 1], [], []>} : vector<2x32xf32>, vector<32x96xf32>, vector<2x96xf32> -> vector<2x96xf32>
    %266 = arith.addf %265, %10 : vector<2x96xf32>
    %cst_72 = arith.constant dense<0.000000e+00> : vector<2x96xf32>
    %267 = tpu.matmul %239, %7, %cst_72 {dimension_numbers = #tpu.dot_dimension_numbers<[1], [0], [0], [1], [0, 0, 1, 1], [], []>} : vector<2x32xf32>, vector<32x96xf32>, vector<2x96xf32> -> vector<2x96xf32>
    %268 = arith.addf %267, %13 : vector<2x96xf32>
    %269 = vector.extract_strided_slice %266 {offsets = [0, 0], sizes = [2, 64], strides = [1, 1]} : vector<2x96xf32> to vector<2x64xf32>
    %270 = vector.extract_strided_slice %268 {offsets = [0, 0], sizes = [2, 64], strides = [1, 1]} : vector<2x96xf32> to vector<2x64xf32>
    %271 = arith.addf %269, %270 : vector<2x64xf32>
    %cst_73 = arith.constant 5.000000e-01 : f32
    %272 = vector.broadcast %cst_73 : f32 to vector<2x64xf32>
    %273 = arith.mulf %272, %271 : vector<2x64xf32>
    %274 = math.tanh %273 : vector<2x64xf32>
    %cst_74 = arith.constant 5.000000e-01 : f32
    %275 = vector.broadcast %cst_74 : f32 to vector<2x64xf32>
    %276 = arith.mulf %275, %274 : vector<2x64xf32>
    %cst_75 = arith.constant 5.000000e-01 : f32
    %277 = vector.broadcast %cst_75 : f32 to vector<2x64xf32>
    %278 = arith.addf %276, %277 : vector<2x64xf32>
    %279 = vector.extract_strided_slice %278 {offsets = [0, 0], sizes = [2, 32], strides = [1, 1]} : vector<2x64xf32> to vector<2x32xf32>
    %280 = vector.extract_strided_slice %278 {offsets = [0, 32], sizes = [2, 32], strides = [1, 1]} : vector<2x64xf32> to vector<2x32xf32>
    %281 = vector.extract_strided_slice %266 {offsets = [0, 64], sizes = [2, 32], strides = [1, 1]} : vector<2x96xf32> to vector<2x32xf32>
    %282 = vector.extract_strided_slice %268 {offsets = [0, 64], sizes = [2, 32], strides = [1, 1]} : vector<2x96xf32> to vector<2x32xf32>
    %283 = arith.mulf %279, %282 : vector<2x32xf32>
    %284 = arith.addf %281, %283 : vector<2x32xf32>
    %285 = math.tanh %284 : vector<2x32xf32>
    %cst_76 = arith.constant 1.000000e+00 : f32
    %286 = vector.broadcast %cst_76 : f32 to vector<2x32xf32>
    %287 = arith.subf %286, %280 : vector<2x32xf32>
    %288 = arith.mulf %287, %285 : vector<2x32xf32>
    %289 = arith.mulf %280, %239 : vector<2x32xf32>
    %290 = arith.addf %288, %289 : vector<2x32xf32>
    %291 = vector.extract_strided_slice %33 {offsets = [10, 0], sizes = [2, 96], strides = [1, 1]} : vector<16x96xf32> to vector<2x96xf32>
    %cst_77 = arith.constant dense<0.000000e+00> : vector<2x96xf32>
    %292 = tpu.matmul %264, %1, %cst_77 {dimension_numbers = #tpu.dot_dimension_numbers<[1], [0], [0], [1], [0, 0, 1, 1], [], []>} : vector<2x32xf32>, vector<32x96xf32>, vector<2x96xf32> -> vector<2x96xf32>
    %293 = arith.addf %292, %5 : vector<2x96xf32>
    %294 = vector.extract_strided_slice %291 {offsets = [0, 0], sizes = [2, 64], strides = [1, 1]} : vector<2x96xf32> to vector<2x64xf32>
    %295 = vector.extract_strided_slice %293 {offsets = [0, 0], sizes = [2, 64], strides = [1, 1]} : vector<2x96xf32> to vector<2x64xf32>
    %296 = arith.addf %294, %295 : vector<2x64xf32>
    %cst_78 = arith.constant 5.000000e-01 : f32
    %297 = vector.broadcast %cst_78 : f32 to vector<2x64xf32>
    %298 = arith.mulf %297, %296 : vector<2x64xf32>
    %299 = math.tanh %298 : vector<2x64xf32>
    %cst_79 = arith.constant 5.000000e-01 : f32
    %300 = vector.broadcast %cst_79 : f32 to vector<2x64xf32>
    %301 = arith.mulf %300, %299 : vector<2x64xf32>
    %cst_80 = arith.constant 5.000000e-01 : f32
    %302 = vector.broadcast %cst_80 : f32 to vector<2x64xf32>
    %303 = arith.addf %301, %302 : vector<2x64xf32>
    %304 = vector.extract_strided_slice %303 {offsets = [0, 0], sizes = [2, 32], strides = [1, 1]} : vector<2x64xf32> to vector<2x32xf32>
    %305 = vector.extract_strided_slice %303 {offsets = [0, 32], sizes = [2, 32], strides = [1, 1]} : vector<2x64xf32> to vector<2x32xf32>
    %306 = vector.extract_strided_slice %291 {offsets = [0, 64], sizes = [2, 32], strides = [1, 1]} : vector<2x96xf32> to vector<2x32xf32>
    %307 = vector.extract_strided_slice %293 {offsets = [0, 64], sizes = [2, 32], strides = [1, 1]} : vector<2x96xf32> to vector<2x32xf32>
    %308 = arith.mulf %304, %307 : vector<2x32xf32>
    %309 = arith.addf %306, %308 : vector<2x32xf32>
    %310 = math.tanh %309 : vector<2x32xf32>
    %cst_81 = arith.constant 1.000000e+00 : f32
    %311 = vector.broadcast %cst_81 : f32 to vector<2x32xf32>
    %312 = arith.subf %311, %305 : vector<2x32xf32>
    %313 = arith.mulf %312, %310 : vector<2x32xf32>
    %314 = arith.mulf %305, %264 : vector<2x32xf32>
    %315 = arith.addf %313, %314 : vector<2x32xf32>
    %cst_82 = arith.constant dense<0.000000e+00> : vector<2x96xf32>
    %316 = tpu.matmul %315, %6, %cst_82 {dimension_numbers = #tpu.dot_dimension_numbers<[1], [0], [0], [1], [0, 0, 1, 1], [], []>} : vector<2x32xf32>, vector<32x96xf32>, vector<2x96xf32> -> vector<2x96xf32>
    %317 = arith.addf %316, %10 : vector<2x96xf32>
    %cst_83 = arith.constant dense<0.000000e+00> : vector<2x96xf32>
    %318 = tpu.matmul %290, %7, %cst_83 {dimension_numbers = #tpu.dot_dimension_numbers<[1], [0], [0], [1], [0, 0, 1, 1], [], []>} : vector<2x32xf32>, vector<32x96xf32>, vector<2x96xf32> -> vector<2x96xf32>
    %319 = arith.addf %318, %13 : vector<2x96xf32>
    %320 = vector.extract_strided_slice %317 {offsets = [0, 0], sizes = [2, 64], strides = [1, 1]} : vector<2x96xf32> to vector<2x64xf32>
    %321 = vector.extract_strided_slice %319 {offsets = [0, 0], sizes = [2, 64], strides = [1, 1]} : vector<2x96xf32> to vector<2x64xf32>
    %322 = arith.addf %320, %321 : vector<2x64xf32>
    %cst_84 = arith.constant 5.000000e-01 : f32
    %323 = vector.broadcast %cst_84 : f32 to vector<2x64xf32>
    %324 = arith.mulf %323, %322 : vector<2x64xf32>
    %325 = math.tanh %324 : vector<2x64xf32>
    %cst_85 = arith.constant 5.000000e-01 : f32
    %326 = vector.broadcast %cst_85 : f32 to vector<2x64xf32>
    %327 = arith.mulf %326, %325 : vector<2x64xf32>
    %cst_86 = arith.constant 5.000000e-01 : f32
    %328 = vector.broadcast %cst_86 : f32 to vector<2x64xf32>
    %329 = arith.addf %327, %328 : vector<2x64xf32>
    %330 = vector.extract_strided_slice %329 {offsets = [0, 0], sizes = [2, 32], strides = [1, 1]} : vector<2x64xf32> to vector<2x32xf32>
    %331 = vector.extract_strided_slice %329 {offsets = [0, 32], sizes = [2, 32], strides = [1, 1]} : vector<2x64xf32> to vector<2x32xf32>
    %332 = vector.extract_strided_slice %317 {offsets = [0, 64], sizes = [2, 32], strides = [1, 1]} : vector<2x96xf32> to vector<2x32xf32>
    %333 = vector.extract_strided_slice %319 {offsets = [0, 64], sizes = [2, 32], strides = [1, 1]} : vector<2x96xf32> to vector<2x32xf32>
    %334 = arith.mulf %330, %333 : vector<2x32xf32>
    %335 = arith.addf %332, %334 : vector<2x32xf32>
    %336 = math.tanh %335 : vector<2x32xf32>
    %cst_87 = arith.constant 1.000000e+00 : f32
    %337 = vector.broadcast %cst_87 : f32 to vector<2x32xf32>
    %338 = arith.subf %337, %331 : vector<2x32xf32>
    %339 = arith.mulf %338, %336 : vector<2x32xf32>
    %340 = arith.mulf %331, %290 : vector<2x32xf32>
    %341 = arith.addf %339, %340 : vector<2x32xf32>
    %342 = vector.extract_strided_slice %33 {offsets = [12, 0], sizes = [2, 96], strides = [1, 1]} : vector<16x96xf32> to vector<2x96xf32>
    %cst_88 = arith.constant dense<0.000000e+00> : vector<2x96xf32>
    %343 = tpu.matmul %315, %1, %cst_88 {dimension_numbers = #tpu.dot_dimension_numbers<[1], [0], [0], [1], [0, 0, 1, 1], [], []>} : vector<2x32xf32>, vector<32x96xf32>, vector<2x96xf32> -> vector<2x96xf32>
    %344 = arith.addf %343, %5 : vector<2x96xf32>
    %345 = vector.extract_strided_slice %342 {offsets = [0, 0], sizes = [2, 64], strides = [1, 1]} : vector<2x96xf32> to vector<2x64xf32>
    %346 = vector.extract_strided_slice %344 {offsets = [0, 0], sizes = [2, 64], strides = [1, 1]} : vector<2x96xf32> to vector<2x64xf32>
    %347 = arith.addf %345, %346 : vector<2x64xf32>
    %cst_89 = arith.constant 5.000000e-01 : f32
    %348 = vector.broadcast %cst_89 : f32 to vector<2x64xf32>
    %349 = arith.mulf %348, %347 : vector<2x64xf32>
    %350 = math.tanh %349 : vector<2x64xf32>
    %cst_90 = arith.constant 5.000000e-01 : f32
    %351 = vector.broadcast %cst_90 : f32 to vector<2x64xf32>
    %352 = arith.mulf %351, %350 : vector<2x64xf32>
    %cst_91 = arith.constant 5.000000e-01 : f32
    %353 = vector.broadcast %cst_91 : f32 to vector<2x64xf32>
    %354 = arith.addf %352, %353 : vector<2x64xf32>
    %355 = vector.extract_strided_slice %354 {offsets = [0, 0], sizes = [2, 32], strides = [1, 1]} : vector<2x64xf32> to vector<2x32xf32>
    %356 = vector.extract_strided_slice %354 {offsets = [0, 32], sizes = [2, 32], strides = [1, 1]} : vector<2x64xf32> to vector<2x32xf32>
    %357 = vector.extract_strided_slice %342 {offsets = [0, 64], sizes = [2, 32], strides = [1, 1]} : vector<2x96xf32> to vector<2x32xf32>
    %358 = vector.extract_strided_slice %344 {offsets = [0, 64], sizes = [2, 32], strides = [1, 1]} : vector<2x96xf32> to vector<2x32xf32>
    %359 = arith.mulf %355, %358 : vector<2x32xf32>
    %360 = arith.addf %357, %359 : vector<2x32xf32>
    %361 = math.tanh %360 : vector<2x32xf32>
    %cst_92 = arith.constant 1.000000e+00 : f32
    %362 = vector.broadcast %cst_92 : f32 to vector<2x32xf32>
    %363 = arith.subf %362, %356 : vector<2x32xf32>
    %364 = arith.mulf %363, %361 : vector<2x32xf32>
    %365 = arith.mulf %356, %315 : vector<2x32xf32>
    %366 = arith.addf %364, %365 : vector<2x32xf32>
    %cst_93 = arith.constant dense<0.000000e+00> : vector<2x96xf32>
    %367 = tpu.matmul %366, %6, %cst_93 {dimension_numbers = #tpu.dot_dimension_numbers<[1], [0], [0], [1], [0, 0, 1, 1], [], []>} : vector<2x32xf32>, vector<32x96xf32>, vector<2x96xf32> -> vector<2x96xf32>
    %368 = arith.addf %367, %10 : vector<2x96xf32>
    %cst_94 = arith.constant dense<0.000000e+00> : vector<2x96xf32>
    %369 = tpu.matmul %341, %7, %cst_94 {dimension_numbers = #tpu.dot_dimension_numbers<[1], [0], [0], [1], [0, 0, 1, 1], [], []>} : vector<2x32xf32>, vector<32x96xf32>, vector<2x96xf32> -> vector<2x96xf32>
    %370 = arith.addf %369, %13 : vector<2x96xf32>
    %371 = vector.extract_strided_slice %368 {offsets = [0, 0], sizes = [2, 64], strides = [1, 1]} : vector<2x96xf32> to vector<2x64xf32>
    %372 = vector.extract_strided_slice %370 {offsets = [0, 0], sizes = [2, 64], strides = [1, 1]} : vector<2x96xf32> to vector<2x64xf32>
    %373 = arith.addf %371, %372 : vector<2x64xf32>
    %cst_95 = arith.constant 5.000000e-01 : f32
    %374 = vector.broadcast %cst_95 : f32 to vector<2x64xf32>
    %375 = arith.mulf %374, %373 : vector<2x64xf32>
    %376 = math.tanh %375 : vector<2x64xf32>
    %cst_96 = arith.constant 5.000000e-01 : f32
    %377 = vector.broadcast %cst_96 : f32 to vector<2x64xf32>
    %378 = arith.mulf %377, %376 : vector<2x64xf32>
    %cst_97 = arith.constant 5.000000e-01 : f32
    %379 = vector.broadcast %cst_97 : f32 to vector<2x64xf32>
    %380 = arith.addf %378, %379 : vector<2x64xf32>
    %381 = vector.extract_strided_slice %380 {offsets = [0, 0], sizes = [2, 32], strides = [1, 1]} : vector<2x64xf32> to vector<2x32xf32>
    %382 = vector.extract_strided_slice %380 {offsets = [0, 32], sizes = [2, 32], strides = [1, 1]} : vector<2x64xf32> to vector<2x32xf32>
    %383 = vector.extract_strided_slice %368 {offsets = [0, 64], sizes = [2, 32], strides = [1, 1]} : vector<2x96xf32> to vector<2x32xf32>
    %384 = vector.extract_strided_slice %370 {offsets = [0, 64], sizes = [2, 32], strides = [1, 1]} : vector<2x96xf32> to vector<2x32xf32>
    %385 = arith.mulf %381, %384 : vector<2x32xf32>
    %386 = arith.addf %383, %385 : vector<2x32xf32>
    %387 = math.tanh %386 : vector<2x32xf32>
    %cst_98 = arith.constant 1.000000e+00 : f32
    %388 = vector.broadcast %cst_98 : f32 to vector<2x32xf32>
    %389 = arith.subf %388, %382 : vector<2x32xf32>
    %390 = arith.mulf %389, %387 : vector<2x32xf32>
    %391 = arith.mulf %382, %341 : vector<2x32xf32>
    %392 = arith.addf %390, %391 : vector<2x32xf32>
    %393 = vector.extract_strided_slice %33 {offsets = [14, 0], sizes = [2, 96], strides = [1, 1]} : vector<16x96xf32> to vector<2x96xf32>
    %cst_99 = arith.constant dense<0.000000e+00> : vector<2x96xf32>
    %394 = tpu.matmul %366, %1, %cst_99 {dimension_numbers = #tpu.dot_dimension_numbers<[1], [0], [0], [1], [0, 0, 1, 1], [], []>} : vector<2x32xf32>, vector<32x96xf32>, vector<2x96xf32> -> vector<2x96xf32>
    %395 = arith.addf %394, %5 : vector<2x96xf32>
    %396 = vector.extract_strided_slice %393 {offsets = [0, 0], sizes = [2, 64], strides = [1, 1]} : vector<2x96xf32> to vector<2x64xf32>
    %397 = vector.extract_strided_slice %395 {offsets = [0, 0], sizes = [2, 64], strides = [1, 1]} : vector<2x96xf32> to vector<2x64xf32>
    %398 = arith.addf %396, %397 : vector<2x64xf32>
    %cst_100 = arith.constant 5.000000e-01 : f32
    %399 = vector.broadcast %cst_100 : f32 to vector<2x64xf32>
    %400 = arith.mulf %399, %398 : vector<2x64xf32>
    %401 = math.tanh %400 : vector<2x64xf32>
    %cst_101 = arith.constant 5.000000e-01 : f32
    %402 = vector.broadcast %cst_101 : f32 to vector<2x64xf32>
    %403 = arith.mulf %402, %401 : vector<2x64xf32>
    %cst_102 = arith.constant 5.000000e-01 : f32
    %404 = vector.broadcast %cst_102 : f32 to vector<2x64xf32>
    %405 = arith.addf %403, %404 : vector<2x64xf32>
    %406 = vector.extract_strided_slice %405 {offsets = [0, 0], sizes = [2, 32], strides = [1, 1]} : vector<2x64xf32> to vector<2x32xf32>
    %407 = vector.extract_strided_slice %405 {offsets = [0, 32], sizes = [2, 32], strides = [1, 1]} : vector<2x64xf32> to vector<2x32xf32>
    %408 = vector.extract_strided_slice %393 {offsets = [0, 64], sizes = [2, 32], strides = [1, 1]} : vector<2x96xf32> to vector<2x32xf32>
    %409 = vector.extract_strided_slice %395 {offsets = [0, 64], sizes = [2, 32], strides = [1, 1]} : vector<2x96xf32> to vector<2x32xf32>
    %410 = arith.mulf %406, %409 : vector<2x32xf32>
    %411 = arith.addf %408, %410 : vector<2x32xf32>
    %412 = math.tanh %411 : vector<2x32xf32>
    %cst_103 = arith.constant 1.000000e+00 : f32
    %413 = vector.broadcast %cst_103 : f32 to vector<2x32xf32>
    %414 = arith.subf %413, %407 : vector<2x32xf32>
    %415 = arith.mulf %414, %412 : vector<2x32xf32>
    %416 = arith.mulf %407, %366 : vector<2x32xf32>
    %417 = arith.addf %415, %416 : vector<2x32xf32>
    %cst_104 = arith.constant dense<0.000000e+00> : vector<2x96xf32>
    %418 = tpu.matmul %417, %6, %cst_104 {dimension_numbers = #tpu.dot_dimension_numbers<[1], [0], [0], [1], [0, 0, 1, 1], [], []>} : vector<2x32xf32>, vector<32x96xf32>, vector<2x96xf32> -> vector<2x96xf32>
    %419 = arith.addf %418, %10 : vector<2x96xf32>
    %cst_105 = arith.constant dense<0.000000e+00> : vector<2x96xf32>
    %420 = tpu.matmul %392, %7, %cst_105 {dimension_numbers = #tpu.dot_dimension_numbers<[1], [0], [0], [1], [0, 0, 1, 1], [], []>} : vector<2x32xf32>, vector<32x96xf32>, vector<2x96xf32> -> vector<2x96xf32>
    %421 = arith.addf %420, %13 : vector<2x96xf32>
    %422 = vector.extract_strided_slice %419 {offsets = [0, 0], sizes = [2, 64], strides = [1, 1]} : vector<2x96xf32> to vector<2x64xf32>
    %423 = vector.extract_strided_slice %421 {offsets = [0, 0], sizes = [2, 64], strides = [1, 1]} : vector<2x96xf32> to vector<2x64xf32>
    %424 = arith.addf %422, %423 : vector<2x64xf32>
    %cst_106 = arith.constant 5.000000e-01 : f32
    %425 = vector.broadcast %cst_106 : f32 to vector<2x64xf32>
    %426 = arith.mulf %425, %424 : vector<2x64xf32>
    %427 = math.tanh %426 : vector<2x64xf32>
    %cst_107 = arith.constant 5.000000e-01 : f32
    %428 = vector.broadcast %cst_107 : f32 to vector<2x64xf32>
    %429 = arith.mulf %428, %427 : vector<2x64xf32>
    %cst_108 = arith.constant 5.000000e-01 : f32
    %430 = vector.broadcast %cst_108 : f32 to vector<2x64xf32>
    %431 = arith.addf %429, %430 : vector<2x64xf32>
    %432 = vector.extract_strided_slice %431 {offsets = [0, 0], sizes = [2, 32], strides = [1, 1]} : vector<2x64xf32> to vector<2x32xf32>
    %433 = vector.extract_strided_slice %431 {offsets = [0, 32], sizes = [2, 32], strides = [1, 1]} : vector<2x64xf32> to vector<2x32xf32>
    %434 = vector.extract_strided_slice %419 {offsets = [0, 64], sizes = [2, 32], strides = [1, 1]} : vector<2x96xf32> to vector<2x32xf32>
    %435 = vector.extract_strided_slice %421 {offsets = [0, 64], sizes = [2, 32], strides = [1, 1]} : vector<2x96xf32> to vector<2x32xf32>
    %436 = arith.mulf %432, %435 : vector<2x32xf32>
    %437 = arith.addf %434, %436 : vector<2x32xf32>
    %438 = math.tanh %437 : vector<2x32xf32>
    %cst_109 = arith.constant 1.000000e+00 : f32
    %439 = vector.broadcast %cst_109 : f32 to vector<2x32xf32>
    %440 = arith.subf %439, %433 : vector<2x32xf32>
    %441 = arith.mulf %440, %438 : vector<2x32xf32>
    %442 = arith.mulf %433, %392 : vector<2x32xf32>
    %443 = arith.addf %441, %442 : vector<2x32xf32>
    %cst_110 = arith.constant 0.000000e+00 : f32
    %444 = vector.broadcast %cst_110 : f32 to vector<48x32xf32>
    %c0_111 = arith.constant 0 : index
    %c0_112 = arith.constant 0 : index
    %445 = vector.load %arg4[%c0_111, %c0_112] : memref<48x32xf32, #tpu.memory_space<vmem>>, vector<48x32xf32>
    tpu.vector_store %arg4[%c0_111, %c0_112], %444 {strides = array<i32>} : memref<48x32xf32, #tpu.memory_space<vmem>>, vector<48x32xf32>,
    %c272 = arith.constant 272 : index
    %c0_113 = arith.constant 0 : index
    %446 = vector.load %arg2[%c272, %c0_113] : memref<352x96xf32, #tpu.memory_space<vmem>>, vector<32x96xf32>
    %c304 = arith.constant 304 : index
    %c0_114 = arith.constant 0 : index
    %447 = vector.load %arg2[%c304, %c0_114] : memref<352x96xf32, #tpu.memory_space<vmem>>, vector<1x96xf32>
    %448 = vector.shape_cast %447 : vector<1x96xf32> to vector<1x96xf32>
    %449 = vector.broadcast %448 : vector<1x96xf32> to vector<2x96xf32>
    %c0_115 = arith.constant 0 : index
    %c0_116 = arith.constant 0 : index
    %450 = vector.load %arg1[%c0_115, %c0_116] : memref<12x8xf32, #tpu.memory_space<vmem>>, vector<2x8xf32>
    %cst_117 = arith.constant dense<0.000000e+00> : vector<2x96xf32>
    %451 = tpu.matmul %450, %14, %cst_117 {dimension_numbers = #tpu.dot_dimension_numbers<[1], [0], [0], [1], [0, 0, 1, 1], [], []>} : vector<2x8xf32>, vector<8x96xf32>, vector<2x96xf32> -> vector<2x96xf32>
    %452 = vector.broadcast %16 : vector<1x96xf32> to vector<2x96xf32>
    %453 = arith.addf %451, %452 : vector<2x96xf32>
    %cst_118 = arith.constant dense<0.000000e+00> : vector<2x96xf32>
    %454 = tpu.matmul %417, %15, %cst_118 {dimension_numbers = #tpu.dot_dimension_numbers<[1], [0], [0], [1], [0, 0, 1, 1], [], []>} : vector<2x32xf32>, vector<32x96xf32>, vector<2x96xf32> -> vector<2x96xf32>
    %455 = arith.addf %454, %19 : vector<2x96xf32>
    %456 = vector.extract_strided_slice %453 {offsets = [0, 0], sizes = [2, 64], strides = [1, 1]} : vector<2x96xf32> to vector<2x64xf32>
    %457 = vector.extract_strided_slice %455 {offsets = [0, 0], sizes = [2, 64], strides = [1, 1]} : vector<2x96xf32> to vector<2x64xf32>
    %458 = arith.addf %456, %457 : vector<2x64xf32>
    %cst_119 = arith.constant 5.000000e-01 : f32
    %459 = vector.broadcast %cst_119 : f32 to vector<2x64xf32>
    %460 = arith.mulf %459, %458 : vector<2x64xf32>
    %461 = math.tanh %460 : vector<2x64xf32>
    %cst_120 = arith.constant 5.000000e-01 : f32
    %462 = vector.broadcast %cst_120 : f32 to vector<2x64xf32>
    %463 = arith.mulf %462, %461 : vector<2x64xf32>
    %cst_121 = arith.constant 5.000000e-01 : f32
    %464 = vector.broadcast %cst_121 : f32 to vector<2x64xf32>
    %465 = arith.addf %463, %464 : vector<2x64xf32>
    %466 = vector.extract_strided_slice %465 {offsets = [0, 0], sizes = [2, 32], strides = [1, 1]} : vector<2x64xf32> to vector<2x32xf32>
    %467 = vector.extract_strided_slice %465 {offsets = [0, 32], sizes = [2, 32], strides = [1, 1]} : vector<2x64xf32> to vector<2x32xf32>
    %468 = vector.extract_strided_slice %453 {offsets = [0, 64], sizes = [2, 32], strides = [1, 1]} : vector<2x96xf32> to vector<2x32xf32>
    %469 = vector.extract_strided_slice %455 {offsets = [0, 64], sizes = [2, 32], strides = [1, 1]} : vector<2x96xf32> to vector<2x32xf32>
    %470 = arith.mulf %466, %469 : vector<2x32xf32>
    %471 = arith.addf %468, %470 : vector<2x32xf32>
    %472 = math.tanh %471 : vector<2x32xf32>
    %cst_122 = arith.constant 1.000000e+00 : f32
    %473 = vector.broadcast %cst_122 : f32 to vector<2x32xf32>
    %474 = arith.subf %473, %467 : vector<2x32xf32>
    %475 = arith.mulf %474, %472 : vector<2x32xf32>
    %476 = arith.mulf %467, %417 : vector<2x32xf32>
    %477 = arith.addf %475, %476 : vector<2x32xf32>
    %cst_123 = arith.constant dense<0.000000e+00> : vector<2x96xf32>
    %478 = tpu.matmul %477, %20, %cst_123 {dimension_numbers = #tpu.dot_dimension_numbers<[1], [0], [0], [1], [0, 0, 1, 1], [], []>} : vector<2x32xf32>, vector<32x96xf32>, vector<2x96xf32> -> vector<2x96xf32>
    %479 = arith.addf %478, %24 : vector<2x96xf32>
    %cst_124 = arith.constant dense<0.000000e+00> : vector<2x96xf32>
    %480 = tpu.matmul %443, %21, %cst_124 {dimension_numbers = #tpu.dot_dimension_numbers<[1], [0], [0], [1], [0, 0, 1, 1], [], []>} : vector<2x32xf32>, vector<32x96xf32>, vector<2x96xf32> -> vector<2x96xf32>
    %481 = arith.addf %480, %27 : vector<2x96xf32>
    %482 = vector.extract_strided_slice %479 {offsets = [0, 0], sizes = [2, 64], strides = [1, 1]} : vector<2x96xf32> to vector<2x64xf32>
    %483 = vector.extract_strided_slice %481 {offsets = [0, 0], sizes = [2, 64], strides = [1, 1]} : vector<2x96xf32> to vector<2x64xf32>
    %484 = arith.addf %482, %483 : vector<2x64xf32>
    %cst_125 = arith.constant 5.000000e-01 : f32
    %485 = vector.broadcast %cst_125 : f32 to vector<2x64xf32>
    %486 = arith.mulf %485, %484 : vector<2x64xf32>
    %487 = math.tanh %486 : vector<2x64xf32>
    %cst_126 = arith.constant 5.000000e-01 : f32
    %488 = vector.broadcast %cst_126 : f32 to vector<2x64xf32>
    %489 = arith.mulf %488, %487 : vector<2x64xf32>
    %cst_127 = arith.constant 5.000000e-01 : f32
    %490 = vector.broadcast %cst_127 : f32 to vector<2x64xf32>
    %491 = arith.addf %489, %490 : vector<2x64xf32>
    %492 = vector.extract_strided_slice %491 {offsets = [0, 0], sizes = [2, 32], strides = [1, 1]} : vector<2x64xf32> to vector<2x32xf32>
    %493 = vector.extract_strided_slice %491 {offsets = [0, 32], sizes = [2, 32], strides = [1, 1]} : vector<2x64xf32> to vector<2x32xf32>
    %494 = vector.extract_strided_slice %479 {offsets = [0, 64], sizes = [2, 32], strides = [1, 1]} : vector<2x96xf32> to vector<2x32xf32>
    %495 = vector.extract_strided_slice %481 {offsets = [0, 64], sizes = [2, 32], strides = [1, 1]} : vector<2x96xf32> to vector<2x32xf32>
    %496 = arith.mulf %492, %495 : vector<2x32xf32>
    %497 = arith.addf %494, %496 : vector<2x32xf32>
    %498 = math.tanh %497 : vector<2x32xf32>
    %cst_128 = arith.constant 1.000000e+00 : f32
    %499 = vector.broadcast %cst_128 : f32 to vector<2x32xf32>
    %500 = arith.subf %499, %493 : vector<2x32xf32>
    %501 = arith.mulf %500, %498 : vector<2x32xf32>
    %502 = arith.mulf %493, %443 : vector<2x32xf32>
    %503 = arith.addf %501, %502 : vector<2x32xf32>
    %c0_129 = arith.constant 0 : index
    %c0_130 = arith.constant 0 : index
    %504 = vector.load %arg4[%c0_129, %c0_130] : memref<48x32xf32, #tpu.memory_space<vmem>>, vector<2x32xf32>
    tpu.vector_store %arg4[%c0_129, %c0_130], %503 {strides = array<i32>} : memref<48x32xf32, #tpu.memory_space<vmem>>, vector<2x32xf32>,
    %cst_131 = arith.constant dense<0.000000e+00> : vector<2x96xf32>
    %505 = tpu.matmul %503, %446, %cst_131 {dimension_numbers = #tpu.dot_dimension_numbers<[1], [0], [0], [1], [0, 0, 1, 1], [], []>} : vector<2x32xf32>, vector<32x96xf32>, vector<2x96xf32> -> vector<2x96xf32>
    %506 = arith.addf %505, %449 : vector<2x96xf32>
    %cst_132 = arith.constant dense<0.000000e+00> : vector<2x96xf32>
    %507 = tpu.matmul %477, %15, %cst_132 {dimension_numbers = #tpu.dot_dimension_numbers<[1], [0], [0], [1], [0, 0, 1, 1], [], []>} : vector<2x32xf32>, vector<32x96xf32>, vector<2x96xf32> -> vector<2x96xf32>
    %508 = arith.addf %507, %19 : vector<2x96xf32>
    %509 = vector.extract_strided_slice %506 {offsets = [0, 0], sizes = [2, 64], strides = [1, 1]} : vector<2x96xf32> to vector<2x64xf32>
    %510 = vector.extract_strided_slice %508 {offsets = [0, 0], sizes = [2, 64], strides = [1, 1]} : vector<2x96xf32> to vector<2x64xf32>
    %511 = arith.addf %509, %510 : vector<2x64xf32>
    %cst_133 = arith.constant 5.000000e-01 : f32
    %512 = vector.broadcast %cst_133 : f32 to vector<2x64xf32>
    %513 = arith.mulf %512, %511 : vector<2x64xf32>
    %514 = math.tanh %513 : vector<2x64xf32>
    %cst_134 = arith.constant 5.000000e-01 : f32
    %515 = vector.broadcast %cst_134 : f32 to vector<2x64xf32>
    %516 = arith.mulf %515, %514 : vector<2x64xf32>
    %cst_135 = arith.constant 5.000000e-01 : f32
    %517 = vector.broadcast %cst_135 : f32 to vector<2x64xf32>
    %518 = arith.addf %516, %517 : vector<2x64xf32>
    %519 = vector.extract_strided_slice %518 {offsets = [0, 0], sizes = [2, 32], strides = [1, 1]} : vector<2x64xf32> to vector<2x32xf32>
    %520 = vector.extract_strided_slice %518 {offsets = [0, 32], sizes = [2, 32], strides = [1, 1]} : vector<2x64xf32> to vector<2x32xf32>
    %521 = vector.extract_strided_slice %506 {offsets = [0, 64], sizes = [2, 32], strides = [1, 1]} : vector<2x96xf32> to vector<2x32xf32>
    %522 = vector.extract_strided_slice %508 {offsets = [0, 64], sizes = [2, 32], strides = [1, 1]} : vector<2x96xf32> to vector<2x32xf32>
    %523 = arith.mulf %519, %522 : vector<2x32xf32>
    %524 = arith.addf %521, %523 : vector<2x32xf32>
    %525 = math.tanh %524 : vector<2x32xf32>
    %cst_136 = arith.constant 1.000000e+00 : f32
    %526 = vector.broadcast %cst_136 : f32 to vector<2x32xf32>
    %527 = arith.subf %526, %520 : vector<2x32xf32>
    %528 = arith.mulf %527, %525 : vector<2x32xf32>
    %529 = arith.mulf %520, %477 : vector<2x32xf32>
    %530 = arith.addf %528, %529 : vector<2x32xf32>
    %cst_137 = arith.constant dense<0.000000e+00> : vector<2x96xf32>
    %531 = tpu.matmul %530, %20, %cst_137 {dimension_numbers = #tpu.dot_dimension_numbers<[1], [0], [0], [1], [0, 0, 1, 1], [], []>} : vector<2x32xf32>, vector<32x96xf32>, vector<2x96xf32> -> vector<2x96xf32>
    %532 = arith.addf %531, %24 : vector<2x96xf32>
    %cst_138 = arith.constant dense<0.000000e+00> : vector<2x96xf32>
    %533 = tpu.matmul %503, %21, %cst_138 {dimension_numbers = #tpu.dot_dimension_numbers<[1], [0], [0], [1], [0, 0, 1, 1], [], []>} : vector<2x32xf32>, vector<32x96xf32>, vector<2x96xf32> -> vector<2x96xf32>
    %534 = arith.addf %533, %27 : vector<2x96xf32>
    %535 = vector.extract_strided_slice %532 {offsets = [0, 0], sizes = [2, 64], strides = [1, 1]} : vector<2x96xf32> to vector<2x64xf32>
    %536 = vector.extract_strided_slice %534 {offsets = [0, 0], sizes = [2, 64], strides = [1, 1]} : vector<2x96xf32> to vector<2x64xf32>
    %537 = arith.addf %535, %536 : vector<2x64xf32>
    %cst_139 = arith.constant 5.000000e-01 : f32
    %538 = vector.broadcast %cst_139 : f32 to vector<2x64xf32>
    %539 = arith.mulf %538, %537 : vector<2x64xf32>
    %540 = math.tanh %539 : vector<2x64xf32>
    %cst_140 = arith.constant 5.000000e-01 : f32
    %541 = vector.broadcast %cst_140 : f32 to vector<2x64xf32>
    %542 = arith.mulf %541, %540 : vector<2x64xf32>
    %cst_141 = arith.constant 5.000000e-01 : f32
    %543 = vector.broadcast %cst_141 : f32 to vector<2x64xf32>
    %544 = arith.addf %542, %543 : vector<2x64xf32>
    %545 = vector.extract_strided_slice %544 {offsets = [0, 0], sizes = [2, 32], strides = [1, 1]} : vector<2x64xf32> to vector<2x32xf32>
    %546 = vector.extract_strided_slice %544 {offsets = [0, 32], sizes = [2, 32], strides = [1, 1]} : vector<2x64xf32> to vector<2x32xf32>
    %547 = vector.extract_strided_slice %532 {offsets = [0, 64], sizes = [2, 32], strides = [1, 1]} : vector<2x96xf32> to vector<2x32xf32>
    %548 = vector.extract_strided_slice %534 {offsets = [0, 64], sizes = [2, 32], strides = [1, 1]} : vector<2x96xf32> to vector<2x32xf32>
    %549 = arith.mulf %545, %548 : vector<2x32xf32>
    %550 = arith.addf %547, %549 : vector<2x32xf32>
    %551 = math.tanh %550 : vector<2x32xf32>
    %cst_142 = arith.constant 1.000000e+00 : f32
    %552 = vector.broadcast %cst_142 : f32 to vector<2x32xf32>
    %553 = arith.subf %552, %546 : vector<2x32xf32>
    %554 = arith.mulf %553, %551 : vector<2x32xf32>
    %555 = arith.mulf %546, %503 : vector<2x32xf32>
    %556 = arith.addf %554, %555 : vector<2x32xf32>
    %c8_143 = arith.constant 8 : index
    %c0_144 = arith.constant 0 : index
    %557 = vector.load %arg4[%c8_143, %c0_144] : memref<48x32xf32, #tpu.memory_space<vmem>>, vector<2x32xf32>
    tpu.vector_store %arg4[%c8_143, %c0_144], %556 {strides = array<i32>} : memref<48x32xf32, #tpu.memory_space<vmem>>, vector<2x32xf32>,
    %cst_145 = arith.constant dense<0.000000e+00> : vector<2x96xf32>
    %558 = tpu.matmul %556, %446, %cst_145 {dimension_numbers = #tpu.dot_dimension_numbers<[1], [0], [0], [1], [0, 0, 1, 1], [], []>} : vector<2x32xf32>, vector<32x96xf32>, vector<2x96xf32> -> vector<2x96xf32>
    %559 = arith.addf %558, %449 : vector<2x96xf32>
    %cst_146 = arith.constant dense<0.000000e+00> : vector<2x96xf32>
    %560 = tpu.matmul %530, %15, %cst_146 {dimension_numbers = #tpu.dot_dimension_numbers<[1], [0], [0], [1], [0, 0, 1, 1], [], []>} : vector<2x32xf32>, vector<32x96xf32>, vector<2x96xf32> -> vector<2x96xf32>
    %561 = arith.addf %560, %19 : vector<2x96xf32>
    %562 = vector.extract_strided_slice %559 {offsets = [0, 0], sizes = [2, 64], strides = [1, 1]} : vector<2x96xf32> to vector<2x64xf32>
    %563 = vector.extract_strided_slice %561 {offsets = [0, 0], sizes = [2, 64], strides = [1, 1]} : vector<2x96xf32> to vector<2x64xf32>
    %564 = arith.addf %562, %563 : vector<2x64xf32>
    %cst_147 = arith.constant 5.000000e-01 : f32
    %565 = vector.broadcast %cst_147 : f32 to vector<2x64xf32>
    %566 = arith.mulf %565, %564 : vector<2x64xf32>
    %567 = math.tanh %566 : vector<2x64xf32>
    %cst_148 = arith.constant 5.000000e-01 : f32
    %568 = vector.broadcast %cst_148 : f32 to vector<2x64xf32>
    %569 = arith.mulf %568, %567 : vector<2x64xf32>
    %cst_149 = arith.constant 5.000000e-01 : f32
    %570 = vector.broadcast %cst_149 : f32 to vector<2x64xf32>
    %571 = arith.addf %569, %570 : vector<2x64xf32>
    %572 = vector.extract_strided_slice %571 {offsets = [0, 0], sizes = [2, 32], strides = [1, 1]} : vector<2x64xf32> to vector<2x32xf32>
    %573 = vector.extract_strided_slice %571 {offsets = [0, 32], sizes = [2, 32], strides = [1, 1]} : vector<2x64xf32> to vector<2x32xf32>
    %574 = vector.extract_strided_slice %559 {offsets = [0, 64], sizes = [2, 32], strides = [1, 1]} : vector<2x96xf32> to vector<2x32xf32>
    %575 = vector.extract_strided_slice %561 {offsets = [0, 64], sizes = [2, 32], strides = [1, 1]} : vector<2x96xf32> to vector<2x32xf32>
    %576 = arith.mulf %572, %575 : vector<2x32xf32>
    %577 = arith.addf %574, %576 : vector<2x32xf32>
    %578 = math.tanh %577 : vector<2x32xf32>
    %cst_150 = arith.constant 1.000000e+00 : f32
    %579 = vector.broadcast %cst_150 : f32 to vector<2x32xf32>
    %580 = arith.subf %579, %573 : vector<2x32xf32>
    %581 = arith.mulf %580, %578 : vector<2x32xf32>
    %582 = arith.mulf %573, %530 : vector<2x32xf32>
    %583 = arith.addf %581, %582 : vector<2x32xf32>
    %cst_151 = arith.constant dense<0.000000e+00> : vector<2x96xf32>
    %584 = tpu.matmul %583, %20, %cst_151 {dimension_numbers = #tpu.dot_dimension_numbers<[1], [0], [0], [1], [0, 0, 1, 1], [], []>} : vector<2x32xf32>, vector<32x96xf32>, vector<2x96xf32> -> vector<2x96xf32>
    %585 = arith.addf %584, %24 : vector<2x96xf32>
    %cst_152 = arith.constant dense<0.000000e+00> : vector<2x96xf32>
    %586 = tpu.matmul %556, %21, %cst_152 {dimension_numbers = #tpu.dot_dimension_numbers<[1], [0], [0], [1], [0, 0, 1, 1], [], []>} : vector<2x32xf32>, vector<32x96xf32>, vector<2x96xf32> -> vector<2x96xf32>
    %587 = arith.addf %586, %27 : vector<2x96xf32>
    %588 = vector.extract_strided_slice %585 {offsets = [0, 0], sizes = [2, 64], strides = [1, 1]} : vector<2x96xf32> to vector<2x64xf32>
    %589 = vector.extract_strided_slice %587 {offsets = [0, 0], sizes = [2, 64], strides = [1, 1]} : vector<2x96xf32> to vector<2x64xf32>
    %590 = arith.addf %588, %589 : vector<2x64xf32>
    %cst_153 = arith.constant 5.000000e-01 : f32
    %591 = vector.broadcast %cst_153 : f32 to vector<2x64xf32>
    %592 = arith.mulf %591, %590 : vector<2x64xf32>
    %593 = math.tanh %592 : vector<2x64xf32>
    %cst_154 = arith.constant 5.000000e-01 : f32
    %594 = vector.broadcast %cst_154 : f32 to vector<2x64xf32>
    %595 = arith.mulf %594, %593 : vector<2x64xf32>
    %cst_155 = arith.constant 5.000000e-01 : f32
    %596 = vector.broadcast %cst_155 : f32 to vector<2x64xf32>
    %597 = arith.addf %595, %596 : vector<2x64xf32>
    %598 = vector.extract_strided_slice %597 {offsets = [0, 0], sizes = [2, 32], strides = [1, 1]} : vector<2x64xf32> to vector<2x32xf32>
    %599 = vector.extract_strided_slice %597 {offsets = [0, 32], sizes = [2, 32], strides = [1, 1]} : vector<2x64xf32> to vector<2x32xf32>
    %600 = vector.extract_strided_slice %585 {offsets = [0, 64], sizes = [2, 32], strides = [1, 1]} : vector<2x96xf32> to vector<2x32xf32>
    %601 = vector.extract_strided_slice %587 {offsets = [0, 64], sizes = [2, 32], strides = [1, 1]} : vector<2x96xf32> to vector<2x32xf32>
    %602 = arith.mulf %598, %601 : vector<2x32xf32>
    %603 = arith.addf %600, %602 : vector<2x32xf32>
    %604 = math.tanh %603 : vector<2x32xf32>
    %cst_156 = arith.constant 1.000000e+00 : f32
    %605 = vector.broadcast %cst_156 : f32 to vector<2x32xf32>
    %606 = arith.subf %605, %599 : vector<2x32xf32>
    %607 = arith.mulf %606, %604 : vector<2x32xf32>
    %608 = arith.mulf %599, %556 : vector<2x32xf32>
    %609 = arith.addf %607, %608 : vector<2x32xf32>
    %c16 = arith.constant 16 : index
    %c0_157 = arith.constant 0 : index
    %610 = vector.load %arg4[%c16, %c0_157] : memref<48x32xf32, #tpu.memory_space<vmem>>, vector<2x32xf32>
    tpu.vector_store %arg4[%c16, %c0_157], %609 {strides = array<i32>} : memref<48x32xf32, #tpu.memory_space<vmem>>, vector<2x32xf32>,
    %cst_158 = arith.constant dense<0.000000e+00> : vector<2x96xf32>
    %611 = tpu.matmul %609, %446, %cst_158 {dimension_numbers = #tpu.dot_dimension_numbers<[1], [0], [0], [1], [0, 0, 1, 1], [], []>} : vector<2x32xf32>, vector<32x96xf32>, vector<2x96xf32> -> vector<2x96xf32>
    %612 = arith.addf %611, %449 : vector<2x96xf32>
    %cst_159 = arith.constant dense<0.000000e+00> : vector<2x96xf32>
    %613 = tpu.matmul %583, %15, %cst_159 {dimension_numbers = #tpu.dot_dimension_numbers<[1], [0], [0], [1], [0, 0, 1, 1], [], []>} : vector<2x32xf32>, vector<32x96xf32>, vector<2x96xf32> -> vector<2x96xf32>
    %614 = arith.addf %613, %19 : vector<2x96xf32>
    %615 = vector.extract_strided_slice %612 {offsets = [0, 0], sizes = [2, 64], strides = [1, 1]} : vector<2x96xf32> to vector<2x64xf32>
    %616 = vector.extract_strided_slice %614 {offsets = [0, 0], sizes = [2, 64], strides = [1, 1]} : vector<2x96xf32> to vector<2x64xf32>
    %617 = arith.addf %615, %616 : vector<2x64xf32>
    %cst_160 = arith.constant 5.000000e-01 : f32
    %618 = vector.broadcast %cst_160 : f32 to vector<2x64xf32>
    %619 = arith.mulf %618, %617 : vector<2x64xf32>
    %620 = math.tanh %619 : vector<2x64xf32>
    %cst_161 = arith.constant 5.000000e-01 : f32
    %621 = vector.broadcast %cst_161 : f32 to vector<2x64xf32>
    %622 = arith.mulf %621, %620 : vector<2x64xf32>
    %cst_162 = arith.constant 5.000000e-01 : f32
    %623 = vector.broadcast %cst_162 : f32 to vector<2x64xf32>
    %624 = arith.addf %622, %623 : vector<2x64xf32>
    %625 = vector.extract_strided_slice %624 {offsets = [0, 0], sizes = [2, 32], strides = [1, 1]} : vector<2x64xf32> to vector<2x32xf32>
    %626 = vector.extract_strided_slice %624 {offsets = [0, 32], sizes = [2, 32], strides = [1, 1]} : vector<2x64xf32> to vector<2x32xf32>
    %627 = vector.extract_strided_slice %612 {offsets = [0, 64], sizes = [2, 32], strides = [1, 1]} : vector<2x96xf32> to vector<2x32xf32>
    %628 = vector.extract_strided_slice %614 {offsets = [0, 64], sizes = [2, 32], strides = [1, 1]} : vector<2x96xf32> to vector<2x32xf32>
    %629 = arith.mulf %625, %628 : vector<2x32xf32>
    %630 = arith.addf %627, %629 : vector<2x32xf32>
    %631 = math.tanh %630 : vector<2x32xf32>
    %cst_163 = arith.constant 1.000000e+00 : f32
    %632 = vector.broadcast %cst_163 : f32 to vector<2x32xf32>
    %633 = arith.subf %632, %626 : vector<2x32xf32>
    %634 = arith.mulf %633, %631 : vector<2x32xf32>
    %635 = arith.mulf %626, %583 : vector<2x32xf32>
    %636 = arith.addf %634, %635 : vector<2x32xf32>
    %cst_164 = arith.constant dense<0.000000e+00> : vector<2x96xf32>
    %637 = tpu.matmul %636, %20, %cst_164 {dimension_numbers = #tpu.dot_dimension_numbers<[1], [0], [0], [1], [0, 0, 1, 1], [], []>} : vector<2x32xf32>, vector<32x96xf32>, vector<2x96xf32> -> vector<2x96xf32>
    %638 = arith.addf %637, %24 : vector<2x96xf32>
    %cst_165 = arith.constant dense<0.000000e+00> : vector<2x96xf32>
    %639 = tpu.matmul %609, %21, %cst_165 {dimension_numbers = #tpu.dot_dimension_numbers<[1], [0], [0], [1], [0, 0, 1, 1], [], []>} : vector<2x32xf32>, vector<32x96xf32>, vector<2x96xf32> -> vector<2x96xf32>
    %640 = arith.addf %639, %27 : vector<2x96xf32>
    %641 = vector.extract_strided_slice %638 {offsets = [0, 0], sizes = [2, 64], strides = [1, 1]} : vector<2x96xf32> to vector<2x64xf32>
    %642 = vector.extract_strided_slice %640 {offsets = [0, 0], sizes = [2, 64], strides = [1, 1]} : vector<2x96xf32> to vector<2x64xf32>
    %643 = arith.addf %641, %642 : vector<2x64xf32>
    %cst_166 = arith.constant 5.000000e-01 : f32
    %644 = vector.broadcast %cst_166 : f32 to vector<2x64xf32>
    %645 = arith.mulf %644, %643 : vector<2x64xf32>
    %646 = math.tanh %645 : vector<2x64xf32>
    %cst_167 = arith.constant 5.000000e-01 : f32
    %647 = vector.broadcast %cst_167 : f32 to vector<2x64xf32>
    %648 = arith.mulf %647, %646 : vector<2x64xf32>
    %cst_168 = arith.constant 5.000000e-01 : f32
    %649 = vector.broadcast %cst_168 : f32 to vector<2x64xf32>
    %650 = arith.addf %648, %649 : vector<2x64xf32>
    %651 = vector.extract_strided_slice %650 {offsets = [0, 0], sizes = [2, 32], strides = [1, 1]} : vector<2x64xf32> to vector<2x32xf32>
    %652 = vector.extract_strided_slice %650 {offsets = [0, 32], sizes = [2, 32], strides = [1, 1]} : vector<2x64xf32> to vector<2x32xf32>
    %653 = vector.extract_strided_slice %638 {offsets = [0, 64], sizes = [2, 32], strides = [1, 1]} : vector<2x96xf32> to vector<2x32xf32>
    %654 = vector.extract_strided_slice %640 {offsets = [0, 64], sizes = [2, 32], strides = [1, 1]} : vector<2x96xf32> to vector<2x32xf32>
    %655 = arith.mulf %651, %654 : vector<2x32xf32>
    %656 = arith.addf %653, %655 : vector<2x32xf32>
    %657 = math.tanh %656 : vector<2x32xf32>
    %cst_169 = arith.constant 1.000000e+00 : f32
    %658 = vector.broadcast %cst_169 : f32 to vector<2x32xf32>
    %659 = arith.subf %658, %652 : vector<2x32xf32>
    %660 = arith.mulf %659, %657 : vector<2x32xf32>
    %661 = arith.mulf %652, %609 : vector<2x32xf32>
    %662 = arith.addf %660, %661 : vector<2x32xf32>
    %c24 = arith.constant 24 : index
    %c0_170 = arith.constant 0 : index
    %663 = vector.load %arg4[%c24, %c0_170] : memref<48x32xf32, #tpu.memory_space<vmem>>, vector<2x32xf32>
    tpu.vector_store %arg4[%c24, %c0_170], %662 {strides = array<i32>} : memref<48x32xf32, #tpu.memory_space<vmem>>, vector<2x32xf32>,
    %cst_171 = arith.constant dense<0.000000e+00> : vector<2x96xf32>
    %664 = tpu.matmul %662, %446, %cst_171 {dimension_numbers = #tpu.dot_dimension_numbers<[1], [0], [0], [1], [0, 0, 1, 1], [], []>} : vector<2x32xf32>, vector<32x96xf32>, vector<2x96xf32> -> vector<2x96xf32>
    %665 = arith.addf %664, %449 : vector<2x96xf32>
    %cst_172 = arith.constant dense<0.000000e+00> : vector<2x96xf32>
    %666 = tpu.matmul %636, %15, %cst_172 {dimension_numbers = #tpu.dot_dimension_numbers<[1], [0], [0], [1], [0, 0, 1, 1], [], []>} : vector<2x32xf32>, vector<32x96xf32>, vector<2x96xf32> -> vector<2x96xf32>
    %667 = arith.addf %666, %19 : vector<2x96xf32>
    %668 = vector.extract_strided_slice %665 {offsets = [0, 0], sizes = [2, 64], strides = [1, 1]} : vector<2x96xf32> to vector<2x64xf32>
    %669 = vector.extract_strided_slice %667 {offsets = [0, 0], sizes = [2, 64], strides = [1, 1]} : vector<2x96xf32> to vector<2x64xf32>
    %670 = arith.addf %668, %669 : vector<2x64xf32>
    %cst_173 = arith.constant 5.000000e-01 : f32
    %671 = vector.broadcast %cst_173 : f32 to vector<2x64xf32>
    %672 = arith.mulf %671, %670 : vector<2x64xf32>
    %673 = math.tanh %672 : vector<2x64xf32>
    %cst_174 = arith.constant 5.000000e-01 : f32
    %674 = vector.broadcast %cst_174 : f32 to vector<2x64xf32>
    %675 = arith.mulf %674, %673 : vector<2x64xf32>
    %cst_175 = arith.constant 5.000000e-01 : f32
    %676 = vector.broadcast %cst_175 : f32 to vector<2x64xf32>
    %677 = arith.addf %675, %676 : vector<2x64xf32>
    %678 = vector.extract_strided_slice %677 {offsets = [0, 0], sizes = [2, 32], strides = [1, 1]} : vector<2x64xf32> to vector<2x32xf32>
    %679 = vector.extract_strided_slice %677 {offsets = [0, 32], sizes = [2, 32], strides = [1, 1]} : vector<2x64xf32> to vector<2x32xf32>
    %680 = vector.extract_strided_slice %665 {offsets = [0, 64], sizes = [2, 32], strides = [1, 1]} : vector<2x96xf32> to vector<2x32xf32>
    %681 = vector.extract_strided_slice %667 {offsets = [0, 64], sizes = [2, 32], strides = [1, 1]} : vector<2x96xf32> to vector<2x32xf32>
    %682 = arith.mulf %678, %681 : vector<2x32xf32>
    %683 = arith.addf %680, %682 : vector<2x32xf32>
    %684 = math.tanh %683 : vector<2x32xf32>
    %cst_176 = arith.constant 1.000000e+00 : f32
    %685 = vector.broadcast %cst_176 : f32 to vector<2x32xf32>
    %686 = arith.subf %685, %679 : vector<2x32xf32>
    %687 = arith.mulf %686, %684 : vector<2x32xf32>
    %688 = arith.mulf %679, %636 : vector<2x32xf32>
    %689 = arith.addf %687, %688 : vector<2x32xf32>
    %cst_177 = arith.constant dense<0.000000e+00> : vector<2x96xf32>
    %690 = tpu.matmul %689, %20, %cst_177 {dimension_numbers = #tpu.dot_dimension_numbers<[1], [0], [0], [1], [0, 0, 1, 1], [], []>} : vector<2x32xf32>, vector<32x96xf32>, vector<2x96xf32> -> vector<2x96xf32>
    %691 = arith.addf %690, %24 : vector<2x96xf32>
    %cst_178 = arith.constant dense<0.000000e+00> : vector<2x96xf32>
    %692 = tpu.matmul %662, %21, %cst_178 {dimension_numbers = #tpu.dot_dimension_numbers<[1], [0], [0], [1], [0, 0, 1, 1], [], []>} : vector<2x32xf32>, vector<32x96xf32>, vector<2x96xf32> -> vector<2x96xf32>
    %693 = arith.addf %692, %27 : vector<2x96xf32>
    %694 = vector.extract_strided_slice %691 {offsets = [0, 0], sizes = [2, 64], strides = [1, 1]} : vector<2x96xf32> to vector<2x64xf32>
    %695 = vector.extract_strided_slice %693 {offsets = [0, 0], sizes = [2, 64], strides = [1, 1]} : vector<2x96xf32> to vector<2x64xf32>
    %696 = arith.addf %694, %695 : vector<2x64xf32>
    %cst_179 = arith.constant 5.000000e-01 : f32
    %697 = vector.broadcast %cst_179 : f32 to vector<2x64xf32>
    %698 = arith.mulf %697, %696 : vector<2x64xf32>
    %699 = math.tanh %698 : vector<2x64xf32>
    %cst_180 = arith.constant 5.000000e-01 : f32
    %700 = vector.broadcast %cst_180 : f32 to vector<2x64xf32>
    %701 = arith.mulf %700, %699 : vector<2x64xf32>
    %cst_181 = arith.constant 5.000000e-01 : f32
    %702 = vector.broadcast %cst_181 : f32 to vector<2x64xf32>
    %703 = arith.addf %701, %702 : vector<2x64xf32>
    %704 = vector.extract_strided_slice %703 {offsets = [0, 0], sizes = [2, 32], strides = [1, 1]} : vector<2x64xf32> to vector<2x32xf32>
    %705 = vector.extract_strided_slice %703 {offsets = [0, 32], sizes = [2, 32], strides = [1, 1]} : vector<2x64xf32> to vector<2x32xf32>
    %706 = vector.extract_strided_slice %691 {offsets = [0, 64], sizes = [2, 32], strides = [1, 1]} : vector<2x96xf32> to vector<2x32xf32>
    %707 = vector.extract_strided_slice %693 {offsets = [0, 64], sizes = [2, 32], strides = [1, 1]} : vector<2x96xf32> to vector<2x32xf32>
    %708 = arith.mulf %704, %707 : vector<2x32xf32>
    %709 = arith.addf %706, %708 : vector<2x32xf32>
    %710 = math.tanh %709 : vector<2x32xf32>
    %cst_182 = arith.constant 1.000000e+00 : f32
    %711 = vector.broadcast %cst_182 : f32 to vector<2x32xf32>
    %712 = arith.subf %711, %705 : vector<2x32xf32>
    %713 = arith.mulf %712, %710 : vector<2x32xf32>
    %714 = arith.mulf %705, %662 : vector<2x32xf32>
    %715 = arith.addf %713, %714 : vector<2x32xf32>
    %c32 = arith.constant 32 : index
    %c0_183 = arith.constant 0 : index
    %716 = vector.load %arg4[%c32, %c0_183] : memref<48x32xf32, #tpu.memory_space<vmem>>, vector<2x32xf32>
    tpu.vector_store %arg4[%c32, %c0_183], %715 {strides = array<i32>} : memref<48x32xf32, #tpu.memory_space<vmem>>, vector<2x32xf32>,
    %cst_184 = arith.constant dense<0.000000e+00> : vector<2x96xf32>
    %717 = tpu.matmul %715, %446, %cst_184 {dimension_numbers = #tpu.dot_dimension_numbers<[1], [0], [0], [1], [0, 0, 1, 1], [], []>} : vector<2x32xf32>, vector<32x96xf32>, vector<2x96xf32> -> vector<2x96xf32>
    %718 = arith.addf %717, %449 : vector<2x96xf32>
    %cst_185 = arith.constant dense<0.000000e+00> : vector<2x96xf32>
    %719 = tpu.matmul %689, %15, %cst_185 {dimension_numbers = #tpu.dot_dimension_numbers<[1], [0], [0], [1], [0, 0, 1, 1], [], []>} : vector<2x32xf32>, vector<32x96xf32>, vector<2x96xf32> -> vector<2x96xf32>
    %720 = arith.addf %719, %19 : vector<2x96xf32>
    %721 = vector.extract_strided_slice %718 {offsets = [0, 0], sizes = [2, 64], strides = [1, 1]} : vector<2x96xf32> to vector<2x64xf32>
    %722 = vector.extract_strided_slice %720 {offsets = [0, 0], sizes = [2, 64], strides = [1, 1]} : vector<2x96xf32> to vector<2x64xf32>
    %723 = arith.addf %721, %722 : vector<2x64xf32>
    %cst_186 = arith.constant 5.000000e-01 : f32
    %724 = vector.broadcast %cst_186 : f32 to vector<2x64xf32>
    %725 = arith.mulf %724, %723 : vector<2x64xf32>
    %726 = math.tanh %725 : vector<2x64xf32>
    %cst_187 = arith.constant 5.000000e-01 : f32
    %727 = vector.broadcast %cst_187 : f32 to vector<2x64xf32>
    %728 = arith.mulf %727, %726 : vector<2x64xf32>
    %cst_188 = arith.constant 5.000000e-01 : f32
    %729 = vector.broadcast %cst_188 : f32 to vector<2x64xf32>
    %730 = arith.addf %728, %729 : vector<2x64xf32>
    %731 = vector.extract_strided_slice %730 {offsets = [0, 0], sizes = [2, 32], strides = [1, 1]} : vector<2x64xf32> to vector<2x32xf32>
    %732 = vector.extract_strided_slice %730 {offsets = [0, 32], sizes = [2, 32], strides = [1, 1]} : vector<2x64xf32> to vector<2x32xf32>
    %733 = vector.extract_strided_slice %718 {offsets = [0, 64], sizes = [2, 32], strides = [1, 1]} : vector<2x96xf32> to vector<2x32xf32>
    %734 = vector.extract_strided_slice %720 {offsets = [0, 64], sizes = [2, 32], strides = [1, 1]} : vector<2x96xf32> to vector<2x32xf32>
    %735 = arith.mulf %731, %734 : vector<2x32xf32>
    %736 = arith.addf %733, %735 : vector<2x32xf32>
    %737 = math.tanh %736 : vector<2x32xf32>
    %cst_189 = arith.constant 1.000000e+00 : f32
    %738 = vector.broadcast %cst_189 : f32 to vector<2x32xf32>
    %739 = arith.subf %738, %732 : vector<2x32xf32>
    %740 = arith.mulf %739, %737 : vector<2x32xf32>
    %741 = arith.mulf %732, %689 : vector<2x32xf32>
    %742 = arith.addf %740, %741 : vector<2x32xf32>
    %cst_190 = arith.constant dense<0.000000e+00> : vector<2x96xf32>
    %743 = tpu.matmul %742, %20, %cst_190 {dimension_numbers = #tpu.dot_dimension_numbers<[1], [0], [0], [1], [0, 0, 1, 1], [], []>} : vector<2x32xf32>, vector<32x96xf32>, vector<2x96xf32> -> vector<2x96xf32>
    %744 = arith.addf %743, %24 : vector<2x96xf32>
    %cst_191 = arith.constant dense<0.000000e+00> : vector<2x96xf32>
    %745 = tpu.matmul %715, %21, %cst_191 {dimension_numbers = #tpu.dot_dimension_numbers<[1], [0], [0], [1], [0, 0, 1, 1], [], []>} : vector<2x32xf32>, vector<32x96xf32>, vector<2x96xf32> -> vector<2x96xf32>
    %746 = arith.addf %745, %27 : vector<2x96xf32>
    %747 = vector.extract_strided_slice %744 {offsets = [0, 0], sizes = [2, 64], strides = [1, 1]} : vector<2x96xf32> to vector<2x64xf32>
    %748 = vector.extract_strided_slice %746 {offsets = [0, 0], sizes = [2, 64], strides = [1, 1]} : vector<2x96xf32> to vector<2x64xf32>
    %749 = arith.addf %747, %748 : vector<2x64xf32>
    %cst_192 = arith.constant 5.000000e-01 : f32
    %750 = vector.broadcast %cst_192 : f32 to vector<2x64xf32>
    %751 = arith.mulf %750, %749 : vector<2x64xf32>
    %752 = math.tanh %751 : vector<2x64xf32>
    %cst_193 = arith.constant 5.000000e-01 : f32
    %753 = vector.broadcast %cst_193 : f32 to vector<2x64xf32>
    %754 = arith.mulf %753, %752 : vector<2x64xf32>
    %cst_194 = arith.constant 5.000000e-01 : f32
    %755 = vector.broadcast %cst_194 : f32 to vector<2x64xf32>
    %756 = arith.addf %754, %755 : vector<2x64xf32>
    %757 = vector.extract_strided_slice %756 {offsets = [0, 0], sizes = [2, 32], strides = [1, 1]} : vector<2x64xf32> to vector<2x32xf32>
    %758 = vector.extract_strided_slice %756 {offsets = [0, 32], sizes = [2, 32], strides = [1, 1]} : vector<2x64xf32> to vector<2x32xf32>
    %759 = vector.extract_strided_slice %744 {offsets = [0, 64], sizes = [2, 32], strides = [1, 1]} : vector<2x96xf32> to vector<2x32xf32>
    %760 = vector.extract_strided_slice %746 {offsets = [0, 64], sizes = [2, 32], strides = [1, 1]} : vector<2x96xf32> to vector<2x32xf32>
    %761 = arith.mulf %757, %760 : vector<2x32xf32>
    %762 = arith.addf %759, %761 : vector<2x32xf32>
    %763 = math.tanh %762 : vector<2x32xf32>
    %cst_195 = arith.constant 1.000000e+00 : f32
    %764 = vector.broadcast %cst_195 : f32 to vector<2x32xf32>
    %765 = arith.subf %764, %758 : vector<2x32xf32>
    %766 = arith.mulf %765, %763 : vector<2x32xf32>
    %767 = arith.mulf %758, %715 : vector<2x32xf32>
    %768 = arith.addf %766, %767 : vector<2x32xf32>
    %c40_196 = arith.constant 40 : index
    %c0_197 = arith.constant 0 : index
    %769 = vector.load %arg4[%c40_196, %c0_197] : memref<48x32xf32, #tpu.memory_space<vmem>>, vector<2x32xf32>
    tpu.vector_store %arg4[%c40_196, %c0_197], %768 {strides = array<i32>} : memref<48x32xf32, #tpu.memory_space<vmem>>, vector<2x32xf32>,
    %c0_198 = arith.constant 0 : index
    %c0_199 = arith.constant 0 : index
    %770 = vector.load %arg4[%c0_198, %c0_199] : memref<48x32xf32, #tpu.memory_space<vmem>>, vector<48x32xf32>
    %cst_200 = arith.constant dense<0.000000e+00> : vector<48x96xf32>
    %771 = tpu.matmul %770, %28, %cst_200 {dimension_numbers = #tpu.dot_dimension_numbers<[1], [0], [0], [1], [0, 0, 1, 1], [], []>} : vector<48x32xf32>, vector<32x96xf32>, vector<48x96xf32> -> vector<48x96xf32>
    %772 = vector.broadcast %29 : vector<1x96xf32> to vector<48x96xf32>
    %773 = arith.addf %771, %772 : vector<48x96xf32>
    %774 = vector.extract_strided_slice %773 {offsets = [0, 0], sizes = [48, 4], strides = [1, 1]} : vector<48x96xf32> to vector<48x4xf32>
    %c0_201 = arith.constant 0 : index
    %c0_202 = arith.constant 0 : index
    %775 = vector.load %arg3[%c0_201, %c0_202] : memref<48x4xf32, #tpu.memory_space<vmem>>, vector<48x4xf32>
    tpu.vector_store %arg3[%c0_201, %c0_202], %774 {strides = array<i32>} : memref<48x4xf32, #tpu.memory_space<vmem>>, vector<48x4xf32>,
    return
  }
}

</mosaic_0001>

<bundles_post_ra>
// kernel: tpu_custom_call.1
= control target key start
LH: loop header
LB: loop body
LE: loop exit
PB: predicated region body
PF: predicated region fallthrough
CT: control target
= control target key end

     0   :  { %vm83_vm0 = vcmask 64512   ;;  %v5809_v0 = vmov 0.0|0.0   ;;  %vm5810_vm1 = vmmov 0   ;;  %v5811_v4 = vmov 0.0   ;;  %s5812_s29 = smov 64   ;;  %s5813_s19 = smov 96   ;;  %s6695_s2 = inlined_call_operand.vmem [shape: f32[352,96], index: 2, kind: input, shape index: {}]   ;;  %s6696_s0 = inlined_call_operand.vmem [shape: f32[16,8], index: 0, kind: input, shape index: {}]   ;;  %s6697_s1 = inlined_call_operand.vmem [shape: f32[12,8], index: 1, kind: input, shape index: {}]   ;;  %s6698_s3 = inlined_call_operand.vmem [shape: f32[48,4], index: 3, kind: output, shape index: {}]  }
   0x1   :  { %5399 = vmatprep.subr.bf16.mxu1 %v5809_v0  ;;  %v15_v1 = vld [vmem:[%s6695_s2 + $0x8] sm:$0xff]  ;;  %v16_v2 = vld [vmem:[%s6695_s2 + $0x10] sm:$0xff]  ;;  %v14_v3 = vld [vmem:[%s6695_s2] sm:$0xff]  ;;  %4868 = vmatprep.mubr.msk.f32.mxu1 %vm5810_vm1, %v5811_v4  ;;  %vm165_vm2 = vcmask 261120   ;;  %vm2705_vm3 = vcmask 254976   ;;  %vm4530_vm4 = vcmask 31744  }
   0x2   :  { %v5846_v5 = vpack.c.bf16 %v16_v2, %v15_v1  ;;  %4855 = vmatprep.subr.mxu0 %v14_v3  ;;  %v17_v6 = vld [vmem:[%s6695_s2 + $0x18] sm:$0xff]  ;;  %v18_v7 = vld [vmem:[%s6695_s2 + $0x20] sm:$0xff]  ;;  %v78_v9 = vld [vmem:[%s6696_s0 + $0x8] sm:$0xff]  ;;  %2339 = vst.msk [vmem:[#allocation2] sm:$0xff] %vm165_vm2, %v5811_v4 }
   0x3   :  { %v77_v8 = vld [vmem:[%s6696_s0] sm:$0xff]  ;;  %4856 = vmatpush3.msra.mxu0 %v14_v3  ;;  %v5862_v10 = vpack.c.bf16 %v18_v7, %v17_v6  ;;  %v4547_v12 = vld [vmem:[%s6695_s2 + $0x28] ss:$0 sm:$0xff]  ;;  %v5882_v15 = vld [vmem:[%s6695_s2 + $0x30] ss:$0 sm:$0xff]  ;;  %2340 = vst.msk [vmem:[#allocation2 + $0x8] sm:$0xff] %vm165_vm2, %v5811_v4 }
   0x4   :  { %4857 = vmatprep.mubr.msk.f32.mxu0 %vm83_vm0, %v77_v8  ;;  %5401 = vmatpush3.bf16.msra.mxu1 %v5846_v5  ;;  %v29_v29 = vld [vmem:[%s6695_s2 + $0x58] sm:$0xff]  ;;  %v30_v30 = vld [vmem:[%s6695_s2 + $0x60] sm:$0xff]  ;;  %v31_v31 = vld [vmem:[%s6695_s2 + $0x68] sm:$0xff]  ;;  %2341 = vst.msk [vmem:[#allocation2 + $0x10] sm:$0xff] %vm165_vm2, %v5811_v4 }
   0x5   :  { %4858 = vmatmul.mubr.msk.f32.vlgmr.msra.gmra.mrb[0].mxu0 %vm83_vm0, %v78_v9  ;;  %5402 = vmatprep.subr.bf16.mxu1 %v5809_v0  ;;  %v5900_v32 = vpack.c.bf16 %v30_v30, %v29_v29  ;;  %v32_v33 = vld [vmem:[%s6695_s2 + $0x70] sm:$0xff]  ;;  %v25_v34 = vld [vmem:[%s6695_s2 + $0x38] sm:$0xff]  ;;  %v26_v35 = vld [vmem:[%s6695_s2 + $0x40] sm:$0xff]  ;;  %2342 = vst.msk [vmem:[#allocation2 + $0x18] sm:$0xff] %vm165_vm2, %v5811_v4 }
   0x6   :  { %5405 = vmatprep.subr.bf16.mxu0 %v5809_v0  ;;  %4879 = vmatprep.mubr.msk.f32.mxu0 %vm5810_vm1, %v5811_v4  ;;  %v5911_v36 = vpack.c.bf16 %v26_v35, %v25_v34  ;;  %v27_v37 = vld [vmem:[%s6695_s2 + $0x48] sm:$0xff]  ;;  %v28_v38 = vld [vmem:[%s6695_s2 + $0x50] sm:$0xff]  ;;  %v5920_v39 = vpack.c.bf16 %v32_v33, %v31_v31  ;;  %2343 = vst.msk [vmem:[#allocation2 + $0x20] sm:$0xff] %vm165_vm2, %v5811_v4  ;;  %2344 = vst.msk [vmem:[#allocation2 + $0x28] sm:$0xff] %vm165_vm2, %v5811_v4 }
   0x7   :  { %v5924_v40 = vpack.c.bf16 %v28_v38, %v27_v37  ;;  %v5958_v47 = vld [vmem:[%s6695_s2 + $0x80] ss:$0 sm:$0xff]  ;;  %v5979_v52 = vld [vmem:[%s6695_s2 + $0x78] ss:$0 sm:$0xff] }
   0x8   :  { %5404 = vmatpush3.bf16.msra.mxu1 %v5862_v10  ;;  %5407 = vmatpush3.bf16.msra.mxu0 %v5911_v36 }
   0x9   :  { %5411 = vmatprep.subr.bf16.mxu1 %v5809_v0  ;;  %5408 = vmatprep.subr.bf16.mxu0 %v5809_v0 }
   0xb   :  { %4869 = vmatmul.mubr.f32.vlgmr.msra.gmra.mrb[0].mxu1 %v5811_v4 }
   0xc   :  { %4890 = vmatprep.mubr.msk.f32.mxu1 %vm5810_vm1, %v5811_v4  ;;  %5413 = vmatpush3.bf16.msra.mxu1 %v5900_v32 }
   0xd   :  { %5414 = vmatprep.subr.bf16.mxu1 %v5809_v0  ;;  %5410 = vmatpush3.bf16.msra.mxu0 %v5924_v40 }
   0xe   :  { %5417 = vmatprep.subr.bf16.mxu0 %v5809_v0 }
  0x10   :  { %5416 = vmatpush3.bf16.msra.mxu1 %v5920_v39 }
  0x11   :  { %5423 = vmatprep.subr.bf16.mxu1 %v5809_v0 }
  0x13   :  { %4891 = vmatmul.mubr.f32.vlgmr.msra.gmra.mrb[2].mxu1 %v5811_v4 }
  0x14   :  { %5425 = vmatpush3.bf16.msra.mxu1 %v5911_v36  ;;  %4912 = vmatprep.mubr.msk.f32.mxu1 %vm5810_vm1, %v5811_v4 }
  0x15   :  { %5426 = vmatprep.subr.bf16.mxu1 %v5809_v0 }
  0x18   :  { %5428 = vmatpush3.bf16.msra.mxu1 %v5924_v40 }
  0x19   :  { %5435 = vmatprep.subr.bf16.mxu1 %v5809_v0 }
  0xd8   :  { %v4859_v11 = vpop.f32.mrb[0].mxu0 }
  0xd9   :  { %v5877_v13 = vadd.f32 %v4859_v11, %v4547_v12  ;;  %v156_v14 = vpop.f32.mrb[1].mxu0 }
  0xda   :  { %v5886_v19 = vadd.f32 %v4547_v12, %v156_v14 }
  0xde   :  { %v235_v16 = vpop.f32.mrb[0].mxu1 }
  0xdf   :  { %v236_v17 = vadd.f32 %v5882_v15, %v235_v16  ;;  %v4870_v18 = vpop.f32.mrb[1].mxu1 }
  0xe1   :  { %245 = vrot.lane.b32.xlu0 %v236_v17, %s5812_s29  ;;  %v239_v20 = vadd.f32 %v236_v17, %v5886_v19 }
  0xe3   :  { %v240_v21 = vmul.f32 0.5, %v239_v20 }
  0xe5   :  { %5694 = vtanh.f32 %v240_v21 }
  0xe6   :  { %v404_v48 = vpop.f32.mrb[2].mxu1 }
  0xe7   :  { %v405_v49 = vadd.f32 %v5958_v47, %v404_v48  ;;  %v4892_v50 = vpop.f32.mrb[3].mxu1 }
  0xef   :  { %v5695_v22 = vpop.eup %5694 }
  0xf0   :  { %v242_v23 = vmul.f32 0.5, %v5695_v22 }
  0xf2   :  { %v243_v24 = vadd.f32 0.5, %v242_v23 }
  0xf4   :  { %v255_v42 = vsub.f32 1.0, %v243_v24  ;;  %v261_v44 = vmul.f32 0.0, %v243_v24 }
 0x153   :  { %v246_v25 = vpop.permute.xlu0 %245 }
 0x154   :  { %v248_v26 = vmul.f32 %v246_v25, %v243_v24 }
 0x156   :  { %250 = vrot.lane.b32.xlu0 %v248_v26, %s5812_s29 }
 0x1c8   :  { %v251_v27 = vpop.permute.xlu0 %250 }
 0x1c9   :  { %v253_v28 = vadd.f32 %v251_v27, %v5886_v19 }
 0x1cb   :  { %5696 = vtanh.f32 %v253_v28 }
 0x1d5   :  { %v5697_v41 = vpop.eup %5696 }
 0x1d6   :  { %257 = vrot.lane.b32.xlu1 %v5697_v41, %s5813_s19 }
 0x248   :  { %v258_v43 = vpop.permute.xlu1 %257 }
 0x249   :  { %v260_v45 = vmul.f32 %v258_v43, %v255_v42 }
 0x24b   :  { %v5951_v46 = vadd.f32 %v261_v44, %v260_v45 }
 0x24d   :  { %264 = vrot.lane.b32.xlu1 %v5951_v46, %s5813_s19  ;;  %v526_v28 = vrot.slane %v5951_v46, 6 }
 0x251   :  { %414 = vrot.lane.b32.xlu1 %v405_v49, %s5812_s29 }
 0x2bf   :  { %v265_v51 = vpop.permute.xlu1 %264 }
 0x2c0   :  { %4880 = vmatmul.mubr.msk.f32.vlgmr.msra.gmra.mrb[2].mxu0 %vm165_vm2, %v265_v51 }
 0x2c1   :  { %5419 = vmatpush3.bf16.msra.mxu0 %v5846_v5  ;;  %4901 = vmatprep.mubr.msk.f32.mxu0 %vm5810_vm1, %v5811_v4 }
 0x2c2   :  { %5420 = vmatprep.subr.bf16.mxu0 %v5809_v0 }
 0x2c3   :  { %v415_v1 = vpop.permute.xlu1 %414 }
 0x2c5   :  { %5422 = vmatpush3.bf16.msra.mxu0 %v5862_v10 }
 0x2c6   :  { %5429 = vmatprep.subr.bf16.mxu0 %v5809_v0 }
 0x2c8   :  { %4902 = vmatmul.mubr.msk.f32.vlgmr.msra.gmra.mrb[4].mxu0 %vm165_vm2, %v265_v51 }
 0x2c9   :  { %5431 = vmatpush3.bf16.msra.mxu0 %v5900_v32  ;;  %4923 = vmatprep.mubr.msk.f32.mxu0 %vm5810_vm1, %v5811_v4 }
 0x2ca   :  { %5432 = vmatprep.subr.bf16.mxu0 %v5809_v0 }
 0x2cd   :  { %5434 = vmatpush3.bf16.msra.mxu0 %v5920_v39 }
 0x2ce   :  { %5441 = vmatprep.subr.bf16.mxu0 %v5809_v0 }
 0x393   :  { %v334_v53 = vpop.f32.mrb[2].mxu0 }
 0x394   :  { %v335_v54 = vadd.f32 %v5979_v52, %v334_v53  ;;  %v4881_v55 = vpop.f32.mrb[3].mxu0 }
 0x396   :  { %v408_v56 = vadd.f32 %v405_v49, %v335_v54 }
 0x398   :  { %v409_v57 = vmul.f32 0.5, %v408_v56 }
 0x39a   :  { %5698 = vtanh.f32 %v409_v57 }
 0x39b   :  { %v498_v58 = vpop.f32.mrb[4].mxu0 }
 0x39c   :  { %v499_v59 = vadd.f32 %v5882_v15, %v498_v58  ;;  %v4903_v60 = vpop.f32.mrb[5].mxu0 }
 0x39e   :  { %v503_v61 = vrot.slane %v499_v59, 6 }
 0x3a0   :  { %510 = vrot.lane.b32.xlu0 %v503_v61, %s5812_s29  ;;  %v505_v6 = vadd.f32 %v503_v61, %v5886_v19 }
 0x3a2   :  { %v506_v7 = vmul.f32 0.5, %v505_v6 }
 0x3a4   :  { %v5699_v62 = vpop.eup %5698  ;;  %5700 = vtanh.f32 %v506_v7 }
 0x3a5   :  { %v411_v63 = vmul.f32 0.5, %v5699_v62 }
 0x3a7   :  { %v412_v2 = vadd.f32 0.5, %v411_v63 }
 0x3a9   :  { %v417_v3 = vmul.f32 %v415_v1, %v412_v2  ;;  %v424_v23 = vsub.f32 1.0, %v412_v2  ;;  %v430_v25 = vmul.f32 0.0, %v412_v2 }
 0x3ab   :  { %419 = vrot.lane.b32.xlu1 %v417_v3, %s5812_s29 }
 0x3ae   :  { %v5701_v8 = vpop.eup %5700 }
 0x3af   :  { %v508_v9 = vmul.f32 0.5, %v5701_v8 }
 0x3b1   :  { %v509_v11 = vadd.f32 0.5, %v508_v9 }
 0x3b3   :  { %v520_v29 = vsub.f32 1.0, %v509_v11  ;;  %v528_v33 = vmul.f32 %v526_v28, %v509_v11 }
 0x412   :  { %v511_v12 = vpop.permute.xlu0 %510 }
 0x413   :  { %v513_v14 = vmul.f32 %v511_v12, %v509_v11 }
 0x415   :  { %515 = vrot.lane.b32.xlu0 %v513_v14, %s5812_s29 }
 0x41d   :  { %v420_v16 = vpop.permute.xlu1 %419 }
 0x41e   :  { %v422_v17 = vadd.f32 %v420_v16, %v335_v54 }
 0x420   :  { %5702 = vtanh.f32 %v422_v17 }
 0x42a   :  { %v5703_v18 = vpop.eup %5702 }
 0x42b   :  { %426 = vrot.lane.b32.xlu1 %v5703_v18, %s5813_s19 }
 0x487   :  { %v516_v20 = vpop.permute.xlu0 %515 }
 0x488   :  { %v518_v21 = vadd.f32 %v516_v20, %v5886_v19 }
 0x48a   :  { %5704 = vtanh.f32 %v518_v21 }
 0x494   :  { %v5705_v22 = vpop.eup %5704 }
 0x495   :  { %522 = vrot.lane.b32.xlu0 %v5705_v22, %s5813_s19 }
 0x49d   :  { %v427_v24 = vpop.permute.xlu1 %426 }
 0x49e   :  { %v429_v26 = vmul.f32 %v427_v24, %v424_v23 }
 0x4a0   :  { %v5990_v27 = vadd.f32 %v430_v25, %v429_v26 }
 0x4a2   :  { %607 = vrot.lane.b32.xlu1 %v5990_v27, %s5813_s19 }
 0x507   :  { %v523_v30 = vpop.permute.xlu0 %522 }
 0x508   :  { %v525_v31 = vmul.f32 %v523_v30, %v520_v29 }
 0x50a   :  { %v5995_v34 = vadd.f32 %v528_v33, %v525_v31 }
 0x50c   :  { %v531_v35 = vrot.slane %v5995_v34, 2  ;;  %v799_v21 = vrot.slane %v5995_v34, 6 }
 0x50e   :  { %532 = vrot.lane.b32.xlu0 %v531_v35, %s5813_s19 }
 0x514   :  { %v608_v37 = vpop.permute.xlu1 %607 }
 0x515   :  { %4924 = vmatmul.mubr.msk.f32.vlgmr.msra.gmra.mrb[6].mxu0 %vm165_vm2, %v608_v37 }
 0x516   :  { %5443 = vmatpush3.bf16.msra.mxu0 %v5911_v36  ;;  %4945 = vmatprep.mubr.msk.f32.mxu0 %vm5810_vm1, %v5811_v4 }
 0x517   :  { %5444 = vmatprep.subr.bf16.mxu0 %v5809_v0 }
 0x51a   :  { %5446 = vmatpush3.bf16.msra.mxu0 %v5924_v40 }
 0x51b   :  { %5453 = vmatprep.subr.bf16.mxu0 %v5809_v0 }
 0x580   :  { %v533_v38 = vpop.permute.xlu0 %532 }
 0x581   :  { %4913 = vmatmul.mubr.msk.f32.vlgmr.msra.gmra.mrb[4].mxu1 %vm165_vm2, %v533_v38 }
 0x582   :  { %5437 = vmatpush3.bf16.msra.mxu1 %v5846_v5  ;;  %4934 = vmatprep.mubr.msk.f32.mxu1 %vm5810_vm1, %v5811_v4 }
 0x583   :  { %5438 = vmatprep.subr.bf16.mxu1 %v5809_v0 }
 0x586   :  { %5440 = vmatpush3.bf16.msra.mxu1 %v5862_v10 }
 0x587   :  { %5447 = vmatprep.subr.bf16.mxu1 %v5809_v0 }
 0x589   :  { %4935 = vmatmul.mubr.msk.f32.vlgmr.msra.gmra.mrb[6].mxu1 %vm165_vm2, %v533_v38 }
 0x58a   :  { %5449 = vmatpush3.bf16.msra.mxu1 %v5900_v32  ;;  %4956 = vmatprep.mubr.msk.f32.mxu1 %vm5810_vm1, %v5811_v4 }
 0x58b   :  { %5450 = vmatprep.subr.bf16.mxu1 %v5809_v0 }
 0x58e   :  { %5452 = vmatpush3.bf16.msra.mxu1 %v5920_v39 }
 0x58f   :  { %5459 = vmatprep.subr.bf16.mxu1 %v5809_v0 }
 0x5e8   :  { %v677_v41 = vpop.f32.mrb[6].mxu0 }
 0x5e9   :  { %v678_v42 = vadd.f32 %v5958_v47, %v677_v41  ;;  %v4925_v43 = vpop.f32.mrb[7].mxu0 }
 0x5eb   :  { %687 = vrot.lane.b32.xlu1 %v678_v42, %s5812_s29 }
 0x654   :  { %v602_v44 = vpop.f32.mrb[4].mxu1 }
 0x655   :  { %v603_v45 = vadd.f32 %v5979_v52, %v602_v44  ;;  %v4914_v46 = vpop.f32.mrb[5].mxu1 }
 0x657   :  { %v681_v48 = vadd.f32 %v678_v42, %v603_v45 }
 0x659   :  { %v682_v49 = vmul.f32 0.5, %v681_v48 }
 0x65b   :  { %5706 = vtanh.f32 %v682_v49 }
 0x65c   :  { %v771_v50 = vpop.f32.mrb[6].mxu1 }
 0x65d   :  { %v772_v51 = vadd.f32 %v5882_v15, %v771_v50  ;;  %v4936_v53 = vpop.f32.mrb[7].mxu1  ;;  %v688_v58 = vpop.permute.xlu1 %687 }
 0x65f   :  { %v776_v54 = vrot.slane %v772_v51, 4 }
 0x661   :  { %783 = vrot.lane.b32.xlu0 %v776_v54, %s5812_s29  ;;  %v778_v60 = vadd.f32 %v776_v54, %v5886_v19 }
 0x663   :  { %v779_v61 = vmul.f32 0.5, %v778_v60 }
 0x665   :  { %v5707_v55 = vpop.eup %5706  ;;  %5708 = vtanh.f32 %v779_v61 }
 0x666   :  { %v684_v56 = vmul.f32 0.5, %v5707_v55 }
 0x668   :  { %v685_v57 = vadd.f32 0.5, %v684_v56 }
 0x66a   :  { %v690_v59 = vmul.f32 %v688_v58, %v685_v57  ;;  %v697_v14 = vsub.f32 1.0, %v685_v57  ;;  %v703_v17 = vmul.f32 %v685_v57, %v5990_v27 }
 0x66c   :  { %692 = vrot.lane.b32.xlu1 %v690_v59, %s5812_s29 }
 0x66f   :  { %v5709_v62 = vpop.eup %5708 }
 0x670   :  { %v781_v63 = vmul.f32 0.5, %v5709_v62 }
 0x672   :  { %v782_v1 = vadd.f32 0.5, %v781_v63 }
 0x674   :  { %v793_v22 = vsub.f32 1.0, %v782_v1  ;;  %v801_v24 = vmul.f32 %v799_v21, %v782_v1 }
 0x6d3   :  { %v784_v2 = vpop.permute.xlu0 %783 }
 0x6d4   :  { %v786_v3 = vmul.f32 %v784_v2, %v782_v1 }
 0x6d6   :  { %788 = vrot.lane.b32.xlu0 %v786_v3, %s5812_s29 }
 0x6de   :  { %v693_v6 = vpop.permute.xlu1 %692 }
 0x6df   :  { %v695_v7 = vadd.f32 %v693_v6, %v603_v45 }
 0x6e1   :  { %5710 = vtanh.f32 %v695_v7 }
 0x6eb   :  { %v5711_v8 = vpop.eup %5710 }
 0x6ec   :  { %699 = vrot.lane.b32.xlu1 %v5711_v8, %s5813_s19 }
 0x748   :  { %v789_v9 = vpop.permute.xlu0 %788 }
 0x749   :  { %v791_v11 = vadd.f32 %v789_v9, %v5886_v19 }
 0x74b   :  { %5712 = vtanh.f32 %v791_v11 }
 0x755   :  { %v5713_v12 = vpop.eup %5712 }
 0x756   :  { %795 = vrot.lane.b32.xlu0 %v5713_v12, %s5813_s19 }
 0x75e   :  { %v700_v16 = vpop.permute.xlu1 %699 }
 0x75f   :  { %v702_v18 = vmul.f32 %v700_v16, %v697_v14 }
 0x761   :  { %v6032_v20 = vadd.f32 %v703_v17, %v702_v18 }
 0x763   :  { %880 = vrot.lane.b32.xlu1 %v6032_v20, %s5813_s19 }
 0x7c8   :  { %v796_v23 = vpop.permute.xlu0 %795 }
 0x7c9   :  { %v798_v25 = vmul.f32 %v796_v23, %v793_v22 }
 0x7cb   :  { %v6037_v26 = vadd.f32 %v801_v24, %v798_v25 }
 0x7cd   :  { %v804_v28 = vrot.slane %v6037_v26, 4  ;;  %v1072_v11 = vrot.slane %v6037_v26, 6 }
 0x7cf   :  { %805 = vrot.lane.b32.xlu0 %v804_v28, %s5813_s19 }
 0x7d5   :  { %v881_v29 = vpop.permute.xlu1 %880 }
 0x7d6   :  { %4957 = vmatmul.mubr.msk.f32.vlgmr.msra.gmra.mrb[8].mxu1 %vm165_vm2, %v881_v29 }
 0x7d7   :  { %5461 = vmatpush3.bf16.msra.mxu1 %v5911_v36  ;;  %4978 = vmatprep.mubr.msk.f32.mxu1 %vm5810_vm1, %v5811_v4 }
 0x7d8   :  { %5462 = vmatprep.subr.bf16.mxu1 %v5809_v0 }
 0x7db   :  { %5464 = vmatpush3.bf16.msra.mxu1 %v5924_v40 }
 0x7dc   :  { %5471 = vmatprep.subr.bf16.mxu1 %v5809_v0 }
 0x841   :  { %v806_v27 = vpop.permute.xlu0 %805 }
 0x842   :  { %4946 = vmatmul.mubr.msk.f32.vlgmr.msra.gmra.mrb[8].mxu0 %vm165_vm2, %v806_v27 }
 0x843   :  { %5455 = vmatpush3.bf16.msra.mxu0 %v5846_v5  ;;  %4967 = vmatprep.mubr.msk.f32.mxu0 %vm5810_vm1, %v5811_v4 }
 0x844   :  { %5456 = vmatprep.subr.bf16.mxu0 %v5809_v0 }
 0x847   :  { %5458 = vmatpush3.bf16.msra.mxu0 %v5862_v10 }
 0x848   :  { %5465 = vmatprep.subr.bf16.mxu0 %v5809_v0 }
 0x84a   :  { %4968 = vmatmul.mubr.msk.f32.vlgmr.msra.gmra.mrb[10].mxu0 %vm165_vm2, %v806_v27 }
 0x84b   :  { %5467 = vmatpush3.bf16.msra.mxu0 %v5900_v32  ;;  %4989 = vmatprep.mubr.msk.f32.mxu0 %vm5810_vm1, %v5811_v4 }
 0x84c   :  { %5468 = vmatprep.subr.bf16.mxu0 %v5809_v0 }
 0x84f   :  { %5470 = vmatpush3.bf16.msra.mxu0 %v5920_v39 }
 0x850   :  { %5477 = vmatprep.subr.bf16.mxu0 %v5809_v0 }
 0x8a9   :  { %v950_v30 = vpop.f32.mrb[8].mxu1 }
 0x8aa   :  { %v951_v31 = vadd.f32 %v5958_v47, %v950_v30  ;;  %v4958_v33 = vpop.f32.mrb[9].mxu1 }
 0x8ac   :  { %960 = vrot.lane.b32.xlu1 %v951_v31, %s5812_s29 }
 0x915   :  { %v875_v34 = vpop.f32.mrb[8].mxu0 }
 0x916   :  { %v876_v35 = vadd.f32 %v5979_v52, %v875_v34  ;;  %v4947_v37 = vpop.f32.mrb[9].mxu0 }
 0x918   :  { %v954_v38 = vadd.f32 %v951_v31, %v876_v35 }
 0x91a   :  { %v955_v41 = vmul.f32 0.5, %v954_v38 }
 0x91c   :  { %5714 = vtanh.f32 %v955_v41 }
 0x91d   :  { %v1044_v42 = vpop.f32.mrb[10].mxu0 }
 0x91e   :  { %v1045_v43 = vadd.f32 %v5882_v15, %v1044_v42  ;;  %v4969_v44 = vpop.f32.mrb[11].mxu0  ;;  %v961_v50 = vpop.permute.xlu1 %960 }
 0x920   :  { %v1049_v45 = vrot.slane %v1045_v43, 2 }
 0x922   :  { %1056 = vrot.lane.b32.xlu0 %v1049_v45, %s5812_s29  ;;  %v1051_v53 = vadd.f32 %v1049_v45, %v5886_v19 }
 0x924   :  { %v1052_v54 = vmul.f32 0.5, %v1051_v53 }
 0x926   :  { %v5715_v46 = vpop.eup %5714  ;;  %5716 = vtanh.f32 %v1052_v54 }
 0x927   :  { %v957_v48 = vmul.f32 0.5, %v5715_v46 }
 0x929   :  { %v958_v49 = vadd.f32 0.5, %v957_v48 }
 0x92b   :  { %v963_v51 = vmul.f32 %v961_v50, %v958_v49  ;;  %v970_v3 = vsub.f32 1.0, %v958_v49  ;;  %v976_v7 = vmul.f32 %v958_v49, %v6032_v20 }
 0x92d   :  { %965 = vrot.lane.b32.xlu1 %v963_v51, %s5812_s29 }
 0x930   :  { %v5717_v55 = vpop.eup %5716 }
 0x931   :  { %v1054_v56 = vmul.f32 0.5, %v5717_v55 }
 0x933   :  { %v1055_v57 = vadd.f32 0.5, %v1054_v56 }
 0x935   :  { %v1066_v12 = vsub.f32 1.0, %v1055_v57  ;;  %v1074_v16 = vmul.f32 %v1072_v11, %v1055_v57 }
 0x994   :  { %v1057_v58 = vpop.permute.xlu0 %1056 }
 0x995   :  { %v1059_v59 = vmul.f32 %v1057_v58, %v1055_v57 }
 0x997   :  { %1061 = vrot.lane.b32.xlu0 %v1059_v59, %s5812_s29 }
 0x99f   :  { %v966_v60 = vpop.permute.xlu1 %965 }
 0x9a0   :  { %v968_v61 = vadd.f32 %v966_v60, %v876_v35 }
 0x9a2   :  { %5718 = vtanh.f32 %v968_v61 }
 0x9ac   :  { %v5719_v62 = vpop.eup %5718 }
 0x9ad   :  { %972 = vrot.lane.b32.xlu1 %v5719_v62, %s5813_s19 }
 0xa09   :  { %v1062_v63 = vpop.permute.xlu0 %1061 }
 0xa0a   :  { %v1064_v1 = vadd.f32 %v1062_v63, %v5886_v19 }
 0xa0c   :  { %5720 = vtanh.f32 %v1064_v1 }
 0xa16   :  { %v5721_v2 = vpop.eup %5720 }
 0xa17   :  { %1068 = vrot.lane.b32.xlu0 %v5721_v2, %s5813_s19 }
 0xa1f   :  { %v973_v6 = vpop.permute.xlu1 %972 }
 0xa20   :  { %v975_v8 = vmul.f32 %v973_v6, %v970_v3 }
 0xa22   :  { %v6074_v9 = vadd.f32 %v976_v7, %v975_v8 }
 0xa24   :  { %1153 = vrot.lane.b32.xlu1 %v6074_v9, %s5813_s19 }
 0xa89   :  { %v1069_v14 = vpop.permute.xlu0 %1068 }
 0xa8a   :  { %v1071_v19 = vmul.f32 %v1069_v14, %v1066_v12 }
 0xa8c   :  { %v6079_v17 = vadd.f32 %v1074_v16, %v1071_v19 }
 0xa8e   :  { %v1077_v18 = vrot.slane %v6079_v17, 6 }
 0xa90   :  { %1078 = vrot.lane.b32.xlu0 %v1077_v18, %s5813_s19 }
 0xa96   :  { %v1154_v20 = vpop.permute.xlu1 %1153 }
 0xa97   :  { %4990 = vmatmul.mubr.msk.f32.vlgmr.msra.gmra.mrb[12].mxu0 %vm165_vm2, %v1154_v20 }
 0xa98   :  { %5479 = vmatpush3.bf16.msra.mxu0 %v5911_v36  ;;  %5011 = vmatprep.mubr.msk.f32.mxu0 %vm5810_vm1, %v5811_v4 }
 0xa99   :  { %5480 = vmatprep.subr.bf16.mxu0 %v5809_v0 }
 0xa9c   :  { %5482 = vmatpush3.bf16.msra.mxu0 %v5924_v40 }
 0xa9d   :  { %5489 = vmatprep.subr.bf16.mxu0 %v5809_v0 }
 0xb02   :  { %v1079_v21 = vpop.permute.xlu0 %1078 }
 0xb03   :  { %4979 = vmatmul.mubr.msk.f32.vlgmr.msra.gmra.mrb[10].mxu1 %vm165_vm2, %v1079_v21 }
 0xb04   :  { %5473 = vmatpush3.bf16.msra.mxu1 %v5846_v5  ;;  %5000 = vmatprep.mubr.msk.f32.mxu1 %vm5810_vm1, %v5811_v4 }
 0xb05   :  { %5474 = vmatprep.subr.bf16.mxu1 %v5809_v0 }
 0xb08   :  { %5476 = vmatpush3.bf16.msra.mxu1 %v5862_v10 }
 0xb09   :  { %5483 = vmatprep.subr.bf16.mxu1 %v5809_v0 }
 0xb0b   :  { %5001 = vmatmul.mubr.msk.f32.vlgmr.msra.gmra.mrb[12].mxu1 %vm165_vm2, %v1079_v21 }
 0xb0c   :  { %5485 = vmatpush3.bf16.msra.mxu1 %v5900_v32  ;;  %5022 = vmatprep.mubr.msk.f32.mxu1 %vm5810_vm1, %v5811_v4 }
 0xb0d   :  { %5486 = vmatprep.subr.bf16.mxu1 %v5809_v0 }
 0xb10   :  { %5488 = vmatpush3.bf16.msra.mxu1 %v5920_v39 }
 0xb11   :  { %5495 = vmatprep.subr.bf16.mxu1 %v5809_v0 }
 0xb6a   :  { %v1223_v22 = vpop.f32.mrb[12].mxu0 }
 0xb6b   :  { %v1224_v23 = vadd.f32 %v5958_v47, %v1223_v22  ;;  %v4991_v24 = vpop.f32.mrb[13].mxu0 }
 0xb6d   :  { %1233 = vrot.lane.b32.xlu0 %v1224_v23, %s5812_s29 }
 0xbd6   :  { %v1148_v25 = vpop.f32.mrb[10].mxu1 }
 0xbd7   :  { %v1149_v26 = vadd.f32 %v5979_v52, %v1148_v25  ;;  %v4980_v28 = vpop.f32.mrb[11].mxu1 }
 0xbd9   :  { %v1227_v29 = vadd.f32 %v1224_v23, %v1149_v26 }
 0xbdb   :  { %v1228_v27 = vmul.f32 0.5, %v1227_v29 }
 0xbdd   :  { %5722 = vtanh.f32 %v1228_v27 }
 0xbde   :  { %v1317_v30 = vpop.f32.mrb[12].mxu1 }
 0xbdf   :  { %v1318_v31 = vadd.f32 %v5882_v15, %v1317_v30  ;;  %v5002_v33 = vpop.f32.mrb[13].mxu1  ;;  %v1234_v38 = vpop.permute.xlu0 %1233 }
 0xbe1   :  { %1327 = vrot.lane.b32.xlu1 %v1318_v31, %s5812_s29  ;;  %v1321_v42 = vadd.f32 %v1318_v31, %v5877_v13 }
 0xbe3   :  { %v1322_v43 = vmul.f32 0.5, %v1321_v42 }
 0xbe5   :  { %5724 = vtanh.f32 %v1322_v43 }
 0xbe7   :  { %v5723_v34 = vpop.eup %5722 }
 0xbe8   :  { %v1230_v35 = vmul.f32 0.5, %v5723_v34 }
 0xbea   :  { %v1231_v37 = vadd.f32 0.5, %v1230_v35 }
 0xbec   :  { %v1236_v41 = vmul.f32 %v1234_v38, %v1231_v37  ;;  %v1243_v57 = vsub.f32 1.0, %v1231_v37  ;;  %v1249_v59 = vmul.f32 %v1231_v37, %v6074_v9 }
 0xbee   :  { %1238 = vrot.lane.b32.xlu0 %v1236_v41, %s5812_s29 }
 0xbef   :  { %v5725_v44 = vpop.eup %5724 }
 0xbf0   :  { %v1324_v45 = vmul.f32 0.5, %v5725_v44 }
 0xbf2   :  { %v1325_v46 = vadd.f32 0.5, %v1324_v45 }
 0xbf4   :  { %v1337_v62 = vsub.f32 1.0, %v1325_v46  ;;  %v1344_v1 = vmul.f32 %v1325_v46, %v1077_v18 }
 0xc53   :  { %v1328_v48 = vpop.permute.xlu1 %1327 }
 0xc54   :  { %v1330_v49 = vmul.f32 %v1328_v48, %v1325_v46 }
 0xc56   :  { %1332 = vrot.lane.b32.xlu1 %v1330_v49, %s5812_s29 }
 0xc60   :  { %v1239_v50 = vpop.permute.xlu0 %1238 }
 0xc61   :  { %v1241_v51 = vadd.f32 %v1239_v50, %v1149_v26 }
 0xc63   :  { %5726 = vtanh.f32 %v1241_v51 }
 0xc6d   :  { %v5727_v53 = vpop.eup %5726 }
 0xc6e   :  { %1245 = vrot.lane.b32.xlu0 %v5727_v53, %s5813_s19 }
 0xcc8   :  { %v1333_v54 = vpop.permute.xlu1 %1332 }
 0xcc9   :  { %v1335_v55 = vadd.f32 %v1333_v54, %v5877_v13 }
 0xccb   :  { %5728 = vtanh.f32 %v1335_v55 }
 0xcd5   :  { %v5729_v56 = vpop.eup %5728 }
 0xcd6   :  { %1339 = vrot.lane.b32.xlu1 %v5729_v56, %s5813_s19 }
 0xce0   :  { %v1246_v58 = vpop.permute.xlu0 %1245 }
 0xce1   :  { %v1248_v60 = vmul.f32 %v1246_v58, %v1243_v57 }
 0xce3   :  { %v6118_v61 = vadd.f32 %v1249_v59, %v1248_v60 }
 0xce5   :  { %1422 = vrot.lane.b32.xlu0 %v6118_v61, %s5813_s19 }
 0xd48   :  { %v1340_v63 = vpop.permute.xlu1 %1339 }
 0xd49   :  { %v1342_v2 = vmul.f32 %v1340_v63, %v1337_v62 }
 0xd4b   :  { %v6124_v3 = vadd.f32 %v1344_v1, %v1342_v2 }
 0xd4d   :  { %1347 = vrot.lane.b32.xlu1 %v6124_v3, %s5813_s19  ;;  %v1614_v51 = vrot.slane %v6124_v3, 6 }
 0xd57   :  { %v1423_v6 = vpop.permute.xlu0 %1422 }
 0xd58   :  { %5023 = vmatmul.mubr.msk.f32.vlgmr.msra.gmra.mrb[14].mxu1 %vm165_vm2, %v1423_v6 }
 0xd59   :  { %5497 = vmatpush3.bf16.msra.mxu1 %v5911_v36  ;;  %5044 = vmatprep.mubr.msk.f32.mxu1 %vm5810_vm1, %v5811_v4 }
 0xd5a   :  { %5498 = vmatprep.subr.bf16.mxu1 %v5809_v0 }
 0xd5d   :  { %5500 = vmatpush3.bf16.msra.mxu1 %v5924_v40 }
 0xd5e   :  { %5507 = vmatprep.subr.bf16.mxu1 %v5809_v0 }
 0xdbf   :  { %v1348_v7 = vpop.permute.xlu1 %1347 }
 0xdc0   :  { %5012 = vmatmul.mubr.msk.f32.vlgmr.msra.gmra.mrb[14].mxu0 %vm165_vm2, %v1348_v7 }
 0xdc1   :  { %5491 = vmatpush3.bf16.msra.mxu0 %v5846_v5  ;;  %5033 = vmatprep.mubr.msk.f32.mxu0 %vm5810_vm1, %v5811_v4 }
 0xdc2   :  { %5492 = vmatprep.subr.bf16.mxu0 %v5809_v0 }
 0xdc5   :  { %5494 = vmatpush3.bf16.msra.mxu0 %v5862_v10 }
 0xdc6   :  { %5501 = vmatprep.subr.bf16.mxu0 %v5809_v0 }
 0xdc8   :  { %5034 = vmatmul.mubr.msk.f32.vlgmr.msra.gmra.mrb[16].mxu0 %vm165_vm2, %v1348_v7 }
 0xdc9   :  { %5503 = vmatpush3.bf16.msra.mxu0 %v5900_v32  ;;  %5055 = vmatprep.mubr.msk.f32.mxu0 %vm5810_vm1, %v5811_v4 }
 0xdca   :  { %5504 = vmatprep.subr.bf16.mxu0 %v5809_v0 }
 0xdcd   :  { %5506 = vmatpush3.bf16.msra.mxu0 %v5920_v39 }
 0xdce   :  { %5513 = vmatprep.subr.bf16.mxu0 %v5809_v0 }
 0xe2b   :  { %v1492_v8 = vpop.f32.mrb[14].mxu1 }
 0xe2c   :  { %v1493_v9 = vadd.f32 %v5958_v47, %v1492_v8  ;;  %v5024_v11 = vpop.f32.mrb[15].mxu1 }
 0xe2e   :  { %1502 = vrot.lane.b32.xlu0 %v1493_v9, %s5812_s29 }
 0xe93   :  { %v1417_v12 = vpop.f32.mrb[14].mxu0 }
 0xe94   :  { %v1418_v14 = vadd.f32 %v5979_v52, %v1417_v12  ;;  %v5013_v16 = vpop.f32.mrb[15].mxu0 }
 0xe96   :  { %v1496_v19 = vadd.f32 %v1493_v9, %v1418_v14 }
 0xe98   :  { %v1497_v17 = vmul.f32 0.5, %v1496_v19 }
 0xe9a   :  { %5730 = vtanh.f32 %v1497_v17 }
 0xe9b   :  { %v1586_v18 = vpop.f32.mrb[16].mxu0 }
 0xe9c   :  { %v1587_v20 = vadd.f32 %v5882_v15, %v1586_v18  ;;  %v5035_v21 = vpop.f32.mrb[17].mxu0 }
 0xe9e   :  { %v1591_v22 = vrot.slane %v1587_v20, 6 }
 0xea0   :  { %1598 = vrot.lane.b32.xlu1 %v1591_v22, %s5812_s29  ;;  %v1503_v26 = vpop.permute.xlu0 %1502  ;;  %v1593_v29 = vadd.f32 %v1591_v22, %v5877_v13 }
 0xea2   :  { %v1594_v27 = vmul.f32 0.5, %v1593_v29 }
 0xea4   :  { %v5731_v23 = vpop.eup %5730  ;;  %5732 = vtanh.f32 %v1594_v27 }
 0xea5   :  { %v1499_v24 = vmul.f32 0.5, %v5731_v23 }
 0xea7   :  { %v1500_v25 = vadd.f32 0.5, %v1499_v24 }
 0xea9   :  { %v1505_v28 = vmul.f32 %v1503_v26, %v1500_v25  ;;  %v1512_v45 = vsub.f32 1.0, %v1500_v25  ;;  %v1518_v48 = vmul.f32 %v1500_v25, %v6118_v61 }
 0xeab   :  { %1507 = vrot.lane.b32.xlu0 %v1505_v28, %s5812_s29 }
 0xeae   :  { %v5733_v30 = vpop.eup %5732 }
 0xeaf   :  { %v1596_v31 = vmul.f32 0.5, %v5733_v30 }
 0xeb1   :  { %v1597_v33 = vadd.f32 0.5, %v1596_v31 }
 0xeb3   :  { %v1608_v53 = vsub.f32 1.0, %v1597_v33  ;;  %v1616_v56 = vmul.f32 %v1614_v51, %v1597_v33 }
 0xf12   :  { %v1599_v34 = vpop.permute.xlu1 %1598 }
 0xf13   :  { %v1601_v35 = vmul.f32 %v1599_v34, %v1597_v33 }
 0xf15   :  { %1603 = vrot.lane.b32.xlu1 %v1601_v35, %s5812_s29 }
 0xf1d   :  { %v1508_v37 = vpop.permute.xlu0 %1507 }
 0xf1e   :  { %v1510_v38 = vadd.f32 %v1508_v37, %v1418_v14 }
 0xf20   :  { %5734 = vtanh.f32 %v1510_v38 }
 0xf2a   :  { %v5735_v41 = vpop.eup %5734 }
 0xf2b   :  { %1514 = vrot.lane.b32.xlu0 %v5735_v41, %s5813_s19 }
 0xf87   :  { %v1604_v42 = vpop.permute.xlu1 %1603 }
 0xf88   :  { %v1606_v43 = vadd.f32 %v1604_v42, %v5877_v13 }
 0xf8a   :  { %5736 = vtanh.f32 %v1606_v43 }
 0xf94   :  { %v5737_v44 = vpop.eup %5736 }
 0xf95   :  { %1610 = vrot.lane.b32.xlu1 %v5737_v44, %s5813_s19 }
 0xf9d   :  { %v1515_v46 = vpop.permute.xlu0 %1514 }
 0xf9e   :  { %v1517_v49 = vmul.f32 %v1515_v46, %v1512_v45 }
 0xfa0   :  { %v6161_v50 = vadd.f32 %v1518_v48, %v1517_v49 }
 0xfa2   :  { %1695 = vrot.lane.b32.xlu0 %v6161_v50, %s5813_s19 }
0x1007   :  { %v1611_v54 = vpop.permute.xlu1 %1610 }
0x1008   :  { %v1613_v55 = vmul.f32 %v1611_v54, %v1608_v53 }
0x100a   :  { %v6166_v57 = vadd.f32 %v1616_v56, %v1613_v55 }
0x100c   :  { %v1619_v58 = vrot.slane %v6166_v57, 2  ;;  %v1887_v41 = vrot.slane %v6166_v57, 6 }
0x100e   :  { %1620 = vrot.lane.b32.xlu1 %v1619_v58, %s5813_s19 }
0x1014   :  { %v1696_v59 = vpop.permute.xlu0 %1695 }
0x1015   :  { %5056 = vmatmul.mubr.msk.f32.vlgmr.msra.gmra.mrb[18].mxu0 %vm165_vm2, %v1696_v59 }
0x1016   :  { %5515 = vmatpush3.bf16.msra.mxu0 %v5911_v36  ;;  %5077 = vmatprep.mubr.msk.f32.mxu0 %vm5810_vm1, %v5811_v4 }
0x1017   :  { %5516 = vmatprep.subr.bf16.mxu0 %v5809_v0 }
0x101a   :  { %5518 = vmatpush3.bf16.msra.mxu0 %v5924_v40 }
0x101b   :  { %5525 = vmatprep.subr.bf16.mxu0 %v5809_v0 }
0x1080   :  { %v1621_v60 = vpop.permute.xlu1 %1620 }
0x1081   :  { %5045 = vmatmul.mubr.msk.f32.vlgmr.msra.gmra.mrb[16].mxu1 %vm165_vm2, %v1621_v60 }
0x1082   :  { %5509 = vmatpush3.bf16.msra.mxu1 %v5846_v5  ;;  %5066 = vmatprep.mubr.msk.f32.mxu1 %vm5810_vm1, %v5811_v4 }
0x1083   :  { %5510 = vmatprep.subr.bf16.mxu1 %v5809_v0 }
0x1086   :  { %5512 = vmatpush3.bf16.msra.mxu1 %v5862_v10 }
0x1087   :  { %5519 = vmatprep.subr.bf16.mxu1 %v5809_v0 }
0x1089   :  { %5067 = vmatmul.mubr.msk.f32.vlgmr.msra.gmra.mrb[18].mxu1 %vm165_vm2, %v1621_v60 }
0x108a   :  { %5521 = vmatpush3.bf16.msra.mxu1 %v5900_v32  ;;  %5088 = vmatprep.mubr.msk.f32.mxu1 %vm5810_vm1, %v5811_v4 }
0x108b   :  { %5522 = vmatprep.subr.bf16.mxu1 %v5809_v0 }
0x108e   :  { %5524 = vmatpush3.bf16.msra.mxu1 %v5920_v39 }
0x108f   :  { %5531 = vmatprep.subr.bf16.mxu1 %v5809_v0 }
0x10e8   :  { %v1765_v61 = vpop.f32.mrb[18].mxu0 }
0x10e9   :  { %v1766_v62 = vadd.f32 %v5958_v47, %v1765_v61  ;;  %v5057_v63 = vpop.f32.mrb[19].mxu0 }
0x10eb   :  { %1775 = vrot.lane.b32.xlu0 %v1766_v62, %s5812_s29 }
0x1154   :  { %v1690_v1 = vpop.f32.mrb[16].mxu1 }
0x1155   :  { %v1691_v2 = vadd.f32 %v5979_v52, %v1690_v1  ;;  %v5046_v3 = vpop.f32.mrb[17].mxu1 }
0x1157   :  { %v1769_v6 = vadd.f32 %v1766_v62, %v1691_v2 }
0x1159   :  { %v1770_v7 = vmul.f32 0.5, %v1769_v6 }
0x115b   :  { %5738 = vtanh.f32 %v1770_v7 }
0x115c   :  { %v1859_v8 = vpop.f32.mrb[18].mxu1 }
0x115d   :  { %v1860_v9 = vadd.f32 %v5882_v15, %v1859_v8  ;;  %v5068_v11 = vpop.f32.mrb[19].mxu1  ;;  %v1776_v17 = vpop.permute.xlu0 %1775 }
0x115f   :  { %v1864_v12 = vrot.slane %v1860_v9, 4 }
0x1161   :  { %1871 = vrot.lane.b32.xlu1 %v1864_v12, %s5812_s29  ;;  %v1866_v20 = vadd.f32 %v1864_v12, %v5877_v13 }
0x1163   :  { %v1867_v21 = vmul.f32 0.5, %v1866_v20 }
0x1165   :  { %v5739_v14 = vpop.eup %5738  ;;  %5740 = vtanh.f32 %v1867_v21 }
0x1166   :  { %v1772_v16 = vmul.f32 0.5, %v5739_v14 }
0x1168   :  { %v1773_v19 = vadd.f32 0.5, %v1772_v16 }
0x116a   :  { %v1778_v18 = vmul.f32 %v1776_v17, %v1773_v19  ;;  %v1785_v33 = vsub.f32 1.0, %v1773_v19  ;;  %v1791_v35 = vmul.f32 %v1773_v19, %v6161_v50 }
0x116c   :  { %1780 = vrot.lane.b32.xlu0 %v1778_v18, %s5812_s29 }
0x116f   :  { %v5741_v22 = vpop.eup %5740 }
0x1170   :  { %v1869_v23 = vmul.f32 0.5, %v5741_v22 }
0x1172   :  { %v1870_v24 = vadd.f32 0.5, %v1869_v23 }
0x1174   :  { %v1881_v42 = vsub.f32 1.0, %v1870_v24  ;;  %v1889_v44 = vmul.f32 %v1887_v41, %v1870_v24 }
0x11d3   :  { %v1872_v25 = vpop.permute.xlu1 %1871 }
0x11d4   :  { %v1874_v15 = vmul.f32 %v1872_v25, %v1870_v24 }
0x11d6   :  { %1876 = vrot.lane.b32.xlu1 %v1874_v15, %s5812_s29 }
0x11de   :  { %v1781_v26 = vpop.permute.xlu0 %1780 }
0x11df   :  { %v1783_v28 = vadd.f32 %v1781_v26, %v1691_v2 }
0x11e1   :  { %5742 = vtanh.f32 %v1783_v28  ;;  %v43_v28 = vld [vmem:[%s6695_s2 + $0x88] sm:$0xff] }
0x11eb   :  { %v5743_v29 = vpop.eup %5742 }
0x11ec   :  { %1787 = vrot.lane.b32.xlu0 %v5743_v29, %s5813_s19  ;;  %v44_v29 = vld [vmem:[%s6695_s2 + $0x90] sm:$0xff] }
0x1248   :  { %v1877_v27 = vpop.permute.xlu1 %1876 }
0x1249   :  { %v1879_v30 = vadd.f32 %v1877_v27, %v5877_v13  ;;  %v45_v27 = vld [vmem:[%s6695_s2 + $0x98] sm:$0xff] }
0x124b   :  { %5744 = vtanh.f32 %v1879_v30 }
0x1255   :  { %v5745_v31 = vpop.eup %5744 }
0x1256   :  { %1883 = vrot.lane.b32.xlu1 %v5745_v31, %s5813_s19  ;;  %v2354_v31 = vld [vmem:[%s6697_s1] sm:$0x3] }
0x125e   :  { %v1788_v34 = vpop.permute.xlu0 %1787 }
0x125f   :  { %v1790_v37 = vmul.f32 %v1788_v34, %v1785_v33  ;;  %v6273_v33 = vpack.c.bf16 %v45_v27, %v44_v29  ;;  %v46_v34 = vld [vmem:[%s6695_s2 + $0xa0] sm:$0xff] }
0x1261   :  { %v6203_v38 = vadd.f32 %v1791_v35, %v1790_v37  ;;  %v47_v35 = vld [vmem:[%s6695_s2 + $0xa8] sm:$0xff] }
0x1262   :  { %v6284_v37 = vpack.c.bf16 %v47_v35, %v46_v34 }
0x1263   :  { %1968 = vrot.lane.b32.xlu0 %v6203_v38, %s5813_s19 }
0x12c8   :  { %v1884_v43 = vpop.permute.xlu1 %1883 }
0x12c9   :  { %v1886_v45 = vmul.f32 %v1884_v43, %v1881_v42  ;;  %v5807_v42 = vld [vmem:[%s6695_s2 + $0x80] ss:$0 sm:$0xff] }
0x12cb   :  { %v6208_v46 = vadd.f32 %v1889_v44, %v1886_v45 }
0x12cd   :  { %v1892_v48 = vrot.slane %v6208_v46, 4  ;;  %v2160_v22 = vrot.slane %v6208_v46, 6 }
0x12cf   :  { %1893 = vrot.lane.b32.xlu1 %v1892_v48, %s5813_s19  ;;  %v6304_v48 = vld [vmem:[%s6695_s2 + $0xb8] ss:$0 sm:$0xff] }
0x12d5   :  { %v1969_v49 = vpop.permute.xlu0 %1968 }
0x12d6   :  { %5089 = vmatmul.mubr.msk.f32.vlgmr.msra.gmra.mrb[20].mxu1 %vm165_vm2, %v1969_v49 }
0x12d7   :  { %5533 = vmatpush3.bf16.msra.mxu1 %v5911_v36  ;;  %5110 = vmatprep.mubr.msk.f32.mxu1 %vm5810_vm1, %v5811_v4 }
0x12d8   :  { %5534 = vmatprep.subr.bf16.mxu1 %v5809_v0 }
0x12db   :  { %5536 = vmatpush3.bf16.msra.mxu1 %v5924_v40 }
0x12dc   :  { %5549 = vmatprep.subr.bf16.mxu1 %v5809_v0 }
0x1341   :  { %v1894_v50 = vpop.permute.xlu1 %1893 }
0x1342   :  { %5078 = vmatmul.mubr.msk.f32.vlgmr.msra.gmra.mrb[20].mxu0 %vm165_vm2, %v1894_v50 }
0x1343   :  { %5527 = vmatpush3.bf16.msra.mxu0 %v5846_v5  ;;  %5099 = vmatprep.mubr.msk.f32.mxu0 %vm5810_vm1, %v5811_v4 }
0x1344   :  { %5528 = vmatprep.subr.bf16.mxu0 %v5809_v0 }
0x1347   :  { %5530 = vmatpush3.bf16.msra.mxu0 %v5862_v10 }
0x1348   :  { %5537 = vmatprep.subr.bf16.mxu0 %v5809_v0 }
0x134a   :  { %5100 = vmatmul.mubr.msk.f32.vlgmr.msra.gmra.mrb[22].mxu0 %vm165_vm2, %v1894_v50 }
0x134b   :  { %5539 = vmatpush3.bf16.msra.mxu0 %v5900_v32  ;;  %5121 = vmatprep.mubr.msk.f32.mxu0 %vm5810_vm1, %v5811_v4 }
0x134c   :  { %5540 = vmatprep.subr.bf16.mxu0 %v5809_v0 }
0x134f   :  { %5542 = vmatpush3.bf16.msra.mxu0 %v5920_v39  ;;  %v5806_v39 = vld [vmem:[%s6695_s2 + $0x30] ss:$0 sm:$0xff] }
0x1350   :  { %5124 = vmatprep.subr.mxu0 %v5811_v4 }
0x13a9   :  { %v2038_v5 = vpop.f32.mrb[20].mxu1 }
0x13aa   :  { %v2039_v36 = vadd.f32 %v5958_v47, %v2038_v5  ;;  %v5090_v40 = vpop.f32.mrb[21].mxu1  ;;  %v5808_v5 = vld [vmem:[%s6695_s2 + $0x78] ss:$0 sm:$0xff] }
0x13ac   :  { %2048 = vrot.lane.b32.xlu0 %v2039_v36, %s5812_s29 }
0x1415   :  { %v1963_v10 = vpop.f32.mrb[20].mxu0 }
0x1416   :  { %v1964_v51 = vadd.f32 %v5979_v52, %v1963_v10  ;;  %v5079_v53 = vpop.f32.mrb[21].mxu0 }
0x1418   :  { %v2042_v32 = vadd.f32 %v2039_v36, %v1964_v51 }
0x141a   :  { %v2043_v54 = vmul.f32 0.5, %v2042_v32 }
0x141c   :  { %5746 = vtanh.f32 %v2043_v54 }
0x141d   :  { %v2132_v55 = vpop.f32.mrb[22].mxu0 }
0x141e   :  { %v2133_v56 = vadd.f32 %v5806_v39, %v2132_v55  ;;  %v5101_v57 = vpop.f32.mrb[23].mxu0  ;;  %v2049_v61 = vpop.permute.xlu0 %2048 }
0x1420   :  { %v2137_v58 = vrot.slane %v2133_v56, 2 }
0x1422   :  { %2144 = vrot.lane.b32.xlu1 %v2137_v58, %s5812_s29  ;;  %v2139_v52 = vadd.f32 %v2137_v58, %v5877_v13  ;;  %v4573_v58 = vld [vmem:[%s6695_s2 + $0xb0] ss:$0 sm:$0xff] }
0x1424   :  { %v2140_v63 = vmul.f32 0.5, %v2139_v52 }
0x1426   :  { %v5747_v47 = vpop.eup %5746  ;;  %5748 = vtanh.f32 %v2140_v63 }
0x1427   :  { %v2045_v59 = vmul.f32 0.5, %v5747_v47 }
0x1429   :  { %v2046_v60 = vadd.f32 0.5, %v2045_v59 }
0x142b   :  { %v2051_v62 = vmul.f32 %v2049_v61, %v2046_v60  ;;  %v2058_v19 = vsub.f32 1.0, %v2046_v60  ;;  %v2064_v18 = vmul.f32 %v2046_v60, %v6203_v38 }
0x142d   :  { %2053 = vrot.lane.b32.xlu0 %v2051_v62, %s5812_s29 }
0x1430   :  { %v5749_v1 = vpop.eup %5748 }
0x1431   :  { %v2142_v2 = vmul.f32 0.5, %v5749_v1 }
0x1433   :  { %v2143_v3 = vadd.f32 0.5, %v2142_v2 }
0x1435   :  { %v2154_v23 = vsub.f32 1.0, %v2143_v3  ;;  %v2162_v25 = vmul.f32 %v2160_v22, %v2143_v3 }
0x1494   :  { %v2145_v6 = vpop.permute.xlu1 %2144 }
0x1495   :  { %v2147_v7 = vmul.f32 %v2145_v6, %v2143_v3 }
0x1497   :  { %2149 = vrot.lane.b32.xlu1 %v2147_v7, %s5812_s29 }
0x149f   :  { %v2054_v8 = vpop.permute.xlu0 %2053 }
0x14a0   :  { %v2056_v9 = vadd.f32 %v2054_v8, %v1964_v51 }
0x14a2   :  { %5750 = vtanh.f32 %v2056_v9  ;;  %v58_v9 = vld [vmem:[%s6695_s2 + $0xe0] sm:$0xff] }
0x14ac   :  { %v5751_v11 = vpop.eup %5750 }
0x14ad   :  { %2060 = vrot.lane.b32.xlu0 %v5751_v11, %s5813_s19  ;;  %v59_v11 = vld [vmem:[%s6695_s2 + $0xe8] sm:$0xff] }
0x1509   :  { %v2150_v12 = vpop.permute.xlu1 %2149 }
0x150a   :  { %v2152_v14 = vadd.f32 %v2150_v12, %v5877_v13  ;;  %v60_v12 = vld [vmem:[%s6695_s2 + $0xf0] sm:$0xff] }
0x150c   :  { %5752 = vtanh.f32 %v2152_v14  ;;  %v6326_v14 = vpack.c.bf16 %v59_v11, %v58_v9 }
0x1516   :  { %v5753_v16 = vpop.eup %5752 }
0x1517   :  { %2156 = vrot.lane.b32.xlu1 %v5753_v16, %s5813_s19  ;;  %v61_v16 = vld [vmem:[%s6695_s2 + $0xf8] sm:$0xff] }
0x151f   :  { %v2061_v17 = vpop.permute.xlu0 %2060 }
0x1520   :  { %v2063_v20 = vmul.f32 %v2061_v17, %v2058_v19  ;;  %v6332_v19 = vpack.c.bf16 %v61_v16, %v60_v12 }
0x1522   :  { %v6247_v21 = vadd.f32 %v2064_v18, %v2063_v20  ;;  %v54_v18 = vld [vmem:[%s6695_s2 + $0xc0] sm:$0xff]  ;;  %v55_v20 = vld [vmem:[%s6695_s2 + $0xc8] sm:$0xff] }
0x1523   :  { %v6344_v22 = vpack.c.bf16 %v55_v20, %v54_v18 }
0x1524   :  { %2241 = vrot.lane.b32.xlu0 %v6247_v21, %s5813_s19 }
0x1589   :  { %v2157_v24 = vpop.permute.xlu1 %2156 }
0x158a   :  { %v2159_v13 = vmul.f32 %v2157_v24, %v2154_v23  ;;  %v56_v23 = vld [vmem:[%s6695_s2 + $0xd0] sm:$0xff]  ;;  %v57_v24 = vld [vmem:[%s6695_s2 + $0xd8] sm:$0xff] }
0x158c   :  { %v6252_v15 = vadd.f32 %v2162_v25, %v2159_v13  ;;  %v6353_v25 = vpack.c.bf16 %v57_v24, %v56_v23 }
0x158e   :  { %v2165_v26 = vrot.slane %v6252_v15, 6  ;;  %v6389_v15 = vld [vmem:[%s6695_s2 + $0x108] ss:$0 sm:$0xff] }
0x1590   :  { %2166 = vrot.lane.b32.xlu1 %v2165_v26, %s5813_s19 }
0x1596   :  { %v2242_v30 = vpop.permute.xlu0 %2241 }
0x1597   :  { %5122 = vmatmul.mubr.msk.f32.vlgmr.msra.gmra.mrb[24].mxu0 %vm165_vm2, %v2242_v30 }
0x1598   :  { %5125 = vmatpush3.msra.mxu0 %v43_v28  ;;  %5126 = vmatprep.mubr.msk.f32.mxu0 %vm5810_vm1, %v5811_v4 }
0x1599   :  { %5543 = vmatprep.subr.bf16.mxu0 %v5809_v0 }
0x159b   :  { %5127 = vmatmul.mubr.msk.f32.vlgmr.msra.gmra.mrb[26].mxu0 %vm83_vm0, %v2354_v31 }
0x159c   :  { %5545 = vmatpush3.bf16.msra.mxu0 %v6273_v33  ;;  %5137 = vmatprep.mubr.msk.f32.mxu0 %vm5810_vm1, %v5811_v4 }
0x159d   :  { %5546 = vmatprep.subr.bf16.mxu0 %v5809_v0 }
0x15a0   :  { %5548 = vmatpush3.bf16.msra.mxu0 %v6284_v37 }
0x15a1   :  { %5555 = vmatprep.subr.bf16.mxu0 %v5809_v0 }
0x1602   :  { %v2167_v38 = vpop.permute.xlu1 %2166 }
0x1603   :  { %5111 = vmatmul.mubr.msk.f32.vlgmr.msra.gmra.mrb[22].mxu1 %vm165_vm2, %v2167_v38  ;;  %5138 = vmatmul.mubr.msk.f32.vlgmr.msra.gmra.mrb[28].mxu0 %vm165_vm2, %v2167_v38 }
0x1604   :  { %5159 = vmatprep.mubr.msk.f32.mxu0 %vm5810_vm1, %v5811_v4  ;;  %5148 = vmatprep.mubr.msk.f32.mxu1 %vm5810_vm1, %v5811_v4 }
0x1605   :  { %5557 = vmatpush3.bf16.msra.mxu0 %v6326_v14  ;;  %5551 = vmatpush3.bf16.msra.mxu1 %v6344_v22 }
0x1606   :  { %5558 = vmatprep.subr.bf16.mxu0 %v5809_v0  ;;  %5552 = vmatprep.subr.bf16.mxu1 %v5809_v0 }
0x1609   :  { %5560 = vmatpush3.bf16.msra.mxu0 %v6332_v19  ;;  %5554 = vmatpush3.bf16.msra.mxu1 %v6353_v25 }
0x160a   :  { %5567 = vmatprep.subr.bf16.mxu0 %v5809_v0  ;;  %5561 = vmatprep.subr.bf16.mxu1 %v5809_v0 }
0x166a   :  { %v2311_v41 = vpop.f32.mrb[24].mxu0 }
0x166b   :  { %v2312_v43 = vadd.f32 %v5807_v42, %v2311_v41  ;;  %v5123_v44 = vpop.f32.mrb[25].mxu0 }
0x166d   :  { %2321 = vrot.lane.b32.xlu0 %v2312_v43, %s5812_s29 }
0x166e   :  { %v2428_v45 = vpop.f32.mrb[26].mxu0 }
0x166f   :  { %v5128_v46 = vpop.f32.mrb[27].mxu0  ;;  %v2429_v47 = vadd.f32 %v4573_v58, %v2428_v45  ;;  %v6396_v45 = vld [vmem:[%s6695_s2 + $0x100] ss:$0 sm:$0xff]  ;;  %v2346_v58 = vld [vmem:[%s6695_s2 + $0x118] sm:$0xff] }
0x16d6   :  { %v2236_v49 = vpop.f32.mrb[22].mxu1  ;;  %v2498_v50 = vpop.f32.mrb[28].mxu0 }
0x16d7   :  { %v2237_v36 = vadd.f32 %v5808_v5, %v2236_v49  ;;  %v2499_v40 = vadd.f32 %v6304_v48, %v2498_v50  ;;  %v5112_v10 = vpop.f32.mrb[23].mxu1  ;;  %v5139_v51 = vpop.f32.mrb[29].mxu0 }
0x16d9   :  { %v2315_v53 = vadd.f32 %v2312_v43, %v2237_v36  ;;  %2508 = vrot.lane.b32.xlu1 %v2499_v40, %s5812_s29  ;;  %v2502_v59 = vadd.f32 %v2499_v40, %v2429_v47 }
0x16db   :  { %v2316_v32 = vmul.f32 0.5, %v2315_v53  ;;  %v2503_v60 = vmul.f32 0.5, %v2502_v59 }
0x16dd   :  { %5754 = vtanh.f32 %v2316_v32 }
0x16de   :  { %5756 = vtanh.f32 %v2503_v60  ;;  %v2348_v60 = vld [vmem:[%s6695_s2 + $0x128] sm:$0xff] }
0x16df   :  { %v2322_v56 = vpop.permute.xlu0 %2321 }
0x16e7   :  { %v5755_v54 = vpop.eup %5754 }
0x16e8   :  { %v2318_v55 = vmul.f32 0.5, %v5755_v54  ;;  %v5757_v61 = vpop.eup %5756 }
0x16e9   :  { %v2505_v62 = vmul.f32 0.5, %v5757_v61 }
0x16ea   :  { %v2319_v39 = vadd.f32 0.5, %v2318_v55 }
0x16eb   :  { %v2506_v52 = vadd.f32 0.5, %v2505_v62 }
0x16ec   :  { %v2324_v57 = vmul.f32 %v2322_v56, %v2319_v39  ;;  %v2331_v13 = vsub.f32 1.0, %v2319_v39  ;;  %v2337_v29 = vmul.f32 %v2319_v39, %v6247_v21 }
0x16ed   :  { %v2518_v31 = vsub.f32 1.0, %v2506_v52  ;;  %v2525_v35 = vmul.f32 %v2506_v52, %v2165_v26 }
0x16ee   :  { %2326 = vrot.lane.b32.xlu0 %v2324_v57, %s5812_s29  ;;  %v2345_v57 = vld [vmem:[%s6695_s2 + $0x110] sm:$0xff] }
0x16ef   :  { %v6409_v59 = vpack.c.bf16 %v2346_v58, %v2345_v57 }
0x174b   :  { %v2509_v63 = vpop.permute.xlu1 %2508 }
0x174c   :  { %v2511_v1 = vmul.f32 %v2509_v63, %v2506_v52 }
0x174e   :  { %2513 = vrot.lane.b32.xlu1 %v2511_v1, %s5812_s29 }
0x1760   :  { %v2327_v2 = vpop.permute.xlu0 %2326 }
0x1761   :  { %v2329_v3 = vadd.f32 %v2327_v2, %v2237_v36 }
0x1763   :  { %5758 = vtanh.f32 %v2329_v3 }
0x176d   :  { %v5759_v6 = vpop.eup %5758 }
0x176e   :  { %2333 = vrot.lane.b32.xlu0 %v5759_v6, %s5813_s19 }
0x17c0   :  { %v2514_v7 = vpop.permute.xlu1 %2513 }
0x17c1   :  { %v2516_v8 = vadd.f32 %v2514_v7, %v2429_v47  ;;  %v2347_v47 = vld [vmem:[%s6695_s2 + $0x120] sm:$0xff] }
0x17c2   :  { %v6415_v61 = vpack.c.bf16 %v2348_v60, %v2347_v47 }
0x17c3   :  { %5760 = vtanh.f32 %v2516_v8  ;;  %v6446_v8 = vld [vmem:[%s6695_s2 + $0x130] ss:$0 sm:$0xff] }
0x17cd   :  { %v5761_v17 = vpop.eup %5760 }
0x17ce   :  { %2520 = vrot.lane.b32.xlu1 %v5761_v17, %s5813_s19 }
0x17e0   :  { %v2334_v28 = vpop.permute.xlu0 %2333 }
0x17e1   :  { %v2336_v27 = vmul.f32 %v2334_v28, %v2331_v13 }
0x17e3   :  { %v6359_v30 = vadd.f32 %v2337_v29, %v2336_v27 }
0x17e5   :  { %2603 = vrot.lane.b32.xlu0 %v6359_v30, %s5813_s19 }
0x1840   :  { %v2521_v34 = vpop.permute.xlu1 %2520 }
0x1841   :  { %v2523_v38 = vmul.f32 %v2521_v34, %v2518_v31 }
0x1843   :  { %v6365_v41 = vadd.f32 %v2525_v35, %v2523_v38 }
0x1845   :  { %2528 = vrot.lane.b32.xlu1 %v6365_v41, %s5813_s19 }
0x1857   :  { %v2604_v42 = vpop.permute.xlu0 %2603 }
0x1858   :  { %5160 = vmatmul.mubr.msk.f32.vlgmr.msra.gmra.mrb[30].mxu0 %vm165_vm2, %v2604_v42 }
0x1859   :  { %5569 = vmatpush3.bf16.msra.mxu0 %v6273_v33  ;;  %5181 = vmatprep.mubr.msk.f32.mxu0 %vm5810_vm1, %v5811_v4 }
0x185a   :  { %5570 = vmatprep.subr.bf16.mxu0 %v5809_v0 }
0x185d   :  { %5572 = vmatpush3.bf16.msra.mxu0 %v6284_v37 }
0x185e   :  { %5579 = vmatprep.subr.bf16.mxu0 %v5809_v0 }
0x18b7   :  { %v2529_v21 = vpop.permute.xlu1 %2528 }
0x18b8   :  { %5149 = vmatmul.mubr.msk.f32.vlgmr.msra.gmra.mrb[24].mxu1 %vm165_vm2, %v2529_v21  ;;  %5182 = vmatmul.mubr.msk.f32.vlgmr.msra.gmra.mrb[32].mxu0 %vm165_vm2, %v2529_v21 }
0x18b9   :  { %5581 = vmatpush3.bf16.msra.mxu0 %v6326_v14  ;;  %5170 = vmatprep.mubr.msk.f32.mxu1 %vm5810_vm1, %v5811_v4 }
0x18ba   :  { %5582 = vmatprep.subr.bf16.mxu0 %v5809_v0  ;;  %5203 = vmatprep.mubr.msk.f32.mxu0 %vm5810_vm1, %v5811_v4 }
0x18bb   :  { %5563 = vmatpush3.bf16.msra.mxu1 %v6409_v59 }
0x18bc   :  { %5564 = vmatprep.subr.bf16.mxu1 %v5809_v0 }
0x18bd   :  { %5584 = vmatpush3.bf16.msra.mxu0 %v6332_v19 }
0x18be   :  { %5591 = vmatprep.subr.bf16.mxu0 %v5809_v0 }
0x18bf   :  { %5566 = vmatpush3.bf16.msra.mxu1 %v6415_v61 }
0x18c0   :  { %5573 = vmatprep.subr.bf16.mxu1 %v5809_v0 }
0x192b   :  { %v2673_v26 = vpop.f32.mrb[30].mxu0 }
0x192c   :  { %v2674_v43 = vadd.f32 %v6389_v15, %v2673_v26  ;;  %v5161_v44 = vpop.f32.mrb[31].mxu0 }
0x192e   :  { %2683 = vrot.lane.b32.xlu0 %v2674_v43, %s5812_s29 }
0x198b   :  { %v2598_v46 = vpop.f32.mrb[24].mxu1  ;;  %v2845_v49 = vpop.f32.mrb[32].mxu0 }
0x198c   :  { %v2599_v50 = vadd.f32 %v6396_v45, %v2598_v46  ;;  %v5150_v5 = vpop.f32.mrb[25].mxu1  ;;  %v5183_v36 = vpop.f32.mrb[33].mxu0  ;;  %v2846_v52 = vadd.f32 %v6304_v48, %v2845_v49 }
0x198e   :  { %v2677_v40 = vadd.f32 %v2674_v43, %v2599_v50 }
0x1990   :  { %v2678_v10 = vmul.f32 0.5, %v2677_v40 }
0x1992   :  { %5762 = vtanh.f32 %v2678_v10 }
0x199c   :  { %v5763_v51 = vpop.eup %5762 }
0x199d   :  { %v2680_v53 = vmul.f32 0.5, %v5763_v51 }
0x199f   :  { %v2681_v32 = vadd.f32 0.5, %v2680_v53 }
0x19a0   :  { %v2684_v54 = vpop.permute.xlu0 %2683 }
0x19a1   :  { %v2686_v55 = vmul.f32 %v2684_v54, %v2681_v32  ;;  %v2693_v63 = vsub.f32 1.0, %v2681_v32  ;;  %v2699_v2 = vmul.f32 %v2681_v32, %v6359_v30 }
0x19a3   :  { %2688 = vrot.lane.b32.xlu1 %v2686_v55, %s5812_s29 }
0x1a15   :  { %v2689_v39 = vpop.permute.xlu1 %2688 }
0x1a16   :  { %v2691_v56 = vadd.f32 %v2689_v39, %v2599_v50 }
0x1a18   :  { %5764 = vtanh.f32 %v2691_v56 }
0x1a22   :  { %v5765_v62 = vpop.eup %5764 }
0x1a23   :  { %2695 = vrot.lane.b32.xlu0 %v5765_v62, %s5813_s19 }
0x1a27   :  { %2855 = vrot.lane.b32.xlu0 %v2846_v52, %s5812_s29 }
0x1a95   :  { %v2696_v1 = vpop.permute.xlu0 %2695 }
0x1a96   :  { %v2698_v3 = vmul.f32 %v2696_v1, %v2693_v63 }
0x1a98   :  { %v6424_v6 = vadd.f32 %v2699_v2, %v2698_v3 }
0x1a99   :  { %v2856_v28 = vpop.permute.xlu0 %2855 }
0x1a9a   :  { %2702 = vrot.lane.b32.xlu1 %v6424_v6, %s5813_s19 }
0x1b0c   :  { %v2703_v7 = vpop.permute.xlu1 %2702 }
0x1b0d   :  { %2706 = vst.msk [vmem:[#allocation2] sm:$0x3] %vm2705_vm3, %v2703_v7  ;;  %5171 = vmatmul.mubr.msk.f32.vlgmr.msra.gmra.mrb[26].mxu1 %vm165_vm2, %v2703_v7  ;;  %5204 = vmatmul.mubr.msk.f32.vlgmr.msra.gmra.mrb[34].mxu0 %vm165_vm2, %v2703_v7 }
0x1b0e   :  { %5575 = vmatpush3.bf16.msra.mxu1 %v6344_v22  ;;  %5593 = vmatpush3.bf16.msra.mxu0 %v6273_v33 }
0x1b0f   :  { %5576 = vmatprep.subr.bf16.mxu1 %v5809_v0  ;;  %5594 = vmatprep.subr.bf16.mxu0 %v5809_v0 }
0x1b10   :  { %5192 = vmatprep.mubr.msk.f32.mxu1 %vm5810_vm1, %v5811_v4  ;;  %5225 = vmatprep.mubr.msk.f32.mxu0 %vm5810_vm1, %v5811_v4 }
0x1b12   :  { %5578 = vmatpush3.bf16.msra.mxu1 %v6353_v25  ;;  %5596 = vmatpush3.bf16.msra.mxu0 %v6284_v37 }
0x1b13   :  { %5585 = vmatprep.subr.bf16.mxu1 %v5809_v0  ;;  %5603 = vmatprep.subr.bf16.mxu0 %v5809_v0 }
0x1be0   :  { %v2775_v9 = vpop.f32.mrb[26].mxu1  ;;  %v3014_v11 = vpop.f32.mrb[34].mxu0 }
0x1be1   :  { %v2776_v12 = vadd.f32 %v6446_v8, %v2775_v9  ;;  %v5172_v16 = vpop.f32.mrb[27].mxu1  ;;  %v5205_v17 = vpop.f32.mrb[35].mxu0  ;;  %v3015_v34 = vadd.f32 %v6389_v15, %v3014_v11 }
0x1be3   :  { %v2849_v18 = vadd.f32 %v2846_v52, %v2776_v12 }
0x1be5   :  { %v2850_v20 = vmul.f32 0.5, %v2849_v18 }
0x1be7   :  { %5766 = vtanh.f32 %v2850_v20 }
0x1bf1   :  { %v5767_v23 = vpop.eup %5766 }
0x1bf2   :  { %v2852_v24 = vmul.f32 0.5, %v5767_v23 }
0x1bf4   :  { %v2853_v13 = vadd.f32 0.5, %v2852_v24 }
0x1bf6   :  { %v2858_v29 = vmul.f32 %v2856_v28, %v2853_v13  ;;  %v2865_v35 = vsub.f32 1.0, %v2853_v13  ;;  %v2871_v42 = vmul.f32 %v2853_v13, %v6365_v41 }
0x1bf8   :  { %2860 = vrot.lane.b32.xlu1 %v2858_v29, %s5812_s29 }
0x1c6a   :  { %v2861_v27 = vpop.permute.xlu1 %2860 }
0x1c6b   :  { %v2863_v30 = vadd.f32 %v2861_v27, %v2776_v12 }
0x1c6d   :  { %5768 = vtanh.f32 %v2863_v30 }
0x1c77   :  { %v5769_v31 = vpop.eup %5768 }
0x1c78   :  { %2867 = vrot.lane.b32.xlu0 %v5769_v31, %s5813_s19 }
0x1c7c   :  { %3024 = vrot.lane.b32.xlu0 %v3015_v34, %s5812_s29 }
0x1cea   :  { %v2868_v38 = vpop.permute.xlu0 %2867 }
0x1ceb   :  { %v2870_v21 = vmul.f32 %v2868_v38, %v2865_v35 }
0x1ced   :  { %v6454_v26 = vadd.f32 %v2871_v42, %v2870_v21 }
0x1cee   :  { %v3025_v53 = vpop.permute.xlu0 %3024 }
0x1cef   :  { %2874 = vrot.lane.b32.xlu1 %v6454_v26, %s5813_s19 }
0x1d61   :  { %v2875_v43 = vpop.permute.xlu1 %2874 }
0x1d62   :  { %5193 = vmatmul.mubr.msk.f32.vlgmr.msra.gmra.mrb[28].mxu1 %vm165_vm2, %v2875_v43  ;;  %5226 = vmatmul.mubr.msk.f32.vlgmr.msra.gmra.mrb[36].mxu0 %vm165_vm2, %v2875_v43 }
0x1d63   :  { %5587 = vmatpush3.bf16.msra.mxu1 %v6409_v59  ;;  %5605 = vmatpush3.bf16.msra.mxu0 %v6326_v14 }
0x1d64   :  { %5588 = vmatprep.subr.bf16.mxu1 %v5809_v0  ;;  %5606 = vmatprep.subr.bf16.mxu0 %v5809_v0 }
0x1d65   :  { %5214 = vmatprep.mubr.msk.f32.mxu1 %vm5810_vm1, %v5811_v4  ;;  %5247 = vmatprep.mubr.msk.f32.mxu0 %vm5810_vm1, %v5811_v4 }
0x1d67   :  { %5590 = vmatpush3.bf16.msra.mxu1 %v6415_v61  ;;  %5608 = vmatpush3.bf16.msra.mxu0 %v6332_v19 }
0x1d68   :  { %5597 = vmatprep.subr.bf16.mxu1 %v5809_v0  ;;  %5615 = vmatprep.subr.bf16.mxu0 %v5809_v0 }
0x1e35   :  { %v2944_v41 = vpop.f32.mrb[28].mxu1  ;;  %v3185_v44 = vpop.f32.mrb[36].mxu0 }
0x1e36   :  { %v2945_v46 = vadd.f32 %v6396_v45, %v2944_v41  ;;  %v5194_v49 = vpop.f32.mrb[29].mxu1  ;;  %v5227_v50 = vpop.f32.mrb[37].mxu0  ;;  %v3186_v56 = vadd.f32 %v6304_v48, %v3185_v44 }
0x1e38   :  { %v3018_v5 = vadd.f32 %v3015_v34, %v2945_v46 }
0x1e3a   :  { %v3019_v36 = vmul.f32 0.5, %v3018_v5 }
0x1e3c   :  { %5770 = vtanh.f32 %v3019_v36 }
0x1e46   :  { %v5771_v40 = vpop.eup %5770 }
0x1e47   :  { %v3021_v10 = vmul.f32 0.5, %v5771_v40 }
0x1e49   :  { %v3022_v51 = vadd.f32 0.5, %v3021_v10 }
0x1e4b   :  { %v3027_v32 = vmul.f32 %v3025_v53, %v3022_v51  ;;  %v3034_v57 = vsub.f32 1.0, %v3022_v51  ;;  %v3040_v47 = vmul.f32 %v3022_v51, %v6424_v6 }
0x1e4d   :  { %3029 = vrot.lane.b32.xlu1 %v3027_v32, %s5812_s29 }
0x1ebf   :  { %v3030_v54 = vpop.permute.xlu1 %3029 }
0x1ec0   :  { %v3032_v55 = vadd.f32 %v3030_v54, %v2945_v46 }
0x1ec2   :  { %5772 = vtanh.f32 %v3032_v55 }
0x1ecc   :  { %v5773_v39 = vpop.eup %5772 }
0x1ecd   :  { %3036 = vrot.lane.b32.xlu0 %v5773_v39, %s5813_s19 }
0x1ed1   :  { %3195 = vrot.lane.b32.xlu0 %v3186_v56, %s5812_s29 }
0x1f3f   :  { %v3037_v58 = vpop.permute.xlu0 %3036 }
0x1f40   :  { %v3039_v60 = vmul.f32 %v3037_v58, %v3034_v57 }
0x1f42   :  { %v6478_v62 = vadd.f32 %v3040_v47, %v3039_v60 }
0x1f43   :  { %v3196_v17 = vpop.permute.xlu0 %3195 }
0x1f44   :  { %3043 = vrot.lane.b32.xlu1 %v6478_v62, %s5813_s19 }
0x1fb6   :  { %v3044_v52 = vpop.permute.xlu1 %3043 }
0x1fb7   :  { %3046 = vst.msk [vmem:[#allocation2 + $0x8] sm:$0x3] %vm2705_vm3, %v3044_v52  ;;  %5215 = vmatmul.mubr.msk.f32.vlgmr.msra.gmra.mrb[30].mxu1 %vm165_vm2, %v3044_v52  ;;  %5248 = vmatmul.mubr.msk.f32.vlgmr.msra.gmra.mrb[38].mxu0 %vm165_vm2, %v3044_v52 }
0x1fb8   :  { %5599 = vmatpush3.bf16.msra.mxu1 %v6344_v22  ;;  %5617 = vmatpush3.bf16.msra.mxu0 %v6273_v33 }
0x1fb9   :  { %5600 = vmatprep.subr.bf16.mxu1 %v5809_v0  ;;  %5618 = vmatprep.subr.bf16.mxu0 %v5809_v0 }
0x1fba   :  { %5236 = vmatprep.mubr.msk.f32.mxu1 %vm5810_vm1, %v5811_v4  ;;  %5269 = vmatprep.mubr.msk.f32.mxu0 %vm5810_vm1, %v5811_v4 }
0x1fbc   :  { %5602 = vmatpush3.bf16.msra.mxu1 %v6353_v25  ;;  %5620 = vmatpush3.bf16.msra.mxu0 %v6284_v37 }
0x1fbd   :  { %5609 = vmatprep.subr.bf16.mxu1 %v5809_v0  ;;  %5627 = vmatprep.subr.bf16.mxu0 %v5809_v0 }
0x208a   :  { %v3115_v63 = vpop.f32.mrb[30].mxu1  ;;  %v3354_v1 = vpop.f32.mrb[38].mxu0 }
0x208b   :  { %v3116_v2 = vadd.f32 %v6446_v8, %v3115_v63  ;;  %v5216_v3 = vpop.f32.mrb[31].mxu1  ;;  %v5249_v6 = vpop.f32.mrb[39].mxu0  ;;  %v3355_v13 = vadd.f32 %v6389_v15, %v3354_v1 }
0x208d   :  { %v3189_v7 = vadd.f32 %v3186_v56, %v3116_v2 }
0x208f   :  { %v3190_v9 = vmul.f32 0.5, %v3189_v7 }
0x2091   :  { %5774 = vtanh.f32 %v3190_v9 }
0x209b   :  { %v5775_v11 = vpop.eup %5774 }
0x209c   :  { %v3192_v12 = vmul.f32 0.5, %v5775_v11 }
0x209e   :  { %v3193_v16 = vadd.f32 0.5, %v3192_v12 }
0x20a0   :  { %v3198_v18 = vmul.f32 %v3196_v17, %v3193_v16  ;;  %v3205_v28 = vsub.f32 1.0, %v3193_v16  ;;  %v3211_v27 = vmul.f32 %v3193_v16, %v6454_v26 }
0x20a2   :  { %3200 = vrot.lane.b32.xlu1 %v3198_v18, %s5812_s29 }
0x2114   :  { %v3201_v20 = vpop.permute.xlu1 %3200 }
0x2115   :  { %v3203_v23 = vadd.f32 %v3201_v20, %v3116_v2 }
0x2117   :  { %5776 = vtanh.f32 %v3203_v23 }
0x2121   :  { %v5777_v24 = vpop.eup %5776 }
0x2122   :  { %3207 = vrot.lane.b32.xlu0 %v5777_v24, %s5813_s19 }
0x2126   :  { %3364 = vrot.lane.b32.xlu0 %v3355_v13, %s5812_s29 }
0x2194   :  { %v3208_v29 = vpop.permute.xlu0 %3207 }
0x2195   :  { %v3210_v30 = vmul.f32 %v3208_v29, %v3205_v28 }
0x2197   :  { %v6503_v31 = vadd.f32 %v3211_v27, %v3210_v30 }
0x2198   :  { %v3365_v50 = vpop.permute.xlu0 %3364 }
0x2199   :  { %3214 = vrot.lane.b32.xlu1 %v6503_v31, %s5813_s19 }
0x220b   :  { %v3215_v34 = vpop.permute.xlu1 %3214 }
0x220c   :  { %5237 = vmatmul.mubr.msk.f32.vlgmr.msra.gmra.mrb[32].mxu1 %vm165_vm2, %v3215_v34  ;;  %5270 = vmatmul.mubr.msk.f32.vlgmr.msra.gmra.mrb[40].mxu0 %vm165_vm2, %v3215_v34 }
0x220d   :  { %5611 = vmatpush3.bf16.msra.mxu1 %v6409_v59  ;;  %5629 = vmatpush3.bf16.msra.mxu0 %v6326_v14 }
0x220e   :  { %5612 = vmatprep.subr.bf16.mxu1 %v5809_v0  ;;  %5630 = vmatprep.subr.bf16.mxu0 %v5809_v0 }
0x220f   :  { %5258 = vmatprep.mubr.msk.f32.mxu1 %vm5810_vm1, %v5811_v4  ;;  %5291 = vmatprep.mubr.msk.f32.mxu0 %vm5810_vm1, %v5811_v4 }
0x2211   :  { %5614 = vmatpush3.bf16.msra.mxu1 %v6415_v61  ;;  %5632 = vmatpush3.bf16.msra.mxu0 %v6332_v19 }
0x2212   :  { %5621 = vmatprep.subr.bf16.mxu1 %v5809_v0  ;;  %5639 = vmatprep.subr.bf16.mxu0 %v5809_v0 }
0x22df   :  { %v3284_v35 = vpop.f32.mrb[32].mxu1  ;;  %v3525_v38 = vpop.f32.mrb[40].mxu0 }
0x22e0   :  { %v3285_v42 = vadd.f32 %v6396_v45, %v3284_v35  ;;  %v5238_v21 = vpop.f32.mrb[33].mxu1  ;;  %v5271_v26 = vpop.f32.mrb[41].mxu0  ;;  %v3526_v51 = vadd.f32 %v6304_v48, %v3525_v38 }
0x22e2   :  { %v3358_v43 = vadd.f32 %v3355_v13, %v3285_v42 }
0x22e4   :  { %v3359_v41 = vmul.f32 0.5, %v3358_v43 }
0x22e6   :  { %5778 = vtanh.f32 %v3359_v41 }
0x22f0   :  { %v5779_v44 = vpop.eup %5778 }
0x22f1   :  { %v3361_v46 = vmul.f32 0.5, %v5779_v44 }
0x22f3   :  { %v3362_v49 = vadd.f32 0.5, %v3361_v46 }
0x22f5   :  { %v3367_v5 = vmul.f32 %v3365_v50, %v3362_v49  ;;  %v3374_v53 = vsub.f32 1.0, %v3362_v49  ;;  %v3380_v54 = vmul.f32 %v3362_v49, %v6478_v62 }
0x22f7   :  { %3369 = vrot.lane.b32.xlu1 %v3367_v5, %s5812_s29 }
0x2369   :  { %v3370_v36 = vpop.permute.xlu1 %3369 }
0x236a   :  { %v3372_v40 = vadd.f32 %v3370_v36, %v3285_v42 }
0x236c   :  { %5780 = vtanh.f32 %v3372_v40 }
0x2376   :  { %v5781_v10 = vpop.eup %5780 }
0x2377   :  { %3376 = vrot.lane.b32.xlu0 %v5781_v10, %s5813_s19 }
0x237b   :  { %3535 = vrot.lane.b32.xlu0 %v3526_v51, %s5812_s29 }
0x23e9   :  { %v3377_v32 = vpop.permute.xlu0 %3376 }
0x23ea   :  { %v3379_v55 = vmul.f32 %v3377_v32, %v3374_v53 }
0x23ec   :  { %v6527_v39 = vadd.f32 %v3380_v54, %v3379_v55 }
0x23ed   :  { %v3536_v6 = vpop.permute.xlu0 %3535 }
0x23ee   :  { %3383 = vrot.lane.b32.xlu1 %v6527_v39, %s5813_s19 }
0x2460   :  { %v3384_v56 = vpop.permute.xlu1 %3383 }
0x2461   :  { %3386 = vst.msk [vmem:[#allocation2 + $0x10] sm:$0x3] %vm2705_vm3, %v3384_v56  ;;  %5259 = vmatmul.mubr.msk.f32.vlgmr.msra.gmra.mrb[34].mxu1 %vm165_vm2, %v3384_v56  ;;  %5292 = vmatmul.mubr.msk.f32.vlgmr.msra.gmra.mrb[42].mxu0 %vm165_vm2, %v3384_v56 }
0x2462   :  { %5623 = vmatpush3.bf16.msra.mxu1 %v6344_v22  ;;  %5641 = vmatpush3.bf16.msra.mxu0 %v6273_v33 }
0x2463   :  { %5624 = vmatprep.subr.bf16.mxu1 %v5809_v0  ;;  %5642 = vmatprep.subr.bf16.mxu0 %v5809_v0 }
0x2464   :  { %5280 = vmatprep.mubr.msk.f32.mxu1 %vm5810_vm1, %v5811_v4  ;;  %5313 = vmatprep.mubr.msk.f32.mxu0 %vm5810_vm1, %v5811_v4 }
0x2466   :  { %5626 = vmatpush3.bf16.msra.mxu1 %v6353_v25  ;;  %5644 = vmatpush3.bf16.msra.mxu0 %v6284_v37 }
0x2467   :  { %5633 = vmatprep.subr.bf16.mxu1 %v5809_v0  ;;  %5651 = vmatprep.subr.bf16.mxu0 %v5809_v0 }
0x2534   :  { %v3455_v57 = vpop.f32.mrb[34].mxu1  ;;  %v3694_v58 = vpop.f32.mrb[42].mxu0 }
0x2535   :  { %v3456_v47 = vadd.f32 %v6446_v8, %v3455_v57  ;;  %v5260_v60 = vpop.f32.mrb[35].mxu1  ;;  %v5293_v62 = vpop.f32.mrb[43].mxu0  ;;  %v3695_v16 = vadd.f32 %v6389_v15, %v3694_v58 }
0x2537   :  { %v3529_v52 = vadd.f32 %v3526_v51, %v3456_v47 }
0x2539   :  { %v3530_v63 = vmul.f32 0.5, %v3529_v52 }
0x253b   :  { %5782 = vtanh.f32 %v3530_v63 }
0x2545   :  { %v5783_v1 = vpop.eup %5782 }
0x2546   :  { %v3532_v2 = vmul.f32 0.5, %v5783_v1 }
0x2548   :  { %v3533_v3 = vadd.f32 0.5, %v3532_v2 }
0x254a   :  { %v3538_v7 = vmul.f32 %v3536_v6, %v3533_v3  ;;  %v3545_v17 = vsub.f32 1.0, %v3533_v3  ;;  %v3551_v20 = vmul.f32 %v3533_v3, %v6503_v31 }
0x254c   :  { %3540 = vrot.lane.b32.xlu1 %v3538_v7, %s5812_s29 }
0x25be   :  { %v3541_v9 = vpop.permute.xlu1 %3540 }
0x25bf   :  { %v3543_v11 = vadd.f32 %v3541_v9, %v3456_v47 }
0x25c1   :  { %5784 = vtanh.f32 %v3543_v11 }
0x25cb   :  { %v5785_v12 = vpop.eup %5784 }
0x25cc   :  { %3547 = vrot.lane.b32.xlu0 %v5785_v12, %s5813_s19 }
0x25d0   :  { %3704 = vrot.lane.b32.xlu0 %v3695_v16, %s5812_s29 }
0x263e   :  { %v3548_v18 = vpop.permute.xlu0 %3547 }
0x263f   :  { %v3550_v23 = vmul.f32 %v3548_v18, %v3545_v17 }
0x2641   :  { %v6552_v24 = vadd.f32 %v3551_v20, %v3550_v23 }
0x2642   :  { %v3705_v26 = vpop.permute.xlu0 %3704 }
0x2643   :  { %3554 = vrot.lane.b32.xlu1 %v6552_v24, %s5813_s19 }
0x26b5   :  { %v3555_v13 = vpop.permute.xlu1 %3554 }
0x26b6   :  { %5281 = vmatmul.mubr.msk.f32.vlgmr.msra.gmra.mrb[36].mxu1 %vm165_vm2, %v3555_v13  ;;  %5314 = vmatmul.mubr.msk.f32.vlgmr.msra.gmra.mrb[44].mxu0 %vm165_vm2, %v3555_v13 }
0x26b7   :  { %5635 = vmatpush3.bf16.msra.mxu1 %v6409_v59  ;;  %5653 = vmatpush3.bf16.msra.mxu0 %v6326_v14 }
0x26b8   :  { %5636 = vmatprep.subr.bf16.mxu1 %v5809_v0  ;;  %5654 = vmatprep.subr.bf16.mxu0 %v5809_v0 }
0x26b9   :  { %5302 = vmatprep.mubr.msk.f32.mxu1 %vm5810_vm1, %v5811_v4  ;;  %5335 = vmatprep.mubr.msk.f32.mxu0 %vm5810_vm1, %v5811_v4 }
0x26bb   :  { %5638 = vmatpush3.bf16.msra.mxu1 %v6415_v61  ;;  %5656 = vmatpush3.bf16.msra.mxu0 %v6332_v19 }
0x26bc   :  { %5645 = vmatprep.subr.bf16.mxu1 %v5809_v0  ;;  %5663 = vmatprep.subr.bf16.mxu0 %v5809_v0 }
0x2789   :  { %v3624_v28 = vpop.f32.mrb[36].mxu1  ;;  %v3865_v29 = vpop.f32.mrb[44].mxu0 }
0x278a   :  { %v3625_v27 = vadd.f32 %v6396_v45, %v3624_v28  ;;  %v5282_v30 = vpop.f32.mrb[37].mxu1  ;;  %v5315_v31 = vpop.f32.mrb[45].mxu0  ;;  %v3866_v49 = vadd.f32 %v6304_v48, %v3865_v29 }
0x278c   :  { %v3698_v34 = vadd.f32 %v3695_v16, %v3625_v27 }
0x278e   :  { %v3699_v35 = vmul.f32 0.5, %v3698_v34 }
0x2790   :  { %5786 = vtanh.f32 %v3699_v35 }
0x279a   :  { %v5787_v38 = vpop.eup %5786 }
0x279b   :  { %v3701_v42 = vmul.f32 0.5, %v5787_v38 }
0x279d   :  { %v3702_v21 = vadd.f32 0.5, %v3701_v42 }
0x279f   :  { %v3707_v43 = vmul.f32 %v3705_v26, %v3702_v21  ;;  %v3714_v50 = vsub.f32 1.0, %v3702_v21  ;;  %v3720_v36 = vmul.f32 %v3702_v21, %v6527_v39 }
0x27a1   :  { %3709 = vrot.lane.b32.xlu1 %v3707_v43, %s5812_s29 }
0x2813   :  { %v3710_v41 = vpop.permute.xlu1 %3709 }
0x2814   :  { %v3712_v44 = vadd.f32 %v3710_v41, %v3625_v27 }
0x2816   :  { %5788 = vtanh.f32 %v3712_v44 }
0x2820   :  { %v5789_v46 = vpop.eup %5788 }
0x2821   :  { %3716 = vrot.lane.b32.xlu0 %v5789_v46, %s5813_s19 }
0x2825   :  { %3875 = vrot.lane.b32.xlu0 %v3866_v49, %s5812_s29 }
0x2893   :  { %v3717_v5 = vpop.permute.xlu0 %3716 }
0x2894   :  { %v3719_v40 = vmul.f32 %v3717_v5, %v3714_v50 }
0x2896   :  { %v6576_v10 = vadd.f32 %v3720_v36, %v3719_v40 }
0x2897   :  { %v3876_v60 = vpop.permute.xlu0 %3875 }
0x2898   :  { %3723 = vrot.lane.b32.xlu1 %v6576_v10, %s5813_s19 }
0x290a   :  { %v3724_v51 = vpop.permute.xlu1 %3723 }
0x290b   :  { %3726 = vst.msk [vmem:[#allocation2 + $0x18] sm:$0x3] %vm2705_vm3, %v3724_v51  ;;  %5303 = vmatmul.mubr.msk.f32.vlgmr.msra.gmra.mrb[38].mxu1 %vm165_vm2, %v3724_v51  ;;  %5336 = vmatmul.mubr.msk.f32.vlgmr.msra.gmra.mrb[46].mxu0 %vm165_vm2, %v3724_v51 }
0x290c   :  { %5647 = vmatpush3.bf16.msra.mxu1 %v6344_v22  ;;  %5665 = vmatpush3.bf16.msra.mxu0 %v6273_v33 }
0x290d   :  { %5648 = vmatprep.subr.bf16.mxu1 %v5809_v0  ;;  %5666 = vmatprep.subr.bf16.mxu0 %v5809_v0 }
0x290e   :  { %5324 = vmatprep.mubr.msk.f32.mxu1 %vm5810_vm1, %v5811_v4  ;;  %5357 = vmatprep.mubr.msk.f32.mxu0 %vm5810_vm1, %v5811_v4 }
0x2910   :  { %5650 = vmatpush3.bf16.msra.mxu1 %v6353_v25  ;;  %5668 = vmatpush3.bf16.msra.mxu0 %v6284_v37 }
0x2911   :  { %5657 = vmatprep.subr.bf16.mxu1 %v5809_v0  ;;  %5675 = vmatprep.subr.bf16.mxu0 %v5809_v0 }
0x29de   :  { %v3795_v53 = vpop.f32.mrb[38].mxu1  ;;  %v4034_v33 = vpop.f32.mrb[46].mxu0 }
0x29df   :  { %v3796_v32 = vadd.f32 %v6446_v8, %v3795_v53  ;;  %v5304_v54 = vpop.f32.mrb[39].mxu1  ;;  %v5337_v55 = vpop.f32.mrb[47].mxu0  ;;  %v4035_v1 = vadd.f32 %v6389_v15, %v4034_v33 }
0x29e1   :  { %v3869_v39 = vadd.f32 %v3866_v49, %v3796_v32 }
0x29e3   :  { %v3870_v56 = vmul.f32 0.5, %v3869_v39 }
0x29e5   :  { %5790 = vtanh.f32 %v3870_v56  ;;  %v74_v56 = vld [vmem:[%s6695_s2 + $0x148] sm:$0xff] }
0x29ef   :  { %v5791_v57 = vpop.eup %5790 }
0x29f0   :  { %v3872_v58 = vmul.f32 0.5, %v5791_v57  ;;  %v75_v57 = vld [vmem:[%s6695_s2 + $0x150] sm:$0xff] }
0x29f2   :  { %v3873_v47 = vadd.f32 0.5, %v3872_v58  ;;  %v5685_v58 = vpack.c.bf16 %v75_v57, %v74_v56 }
0x29f4   :  { %v3878_v62 = vmul.f32 %v3876_v60, %v3873_v47  ;;  %v3885_v2 = vsub.f32 1.0, %v3873_v47  ;;  %v3891_v6 = vmul.f32 %v3873_v47, %v6552_v24  ;;  %v4407_v47 = vld [vmem:[#allocation2] sm:$0xff]  ;;  %v4408_v60 = vld [vmem:[#allocation2 + $0x8] sm:$0xff] }
0x29f6   :  { %3880 = vrot.lane.b32.xlu1 %v3878_v62, %s5812_s29  ;;  %v4409_v62 = vld [vmem:[#allocation2 + $0x10] sm:$0xff] }
0x2a68   :  { %v3881_v37 = vpop.permute.xlu1 %3880 }
0x2a69   :  { %v3883_v52 = vadd.f32 %v3881_v37, %v3796_v32  ;;  %v4410_v37 = vld [vmem:[#allocation2 + $0x18] sm:$0xff] }
0x2a6b   :  { %5792 = vtanh.f32 %v3883_v52 }
0x2a75   :  { %v5793_v63 = vpop.eup %5792 }
0x2a76   :  { %3887 = vrot.lane.b32.xlu0 %v5793_v63, %s5813_s19 }
0x2a7a   :  { %4044 = vrot.lane.b32.xlu0 %v4035_v1, %s5812_s29 }
0x2ae8   :  { %v3888_v3 = vpop.permute.xlu0 %3887 }
0x2ae9   :  { %v3890_v7 = vmul.f32 %v3888_v3, %v3885_v2 }
0x2aeb   :  { %v6601_v9 = vadd.f32 %v3891_v6, %v3890_v7  ;;  %v4598_v7 = vld [vmem:[%s6695_s2 + $0x158] ss:$0 sm:$0xff] }
0x2aec   :  { %v4045_v28 = vpop.permute.xlu0 %4044 }
0x2aed   :  { %3894 = vrot.lane.b32.xlu1 %v6601_v9, %s5813_s19 }
0x2b5f   :  { %v3895_v11 = vpop.permute.xlu1 %3894 }
0x2b60   :  { %5325 = vmatmul.mubr.msk.f32.vlgmr.msra.gmra.mrb[40].mxu1 %vm165_vm2, %v3895_v11  ;;  %5358 = vmatmul.mubr.msk.f32.vlgmr.msra.gmra.mrb[48].mxu0 %vm165_vm2, %v3895_v11 }
0x2b61   :  { %5659 = vmatpush3.bf16.msra.mxu1 %v6409_v59  ;;  %5677 = vmatpush3.bf16.msra.mxu0 %v6326_v14 }
0x2b62   :  { %5660 = vmatprep.subr.bf16.mxu1 %v5809_v0  ;;  %5678 = vmatprep.subr.bf16.mxu0 %v5809_v0 }
0x2b63   :  { %5346 = vmatprep.mubr.msk.f32.mxu1 %vm5810_vm1, %v5811_v4  ;;  %5379 = vmatprep.mubr.msk.f32.mxu0 %vm5810_vm1, %v5811_v4 }
0x2b65   :  { %5662 = vmatpush3.bf16.msra.mxu1 %v6415_v61  ;;  %5680 = vmatpush3.bf16.msra.mxu0 %v6332_v19 }
0x2b66   :  { %5669 = vmatprep.subr.bf16.mxu1 %v5809_v0 }
0x2c33   :  { %v3964_v12 = vpop.f32.mrb[40].mxu1  ;;  %v4205_v59 = vpop.f32.mrb[48].mxu0 }
0x2c34   :  { %v3965_v14 = vadd.f32 %v6396_v45, %v3964_v12  ;;  %v5326_v16 = vpop.f32.mrb[41].mxu1  ;;  %v5359_v17 = vpop.f32.mrb[49].mxu0  ;;  %v4206_v30 = vadd.f32 %v6304_v48, %v4205_v59 }
0x2c36   :  { %v4038_v18 = vadd.f32 %v4035_v1, %v3965_v14 }
0x2c38   :  { %v4039_v20 = vmul.f32 0.5, %v4038_v18 }
0x2c3a   :  { %5794 = vtanh.f32 %v4039_v20 }
0x2c44   :  { %v5795_v23 = vpop.eup %5794 }
0x2c45   :  { %v4041_v24 = vmul.f32 0.5, %v5795_v23 }
0x2c47   :  { %v4042_v13 = vadd.f32 0.5, %v4041_v24 }
0x2c49   :  { %v4047_v29 = vmul.f32 %v4045_v28, %v4042_v13  ;;  %v4054_v31 = vsub.f32 1.0, %v4042_v13  ;;  %v4060_v35 = vmul.f32 %v4042_v13, %v6576_v10 }
0x2c4b   :  { %4049 = vrot.lane.b32.xlu1 %v4047_v29, %s5812_s29 }
0x2cbd   :  { %v4050_v61 = vpop.permute.xlu1 %4049 }
0x2cbe   :  { %v4052_v19 = vadd.f32 %v4050_v61, %v3965_v14 }
0x2cc0   :  { %5796 = vtanh.f32 %v4052_v19 }
0x2cca   :  { %v5797_v27 = vpop.eup %5796 }
0x2ccb   :  { %4056 = vrot.lane.b32.xlu0 %v5797_v27, %s5813_s19 }
0x2ccf   :  { %4215 = vrot.lane.b32.xlu0 %v4206_v30, %s5812_s29 }
0x2d3d   :  { %v4057_v34 = vpop.permute.xlu0 %4056 }
0x2d3e   :  { %v4059_v38 = vmul.f32 %v4057_v34, %v4054_v31 }
0x2d40   :  { %v6624_v42 = vadd.f32 %v4060_v35, %v4059_v38 }
0x2d42   :  { %4063 = vrot.lane.b32.xlu1 %v6624_v42, %s5813_s19 }
0x2db4   :  { %v4064_v21 = vpop.permute.xlu1 %4063 }
0x2db5   :  { %4066 = vst.msk [vmem:[#allocation2 + $0x20] sm:$0x3] %vm2705_vm3, %v4064_v21  ;;  %5347 = vmatmul.mubr.msk.f32.vlgmr.msra.gmra.mrb[42].mxu1 %vm165_vm2, %v4064_v21  ;;  %5380 = vmatmul.mubr.msk.f32.vlgmr.msra.gmra.mrb[50].mxu0 %vm165_vm2, %v4064_v21 }
0x2db6   :  { %5671 = vmatpush3.bf16.msra.mxu1 %v6344_v22  ;;  %5368 = vmatprep.mubr.msk.f32.mxu1 %vm5810_vm1, %v5811_v4  ;;  %v4216_v22 = vpop.permute.xlu0 %4215 }
0x2db7   :  { %5672 = vmatprep.subr.bf16.mxu1 %v5809_v0 }
0x2dba   :  { %5674 = vmatpush3.bf16.msra.mxu1 %v6353_v25  ;;  %v72_v25 = vld [vmem:[%s6695_s2 + $0x138] sm:$0xff] }
0x2dbc   :  { %v4411_v52 = vld [vmem:[#allocation2 + $0x20] sm:$0xff] }
0x2e88   :  { %v4135_v48 = vpop.f32.mrb[42].mxu1  ;;  %v4374_v26 = vpop.f32.mrb[50].mxu0 }
0x2e89   :  { %v4136_v43 = vadd.f32 %v6446_v8, %v4135_v48  ;;  %v5348_v41 = vpop.f32.mrb[43].mxu1  ;;  %v5381_v44 = vpop.f32.mrb[51].mxu0  ;;  %v73_v8 = vld [vmem:[%s6695_s2 + $0x140] sm:$0xff]  ;;  %v4375_v53 = vadd.f32 %v6389_v15, %v4374_v26 }
0x2e8a   :  { %v5681_v10 = vpack.c.bf16 %v73_v8, %v72_v25 }
0x2e8b   :  { %v4209_v46 = vadd.f32 %v4206_v30, %v4136_v43 }
0x2e8c   :  { %5682 = vmatprep.subr.bf16.mxu1 %v5681_v10 }
0x2e8d   :  { %v4210_v49 = vmul.f32 0.5, %v4209_v46 }
0x2e8f   :  { %5798 = vtanh.f32 %v4210_v49 }
0x2e99   :  { %v5799_v50 = vpop.eup %5798 }
0x2e9a   :  { %v4212_v5 = vmul.f32 0.5, %v5799_v50 }
0x2e9c   :  { %v4213_v36 = vadd.f32 0.5, %v4212_v5 }
0x2e9e   :  { %v4218_v40 = vmul.f32 %v4216_v22, %v4213_v36  ;;  %v4225_v33 = vsub.f32 1.0, %v4213_v36  ;;  %v4231_v54 = vmul.f32 %v4213_v36, %v6601_v9 }
0x2ea0   :  { %4220 = vrot.lane.b32.xlu1 %v4218_v40, %s5812_s29 }
0x2f12   :  { %v4221_v4 = vpop.permute.xlu1 %4220 }
0x2f13   :  { %v4223_v0 = vadd.f32 %v4221_v4, %v4136_v43 }
0x2f15   :  { %5800 = vtanh.f32 %v4223_v0 }
0x2f1f   :  { %v5801_v51 = vpop.eup %5800 }
0x2f20   :  { %4227 = vrot.lane.b32.xlu0 %v5801_v51, %s5813_s19 }
0x2f24   :  { %4384 = vrot.lane.b32.xlu0 %v4375_v53, %s5812_s29 }
0x2f92   :  { %v4228_v32 = vpop.permute.xlu0 %4227 }
0x2f93   :  { %v4230_v55 = vmul.f32 %v4228_v32, %v4225_v33 }
0x2f95   :  { %v4232_v39 = vadd.f32 %v4231_v54, %v4230_v55 }
0x2f96   :  { %v4385_v24 = vpop.permute.xlu0 %4384 }
0x2f97   :  { %4234 = vrot.lane.b32.xlu1 %v4232_v39, %s5813_s19 }
0x3009   :  { %v4235_v15 = vpop.permute.xlu1 %4234 }
0x300a   :  { %5369 = vmatmul.mubr.msk.f32.vlgmr.msra.gmra.mrb[44].mxu1 %vm165_vm2, %v4235_v15 }
0x300b   :  { %5684 = vmatpush3.bf16.msra.mxu1 %v5681_v10  ;;  %5390 = vmatprep.mubr.msk.f32.mxu1 %vm165_vm2, %v4407_v47 }
0x300c   :  { %5686 = vmatprep.subr.bf16.mxu1 %v5685_v58 }
0x300f   :  { %5688 = vmatpush3.bf16.msra.mxu1 %v5685_v58 }
0x3012   :  { %5391 = vmatmul.mubr.msk.f32.vlgmr.msra.gmra.mrb[46].mxu1 %vm165_vm2, %v4408_v60 }
0x3013   :  { %5393 = vmatprep.mubr.msk.f32.mxu1 %vm165_vm2, %v4409_v62 }
0x3016   :  { %5394 = vmatmul.mubr.msk.f32.gmra.mrb[48].mxu1 %vm165_vm2, %v4410_v37 }
0x3017   :  { %5396 = vmatprep.mubr.msk.f32.mxu1 %vm165_vm2, %v4411_v52 }
0x30dd   :  { %v4304_v63 = vpop.f32.mrb[44].mxu1 }
0x30de   :  { %v4305_v1 = vadd.f32 %v6396_v45, %v4304_v63  ;;  %v5370_v2 = vpop.f32.mrb[45].mxu1 }
0x30e0   :  { %v4378_v3 = vadd.f32 %v4375_v53, %v4305_v1 }
0x30e2   :  { %v4379_v6 = vmul.f32 0.5, %v4378_v3 }
0x30e4   :  { %5802 = vtanh.f32 %v4379_v6 }
0x30e5   :  { %v5392_v9 = vpop.f32.mrb[46].mxu1 }
0x30e6   :  { %v4507_v11 = vadd.f32 %v5392_v9, %v4598_v7  ;;  %v4501_v12 = vpop.f32.mrb[47].mxu1 }
0x30e7   :  { %v4502_v59 = vadd.f32 %v4598_v7, %v4501_v12 }
0x30e8   :  { %4532 = vst.msk [vmem:[%s6698_s3 + $0x8] sm:$0xff] %vm4530_vm4, %v4507_v11 }
0x30e9   :  { %4531 = vst.msk [vmem:[%s6698_s3] sm:$0xff] %vm4530_vm4, %v4502_v59  ;;  %v5395_v45 = vpop.f32.mrb[48].mxu1 }
0x30ea   :  { %v4517_v14 = vadd.f32 %v5395_v45, %v4598_v7  ;;  %v4511_v16 = vpop.f32.mrb[49].mxu1 }
0x30eb   :  { %v4512_v17 = vadd.f32 %v4598_v7, %v4511_v16 }
0x30ec   :  { %4534 = vst.msk [vmem:[%s6698_s3 + $0x18] sm:$0xff] %vm4530_vm4, %v4517_v14 }
0x30ed   :  { %4533 = vst.msk [vmem:[%s6698_s3 + $0x10] sm:$0xff] %vm4530_vm4, %v4512_v17 }
0x30ee   :  { %v5803_v18 = vpop.eup %5802 }
0x30ef   :  { %v4381_v20 = vmul.f32 0.5, %v5803_v18 }
0x30f1   :  { %v4382_v23 = vadd.f32 0.5, %v4381_v20 }
0x30f3   :  { %v4387_v13 = vmul.f32 %v4385_v24, %v4382_v23  ;;  %v4394_v19 = vsub.f32 1.0, %v4382_v23  ;;  %v4400_v30 = vmul.f32 %v4382_v23, %v6624_v42 }
0x30f5   :  { %4389 = vrot.lane.b32.xlu1 %v4387_v13, %s5812_s29 }
0x3167   :  { %v4390_v28 = vpop.permute.xlu1 %4389 }
0x3168   :  { %v4392_v29 = vadd.f32 %v4390_v28, %v4305_v1 }
0x316a   :  { %5804 = vtanh.f32 %v4392_v29 }
0x3174   :  { %v5805_v61 = vpop.eup %5804 }
0x3175   :  { %4396 = vrot.lane.b32.xlu0 %v5805_v61, %s5813_s19 }
0x31e7   :  { %v4397_v27 = vpop.permute.xlu0 %4396 }
0x31e8   :  { %v4399_v31 = vmul.f32 %v4397_v27, %v4394_v19 }
0x31ea   :  { %v4401_v34 = vadd.f32 %v4400_v30, %v4399_v31 }
0x31ec   :  { %4403 = vrot.lane.b32.xlu1 %v4401_v34, %s5813_s19 }
0x325e   :  { %v4404_v35 = vpop.permute.xlu1 %4403 }
0x325f   :  { %4406 = vst.msk [vmem:[#allocation2 + $0x28] sm:$0x3] %vm2705_vm3, %v4404_v35 }
0x3266   :  { %v4412_v38 = vld [vmem:[#allocation2 + $0x28] sm:$0xff] }
0x3267   :  { %5397 = vmatmul.mubr.msk.f32.gmra.mrb[50].mxu1 %vm165_vm2, %v4412_v38 }
0x333a   :  { %v5398_v21 = vpop.f32.mrb[50].mxu1 }
0x333b   :  { %v4527_v48 = vadd.f32 %v5398_v21, %v4598_v7  ;;  %v4521_v26 = vpop.f32.mrb[51].mxu1 }
0x333c   :  { %v4522_v43 = vadd.f32 %v4598_v7, %v4521_v26 }
0x333d   :  { %4536 = vst.msk [vmem:[%s6698_s3 + $0x28] sm:$0xff] %vm4530_vm4, %v4527_v48 }
0x333e   :  { %4535 = vst.msk [vmem:[%s6698_s3 + $0x20] sm:$0xff] %vm4530_vm4, %v4522_v43 }

</bundles_post_ra>
